<compile_context>
chip_gen: v7x
topology: tpu7x:2x2x1
jax: 0.10.0
libtpu: 0.0.40
codegen_flags: <defaults>
</compile_context>

<pallas_src>
import functools

import jax
import jax.numpy as jnp
from jax import lax
from jax.experimental import pallas as pl
from jax.experimental.pallas import tpu as pltpu


# ----------------------------------------------------------------------------
# Pallas kernel: per-query compute for one tile of TQ queries
# ----------------------------------------------------------------------------
def _lmi_query_kernel(x_ref, meta_ref, w_ref,
                      iw1b_ref, ib1_ref, mw1_ref, mb1_ref, mw2_ref, mb2_ref,
                      iw2_ref, ib2_ref, out_ref):
    f32 = jnp.float32

    # All 16 patch first-layer imnet passes in one block-diagonal matmul.
    # x: (TQ, 16*22) bf16, iw1b: (16*22, 16*C) bf16 -> h: (TQ, 16*C) f32, [k*C+c]
    h = jnp.dot(x_ref[...], iw1b_ref[...], preferred_element_type=f32) + ib1_ref[...]
    h = jnp.maximum(h, 0.0)

    # metanet: 33 -> C -> 16*C (mw2 columns host-permuted to [k*C+c] layout)
    hid = jnp.dot(meta_ref[...], mw1_ref[...], preferred_element_type=f32) + mb1_ref[...]
    hid = jnp.maximum(hid, 0.0)
    meta_out = jnp.dot(hid, mw2_ref[...], preferred_element_type=f32) + mb2_ref[...]

    # metanet modulation + normalized/swapped area weights (prepacked (TQ,16*C)),
    # then the shared second imnet layer collapsed to a single matmul against
    # iw2 tiled 16x on rows and zero-padded to 128 output lanes.  The bias is
    # added once — exact since the ensemble weights sum to 1.
    hw = h * meta_out * w_ref[...]
    out = jnp.dot(hw, iw2_ref[...], preferred_element_type=f32) + ib2_ref[...]
    out_ref[...] = out.astype(out_ref.dtype)


# ----------------------------------------------------------------------------
# JAX glue: encoder, grid_sample(nearest) gather
# ----------------------------------------------------------------------------
def _encode(inp, params):
    # TODO(synk): encoder_spec is an external model factory; synthesized here as
    # a single 3x3 same-padding conv with out_dim = C (plain JAX glue).
    feat = lax.conv_general_dilated(
        inp, params['wenc'], (1, 1), 'SAME',
        dimension_numbers=('NCHW', 'OIHW', 'NCHW'))
    return feat + params['benc'][None, :, None, None]


def _nearest_sample(img, c0, c1):
    """F.grid_sample(..., mode='nearest', align_corners=False) equivalent.
    img: (B, Cc, H, W); c0 indexes dim -2 (H), c1 indexes dim -1 (W)."""
    B, Cc, H, W = img.shape
    iy = jnp.clip(jnp.round(((c0 + 1.0) * H - 1.0) * 0.5), 0, H - 1).astype(jnp.int32)
    ix = jnp.clip(jnp.round(((c1 + 1.0) * W - 1.0) * 0.5), 0, W - 1).astype(jnp.int32)
    lin = iy * W + ix
    flat = img.reshape(B, Cc, H * W)
    g = jnp.take_along_axis(flat, lin[:, None, :], axis=2)   # (B, Cc, Q)
    return g.transpose(0, 2, 1), iy, ix                      # (B, Q, Cc)


def _gather_inputs(inp, feat, coord):
    """Gather the 16 shifted nearest-neighbour samples (local ensemble)."""
    B, Cin, _, _ = inp.shape
    C, H, W = feat.shape[1], feat.shape[2], feat.shape[3]
    Q = coord.shape[1]
    vx_lst, vy_lst, eps = [-3, -1, 1, 3], [-3, -1, 1, 3], 1e-6
    rx, ry = 1.0 / H, 1.0 / W                                # 2/size/2
    lo, hi = -1.0 + 1e-6, 1.0 - 1e-6

    qf_list, qr_list, qc_list = [], [], []
    for vx in vx_lst:
        for vy in vy_lst:
            c0 = jnp.clip(coord[..., 0] + vx * rx + eps, lo, hi)
            c1 = jnp.clip(coord[..., 1] + vy * ry + eps, lo, hi)
            qf, iy, ix = _nearest_sample(feat, c0, c1)
            qr, _, _ = _nearest_sample(inp, c0, c1)
            # feat_coord (make_coord) at the sampled pixel, computed analytically
            qc0 = -1.0 + (2.0 * iy.astype(jnp.float32) + 1.0) / H
            qc1 = -1.0 + (2.0 * ix.astype(jnp.float32) + 1.0) / W
            qf_list.append(qf)
            qr_list.append(qr)
            qc_list.append(jnp.stack([qc0, qc1], axis=-1))

    N = B * Q
    q_feat = jnp.stack(qf_list, 0).reshape(16, N, C)
    q_rgb = jnp.stack(qr_list, 0).reshape(16, N, Cin)
    q_coord = jnp.stack(qc_list, 0).reshape(16, N, 2)
    return q_feat, q_rgb, q_coord


# ----------------------------------------------------------------------------
# Full forward
# ----------------------------------------------------------------------------
def lmi_forward(inp, coord, cell, params, *, tq=512):
    B, Cin, _, _ = inp.shape
    feat = _encode(inp, params)
    C, H, W = feat.shape[1], feat.shape[2], feat.shape[3]
    Q = coord.shape[1]
    N = B * Q
    Dp = C + Cin + 3          # per-patch imnet input width (feat, rgb, rel0, rel1, cell)

    q_feat, q_rgb, q_coord = _gather_inputs(inp, feat, coord)
    coord_f = coord.reshape(N, 2).astype(jnp.float32)
    cell_f = cell.reshape(N, 2).astype(jnp.float32)

    # ---- hoisted relative-coordinate / area / packing math (fused by XLA) ----
    scale = jnp.array([H, W], jnp.float32)
    rel = (coord_f[None, :, :] - q_coord) * scale            # (16, N, 2)
    area = jnp.abs(rel[..., 0] * rel[..., 1]) + 1e-9         # (16, N)
    rel_cell = cell_f[:, 0:1] * float(H)                     # (N, 1)

    # normalized + swapped (local_ensemble) weights, expanded per channel
    wts = (area[::-1] / area.sum(0)[None, :]).T              # (N, 16)
    w_exp = jnp.repeat(wts, C, axis=-1).astype(jnp.float32)  # (N, 16*C), [k*C+c]

    # metanet input (N, 33): [r0_0, r1_0, ..., r0_15, r1_15, rel_cell]
    meta_inp = jnp.concatenate(
        [rel.transpose(1, 0, 2).reshape(N, 32), rel_cell], axis=-1).astype(jnp.float32)

    # packed imnet input (N, 16*Dp): block k = [feat_k, rgb_k, rel_k, rel_cell]
    xk = jnp.concatenate(
        [q_feat, q_rgb, rel, jnp.broadcast_to(rel_cell[None, :, :], (16, N, 1))],
        axis=-1)                                             # (16, N, Dp)
    x_packed = xk.transpose(1, 0, 2).reshape(N, 16 * Dp).astype(jnp.bfloat16)

    # ---- host-packed weights ----
    # block-diagonal first imnet layer: output layout [k*C + c]
    iw1_blk = jnp.kron(jnp.eye(16, dtype=jnp.float32),
                       params['iw1']).astype(jnp.bfloat16)   # (16*Dp, 16*C)
    ib1_rep = jnp.tile(params['ib1'], 16)[None, :]           # (1, 16*C)
    # metanet second layer permuted from [c*16+k] to [k*C+c]
    k_idx = jnp.arange(16)[:, None]
    c_idx = jnp.arange(C)[None, :]
    perm = (c_idx * 16 + k_idx).reshape(-1)
    mw2p = params['mw2'][:, perm]                            # (C, 16*C)
    mb2p = params['mb2'][perm][None, :]                      # (1, 16*C)
    # shared second imnet layer tiled 16x on rows, zero-padded to 128 lanes
    iw2_pad = jnp.zeros((C, 128), jnp.float32).at[:, :3].set(params['iw2'])
    iw2_rep = jnp.tile(iw2_pad, (16, 1))                     # (16*C, 128)
    ib2_pad = jnp.zeros((1, 128), jnp.float32).at[0, :3].set(params['ib2'])

    # pad queries up to a multiple of tq
    Np = pl.cdiv(N, tq) * tq
    if Np != N:
        pad = Np - N
        x_packed = jnp.pad(x_packed, ((0, pad), (0, 0)))
        meta_inp = jnp.pad(meta_inp, ((0, pad), (0, 0)))
        w_exp = jnp.pad(w_exp, ((0, pad), (0, 0)))

    out_full = pl.pallas_call(
        _lmi_query_kernel,
        out_shape=jax.ShapeDtypeStruct((Np, 128), jnp.float32),
        grid_spec=pltpu.PrefetchScalarGridSpec(
            num_scalar_prefetch=0,
            grid=(Np // tq,),
            in_specs=[
                pl.BlockSpec((tq, 16 * Dp), lambda i: (i, 0)),   # x_packed (bf16)
                pl.BlockSpec((tq, 33), lambda i: (i, 0)),        # meta_inp
                pl.BlockSpec((tq, 16 * C), lambda i: (i, 0)),    # w_exp
                pl.BlockSpec((16 * Dp, 16 * C), lambda i: (0, 0)),  # iw1 block-diag
                pl.BlockSpec((1, 16 * C), lambda i: (0, 0)),        # ib1 tiled
                pl.BlockSpec((33, C), lambda i: (0, 0)),            # mw1
                pl.BlockSpec((1, C), lambda i: (0, 0)),             # mb1
                pl.BlockSpec((C, 16 * C), lambda i: (0, 0)),        # mw2 permuted
                pl.BlockSpec((1, 16 * C), lambda i: (0, 0)),        # mb2 permuted
                pl.BlockSpec((16 * C, 128), lambda i: (0, 0)),      # iw2 tiled+padded
                pl.BlockSpec((1, 128), lambda i: (0, 0)),           # ib2 padded
            ],
            out_specs=pl.BlockSpec((tq, 128), lambda i: (i, 0)),
        ),
        compiler_params=pltpu.CompilerParams(
            dimension_semantics=("parallel",),
            vmem_limit_bytes=32 * 1024 * 1024),
    )(x_packed, meta_inp, w_exp,
      iw1_blk, ib1_rep,
      params['mw1'], params['mb1'][None, :],
      mw2p, mb2p,
      iw2_rep, ib2_pad)

    return out_full[:N, :3].reshape(B, Q, 3)


# ----------------------------------------------------------------------------
# Pure-JAX reference of the query_rgb math (uses unpermuted metanet weights)
# ----------------------------------------------------------------------------
def _lmi_reference(q_feat, q_rgb, q_coord, coord_f, cell_f, params, H, W):
    N = coord_f.shape[0]
    C = q_feat.shape[-1]
    scale = jnp.array([H, W], jnp.float32)
    rel = (coord_f[None, :, :] - q_coord) * scale            # (16, N, 2)
    area = jnp.abs(rel[..., 0] * rel[..., 1]) + 1e-9         # (16, N)
    rel_cell = cell_f[:, 0:1] * H                            # (N, 1)

    meta_inp = jnp.concatenate(
        [rel.transpose(1, 0, 2).reshape(N, 32), rel_cell], axis=-1)
    hid = jax.nn.relu(meta_inp @ params['mw1'] + params['mb1'])
    meta_out = hid @ params['mw2'] + params['mb2']           # (N, C*16), [c*16+k]
    mod = meta_out.reshape(N, C, 16).transpose(0, 2, 1)      # (N, 16, C)

    x = jnp.concatenate([
        q_feat.transpose(1, 0, 2),
        q_rgb.transpose(1, 0, 2),
        rel.transpose(1, 0, 2),
        jnp.broadcast_to(rel_cell[:, None, :], (N, 16, 1)),
    ], axis=-1)
    h = jax.nn.relu(jnp.einsum('nkc,cd->nkd', x, params['iw1']) + params['ib1'])
    h = h * mod
    pred = jnp.einsum('nkc,cd->nkd', h, params['iw2']) + params['ib2']

    tot = area.sum(0)
    wts = area[::-1] / tot[None, :]                          # local_ensemble swap
    return jnp.einsum('kn,nkd->nd', wts, pred)


# ----------------------------------------------------------------------------
if __name__ == "__main__":
    key = jax.random.PRNGKey(0)
    ks = jax.random.split(key, 16)

    B, Cin, Hin, Win = 2, 3, 16, 16
    C = 16            # encoder out_dim == imnet_in_dim
    Q = 1024          # number of query coordinates per image  (N = 2048, grid = 4)
    s = 0.05

    # TODO(synk): imnet_spec is an external model factory; synthesized here as a
    # metanet-modulated 2-layer MLP consistent with the call signature
    # imnet(inp, rel_coord, meta_mix, rel_cell) with num_patch=16, out_dim=3.
    params = {
        'wenc': jax.random.normal(ks[0], (C, Cin, 3, 3), jnp.float32) * s,
        'benc': jax.random.normal(ks[1], (C,), jnp.float32) * s,
        'mw1': jax.random.normal(ks[2], (33, C), jnp.float32) * s,
        'mb1': jax.random.normal(ks[3], (C,), jnp.float32) * s,
        'mw2': jax.random.normal(ks[4], (C, 16 * C), jnp.float32) * s,
        'mb2': jax.random.normal(ks[5], (16 * C,), jnp.float32) * s,
        'iw1': jax.random.normal(ks[6], (C + Cin + 3, C), jnp.float32) * s,
        'ib1': jax.random.normal(ks[7], (C,), jnp.float32) * s,
        'iw2': jax.random.normal(ks[8], (C, 3), jnp.float32) * s,
        'ib2': jax.random.normal(ks[9], (3,), jnp.float32) * s,
    }

    inp = jax.random.normal(ks[10], (B, Cin, Hin, Win), jnp.float32)
    coord = jax.random.uniform(ks[11], (B, Q, 2), jnp.float32, minval=-1.0, maxval=1.0)
    cell = jnp.full((B, Q, 2), 2.0 / 32.0, jnp.float32)

    fwd = jax.jit(functools.partial(lmi_forward, tq=512))
    out = jax.block_until_ready(fwd(inp, coord, cell, params))

    # correctness check against a pure-JAX reference of the same math
    feat = _encode(inp, params)
    q_feat, q_rgb, q_coord = _gather_inputs(inp, feat, coord)
    ref = _lmi_reference(q_feat, q_rgb, q_coord,
                         coord.reshape(-1, 2), cell.reshape(-1, 2),
                         params, feat.shape[2], feat.shape[3]).reshape(B, Q, 3)

    assert out.shape == (B, Q, 3)
    assert bool(jnp.all(jnp.isfinite(out)))
    assert bool(jnp.allclose(out, ref, rtol=2e-2, atol=2e-2)), \
        float(jnp.max(jnp.abs(out - ref)))
    print("KERNEL_OK")
</pallas_src>

<mosaic_0001>
module attributes {stable_mosaic.version = 11 : i64} {
  func.func @_lmi_query_kernel(%arg0: i32, %arg1: memref<512x352xbf16, #tpu.memory_space<vmem>>, %arg2: memref<512x33xf32, #tpu.memory_space<vmem>>, %arg3: memref<512x256xf32, #tpu.memory_space<vmem>>, %arg4: memref<352x256xbf16, #tpu.memory_space<vmem>>, %arg5: memref<1x256xf32, #tpu.memory_space<vmem>>, %arg6: memref<33x16xf32, #tpu.memory_space<vmem>>, %arg7: memref<1x16xf32, #tpu.memory_space<vmem>>, %arg8: memref<16x256xf32, #tpu.memory_space<vmem>>, %arg9: memref<1x256xf32, #tpu.memory_space<vmem>>, %arg10: memref<256x128xf32, #tpu.memory_space<vmem>>, %arg11: memref<1x128xf32, #tpu.memory_space<vmem>>, %arg12: memref<512x128xf32, #tpu.memory_space<vmem>>) attributes {dimension_semantics = [#tpu.dimension_semantics<parallel>], iteration_bounds = array<i64: 4>, scalar_prefetch = 0 : i64, scratch_operands = 0 : i64, tpu.core_type = #tpu.core_type<tc>, window_params = [{transform_indices = @transform_0, window_bounds = array<i64: 512, 352>}, {transform_indices = @transform_1, window_bounds = array<i64: 512, 33>}, {transform_indices = @transform_2, window_bounds = array<i64: 512, 256>}, {pipeline_mode = #tpu.pipeline_mode<synchronous>, transform_indices = @transform_3, window_bounds = array<i64: 352, 256>}, {pipeline_mode = #tpu.pipeline_mode<synchronous>, transform_indices = @transform_4, window_bounds = array<i64: 1, 256>}, {pipeline_mode = #tpu.pipeline_mode<synchronous>, transform_indices = @transform_5, window_bounds = array<i64: 33, 16>}, {pipeline_mode = #tpu.pipeline_mode<synchronous>, transform_indices = @transform_6, window_bounds = array<i64: 1, 16>}, {pipeline_mode = #tpu.pipeline_mode<synchronous>, transform_indices = @transform_7, window_bounds = array<i64: 16, 256>}, {pipeline_mode = #tpu.pipeline_mode<synchronous>, transform_indices = @transform_8, window_bounds = array<i64: 1, 256>}, {pipeline_mode = #tpu.pipeline_mode<synchronous>, transform_indices = @transform_9, window_bounds = array<i64: 256, 128>}, {pipeline_mode = #tpu.pipeline_mode<synchronous>, transform_indices = @transform_10, window_bounds = array<i64: 1, 128>}, {transform_indices = @transform_11, window_bounds = array<i64: 512, 128>}]} {
    %c0 = arith.constant 0 : index
    %c0_0 = arith.constant 0 : index
    %0 = vector.load %arg1[%c0, %c0_0] : memref<512x352xbf16, #tpu.memory_space<vmem>>, vector<512x352xbf16>
    %c0_1 = arith.constant 0 : index
    %c0_2 = arith.constant 0 : index
    %1 = vector.load %arg4[%c0_1, %c0_2] : memref<352x256xbf16, #tpu.memory_space<vmem>>, vector<352x256xbf16>
    %cst = arith.constant dense<0.000000e+00> : vector<512x256xf32>
    %2 = tpu.matmul %0, %1, %cst {dimension_numbers = #tpu.dot_dimension_numbers<[1], [0], [0], [1], [0, 0, 1, 1], [], []>} : vector<512x352xbf16>, vector<352x256xbf16>, vector<512x256xf32> -> vector<512x256xf32>
    %c0_3 = arith.constant 0 : index
    %c0_4 = arith.constant 0 : index
    %3 = vector.load %arg5[%c0_3, %c0_4] : memref<1x256xf32, #tpu.memory_space<vmem>>, vector<1x256xf32>
    %4 = vector.broadcast %3 : vector<1x256xf32> to vector<512x256xf32>
    %5 = arith.addf %2, %4 : vector<512x256xf32>
    %cst_5 = arith.constant 0.000000e+00 : f32
    %6 = vector.broadcast %cst_5 : f32 to vector<512x256xf32>
    %7 = arith.maximumf %5, %6 : vector<512x256xf32>
    %c0_6 = arith.constant 0 : index
    %c0_7 = arith.constant 0 : index
    %8 = vector.load %arg2[%c0_6, %c0_7] : memref<512x33xf32, #tpu.memory_space<vmem>>, vector<512x33xf32>
    %c0_8 = arith.constant 0 : index
    %c0_9 = arith.constant 0 : index
    %9 = vector.load %arg6[%c0_8, %c0_9] : memref<33x16xf32, #tpu.memory_space<vmem>>, vector<33x16xf32>
    %cst_10 = arith.constant dense<0.000000e+00> : vector<512x16xf32>
    %10 = tpu.matmul %8, %9, %cst_10 {dimension_numbers = #tpu.dot_dimension_numbers<[1], [0], [0], [1], [0, 0, 1, 1], [], []>} : vector<512x33xf32>, vector<33x16xf32>, vector<512x16xf32> -> vector<512x16xf32>
    %c0_11 = arith.constant 0 : index
    %c0_12 = arith.constant 0 : index
    %11 = vector.load %arg7[%c0_11, %c0_12] : memref<1x16xf32, #tpu.memory_space<vmem>>, vector<1x16xf32>
    %12 = vector.broadcast %11 : vector<1x16xf32> to vector<512x16xf32>
    %13 = arith.addf %10, %12 : vector<512x16xf32>
    %cst_13 = arith.constant 0.000000e+00 : f32
    %14 = vector.broadcast %cst_13 : f32 to vector<512x16xf32>
    %15 = arith.maximumf %13, %14 : vector<512x16xf32>
    %c0_14 = arith.constant 0 : index
    %c0_15 = arith.constant 0 : index
    %16 = vector.load %arg8[%c0_14, %c0_15] : memref<16x256xf32, #tpu.memory_space<vmem>>, vector<16x256xf32>
    %cst_16 = arith.constant dense<0.000000e+00> : vector<512x256xf32>
    %17 = tpu.matmul %15, %16, %cst_16 {dimension_numbers = #tpu.dot_dimension_numbers<[1], [0], [0], [1], [0, 0, 1, 1], [], []>} : vector<512x16xf32>, vector<16x256xf32>, vector<512x256xf32> -> vector<512x256xf32>
    %c0_17 = arith.constant 0 : index
    %c0_18 = arith.constant 0 : index
    %18 = vector.load %arg9[%c0_17, %c0_18] : memref<1x256xf32, #tpu.memory_space<vmem>>, vector<1x256xf32>
    %19 = vector.broadcast %18 : vector<1x256xf32> to vector<512x256xf32>
    %20 = arith.addf %17, %19 : vector<512x256xf32>
    %21 = arith.mulf %7, %20 : vector<512x256xf32>
    %c0_19 = arith.constant 0 : index
    %c0_20 = arith.constant 0 : index
    %22 = vector.load %arg3[%c0_19, %c0_20] : memref<512x256xf32, #tpu.memory_space<vmem>>, vector<512x256xf32>
    %23 = arith.mulf %21, %22 : vector<512x256xf32>
    %c0_21 = arith.constant 0 : index
    %c0_22 = arith.constant 0 : index
    %24 = vector.load %arg10[%c0_21, %c0_22] : memref<256x128xf32, #tpu.memory_space<vmem>>, vector<256x128xf32>
    %cst_23 = arith.constant dense<0.000000e+00> : vector<512x128xf32>
    %25 = tpu.matmul %23, %24, %cst_23 {dimension_numbers = #tpu.dot_dimension_numbers<[1], [0], [0], [1], [0, 0, 1, 1], [], []>} : vector<512x256xf32>, vector<256x128xf32>, vector<512x128xf32> -> vector<512x128xf32>
    %c0_24 = arith.constant 0 : index
    %c0_25 = arith.constant 0 : index
    %26 = vector.load %arg11[%c0_24, %c0_25] : memref<1x128xf32, #tpu.memory_space<vmem>>, vector<1x128xf32>
    %27 = vector.broadcast %26 : vector<1x128xf32> to vector<512x128xf32>
    %28 = arith.addf %25, %27 : vector<512x128xf32>
    %c0_26 = arith.constant 0 : index
    %c0_27 = arith.constant 0 : index
    %29 = vector.load %arg12[%c0_26, %c0_27] : memref<512x128xf32, #tpu.memory_space<vmem>>, vector<512x128xf32>
    tpu.vector_store %arg12[%c0_26, %c0_27], %28 {strides = array<i32>} : memref<512x128xf32, #tpu.memory_space<vmem>>, vector<512x128xf32>,
    return
  }
  func.func @transform_0(%arg0: i32) -> (i32, i32) {
    %c0_i32 = arith.constant 0 : i32
    %c0_i32_0 = arith.constant 0 : i32
    return %arg0, %c0_i32 : i32, i32
  }
  func.func @transform_1(%arg0: i32) -> (i32, i32) {
    %c0_i32 = arith.constant 0 : i32
    %c0_i32_0 = arith.constant 0 : i32
    return %arg0, %c0_i32 : i32, i32
  }
  func.func @transform_2(%arg0: i32) -> (i32, i32) {
    %c0_i32 = arith.constant 0 : i32
    %c0_i32_0 = arith.constant 0 : i32
    return %arg0, %c0_i32 : i32, i32
  }
  func.func @transform_3(%arg0: i32) -> (i32, i32) {
    %c0_i32 = arith.constant 0 : i32
    %c0_i32_0 = arith.constant 0 : i32
    %c0_i32_1 = arith.constant 0 : i32
    return %c0_i32, %c0_i32_0 : i32, i32
  }
  func.func @transform_4(%arg0: i32) -> (i32, i32) {
    %c0_i32 = arith.constant 0 : i32
    %c0_i32_0 = arith.constant 0 : i32
    %c0_i32_1 = arith.constant 0 : i32
    return %c0_i32, %c0_i32_0 : i32, i32
  }
  func.func @transform_5(%arg0: i32) -> (i32, i32) {
    %c0_i32 = arith.constant 0 : i32
    %c0_i32_0 = arith.constant 0 : i32
    %c0_i32_1 = arith.constant 0 : i32
    return %c0_i32, %c0_i32_0 : i32, i32
  }
  func.func @transform_6(%arg0: i32) -> (i32, i32) {
    %c0_i32 = arith.constant 0 : i32
    %c0_i32_0 = arith.constant 0 : i32
    %c0_i32_1 = arith.constant 0 : i32
    return %c0_i32, %c0_i32_0 : i32, i32
  }
  func.func @transform_7(%arg0: i32) -> (i32, i32) {
    %c0_i32 = arith.constant 0 : i32
    %c0_i32_0 = arith.constant 0 : i32
    %c0_i32_1 = arith.constant 0 : i32
    return %c0_i32, %c0_i32_0 : i32, i32
  }
  func.func @transform_8(%arg0: i32) -> (i32, i32) {
    %c0_i32 = arith.constant 0 : i32
    %c0_i32_0 = arith.constant 0 : i32
    %c0_i32_1 = arith.constant 0 : i32
    return %c0_i32, %c0_i32_0 : i32, i32
  }
  func.func @transform_9(%arg0: i32) -> (i32, i32) {
    %c0_i32 = arith.constant 0 : i32
    %c0_i32_0 = arith.constant 0 : i32
    %c0_i32_1 = arith.constant 0 : i32
    return %c0_i32, %c0_i32_0 : i32, i32
  }
  func.func @transform_10(%arg0: i32) -> (i32, i32) {
    %c0_i32 = arith.constant 0 : i32
    %c0_i32_0 = arith.constant 0 : i32
    %c0_i32_1 = arith.constant 0 : i32
    return %c0_i32, %c0_i32_0 : i32, i32
  }
  func.func @transform_11(%arg0: i32) -> (i32, i32) {
    %c0_i32 = arith.constant 0 : i32
    %c0_i32_0 = arith.constant 0 : i32
    return %arg0, %c0_i32 : i32, i32
  }
}

</mosaic_0001>

<bundles_post_ra>
// kernel: reverse
= control target key start
LH: loop header
LB: loop body
LE: loop exit
PB: predicated region body
PF: predicated region fallthrough
CT: control target
= control target key end

     0   :  { %s280_s6 = smov 0   ;;  %s282_s7 = smov 0   ;;  %s317_s0 = inlined_call_operand.vmem [shape: f32[16,2048], index: 0, kind: input, shape index: {}]   ;;  %s318_s1 = inlined_call_operand.vmem [shape: f32[16,2048], index: 1, kind: output, shape index: {}]  }
   0x1   :  { %s284_s8 = smov 0  }
   0x2 LB: > { %s207_s9 = sadd.s32 4294967295, %s268_s8   ;;  %s16_s10 = sadd.s32 1, %s264_s7  ;;  %s268_s8 = sphi %s284_s8, %s7_s8   ;;  %s264_s7 = sphi %s282_s7, %s320_s7   ;;  %s260_s6 = sphi %s280_s6, %s319_s6  }
   0x3   : > { %p17_p0 = scmp.ge.s32.totalorder %s16_s10, 16  ;;  %p209_p1 = scmp.ge.s32.totalorder %s268_s8, 16 }
   0x4   : > { %s35_s11 = sand.u32 (!%p209_p1), 1, %s268_s8   ;;  %s211_s12 = sshll.u32 (!%p209_p1), %s264_s7, 3 }
   0x5   : > { %s322_s10 = smov (%p17_p0, %s16_s10), 0  ;;  %33 = sbr.rel (%p209_p1) target bundleno = 12 (0xc), region = 16 }
   0x6   : > { %s210_s13 = sshll.u32 (!%p209_p1), %s35_s11, 4  ;;  %s43_s16 = scalar_lea.vmem (!%p209_p1), %s317_s0, %s211_s12 }
   0x7   : > { %v73_v0 = vld [vmem:[%s43_s16] sm:$0xff] (!%p209_p1)  ;;  %s37_s17 = scalar_lea.vmem (!%p209_p1), [#allocation0], %s210_s13 }
   0x8   : > { %v75_v1 = vld [vmem:[%s43_s16 + $0x80] sm:$0xff] (!%p209_p1)  ;;  %74 = vst [vmem:[%s37_s17] sm:$0xff] (!%p209_p1), %v73_v0 }
   0x9   : > { %76 = vst [vmem:[%s37_s17 + $0x8] sm:$0xff] (!%p209_p1), %v75_v1 }
   0xc PF: > { %p212_p2 = scmp.ge.s32.totalorder %s268_s8, 1  ;;  %p81_p3 = scmp.lt.s32.totalorder %s268_s8, 17 }
   0xe   : > { %p82_p4 = pnand %p212_p2, %p81_p3 }
   0xf   : > { %s88_s18 = sand.u32 (!%p82_p4), 1, %s207_s9   ;;  %s219_s19 = sshll.u32 (!%p82_p4), %s260_s6, 3 }
  0x10   : > { %85 = sbr.rel (%p82_p4) target bundleno = 23 (0x17), region = 54  ;;  %s213_s20 = sshll.u32 (!%p82_p4), %s88_s18, 4 }
  0x11   : > { %s118_s23 = scalar_lea.vmem (!%p82_p4), %s318_s1, %s219_s19  ;;  %s90_s24 = scalar_lea.vmem (!%p82_p4), [#allocation0], %s213_s20 }
  0x12   : > { %v215_v2 = vld [vmem:[%s90_s24 + $0xf] ss:$-1 sm:$0xff] (!%p82_p4)  ;;  %v216_v3 = vld [vmem:[%s90_s24 + $0x7] ss:$-1 sm:$0xff] (!%p82_p4) }
  0x13   : > { %149 = vst [vmem:[%s118_s23] sm:$0xff] (!%p82_p4), %v215_v2  ;;  %151 = vst [vmem:[%s118_s23 + $0x80] sm:$0xff] (!%p82_p4), %v216_v3 }
  0x17 PF: > { %s7_s8 = sadd.s32 1, %s268_s8   ;;  %s319_s6 = smov %s264_s7 }
  0x18   : > { %p4_p5 = scmp.ge.s32.totalorder %s7_s8, 18   ;;  %s320_s7 = smov %s322_s10 }
  0x1a   :  { %6 = sbr.rel (!%p4_p5) target bundleno = 2 (0x2), region = 122 }

// kernel: tile.13
= control target key start
LH: loop header
LB: loop body
LE: loop exit
PB: predicated region body
PF: predicated region fallthrough
CT: control target
= control target key end

     0   :  { %s28_s0 = inlined_call_operand.vmem [shape: f32[16], index: 0, kind: input, shape index: {}]   ;;  %s29_s1 = inlined_call_operand.vmem [shape: f32[16,16], index: 1, kind: output, shape index: {}]  }
   0x1   :  { %v4_v0 = vld [vmem:[%s28_s0] ss:$0 sm:$0xff] }
   0x2   :  { %5 = vst [vmem:[%s29_s1] sm:$0xff] %v4_v0  ;;  %8 = vst [vmem:[%s29_s1 + $0x8] sm:$0xff] %v4_v0 }

// kernel: tile.14
= control target key start
LH: loop header
LB: loop body
LE: loop exit
PB: predicated region body
PF: predicated region fallthrough
CT: control target
= control target key end

     0   :  { %s7_s6 = smov 3  ;;  %s21_s9 = smov 3  ;;  %vm4_vm0 = vcmask 130048   ;;  %vm11_vm1 = vcmask 1048448   ;;  %vm18_vm2 = vcmask 917248   ;;  %vm25_vm3 = vcmask 786048   ;;  %s128_s0 = inlined_call_operand.vmem [shape: f32[16,16], index: 0, kind: input, shape index: {}]   ;;  %s129_s1 = inlined_call_operand.vmem [shape: f32[1,256], index: 1, kind: output, shape index: {}]  }
   0x1   :  { %v66_v0 = vld [vmem:[%s128_s0 + $0x7] ss:$8 sm:%s7_s6]   ;;  %s81_s10 = smov 112   ;;  %v68_v1 = vld [vmem:[%s128_s0 + $0x5] ss:$8 sm:%s21_s9]   ;;  %s14_s13 = smov 3 }
   0x2   :  { %9 = vrot.lane.b32.xlu0 %v66_v0, %s81_s10  ;;  %s82_s14 = smov 80   ;;  %v67_v2 = vld [vmem:[%s128_s0 + $0x6] ss:$8 sm:%s14_s13]   ;;  %s28_s17 = smov 3  ;;  %vm32_vm4 = vcmask 654848   ;;  %vm39_vm5 = vcmask 523648  }
   0x3   :  { %23 = vrot.lane.b32.xlu1 %v68_v1, %s82_s14  ;;  %v69_v3 = vld [vmem:[%s128_s0 + $0x4] ss:$8 sm:%s28_s17]   ;;  %s35_s20 = smov 3  ;;  %s42_s21 = smov 3  ;;  %vm46_vm6 = vcmask 392448   ;;  %vm53_vm7 = vcmask 261248  }
   0x4   :  { %s83_s22 = smov 96   ;;  %s84_s23 = smov 64   ;;  %v70_v4 = vld [vmem:[%s128_s0 + $0x3] ss:$8 sm:%s35_s20]   ;;  %v71_v5 = vld [vmem:[%s128_s0 + $0x2] ss:$8 sm:%s42_s21]  }
   0x5   :  { %s2_s26 = smov 3  ;;  %s49_s29 = smov 3 }
   0x6   :  { %16 = vrot.lane.b32.xlu0 %v67_v2, %s83_s22  ;;  %v3_v6 = vld [vmem:[%s128_s0] ss:$8 sm:%s2_s26]   ;;  %s85_s3 = smov 48   ;;  %s86_s4 = smov 32  }
   0x7   :  { %30 = vrot.lane.b32.xlu1 %v69_v3, %s84_s23  ;;  %5 = vst.msk [vmem:[#allocation0] ss:$8 sm:$0x3] %vm4_vm0, %v3_v6   ;;  %v72_v7 = vld [vmem:[%s128_s0 + $0x1] ss:$8 sm:%s49_s29]   ;;  %s87_s0 = smov 16  }
   0xa   :  { %37 = vrot.lane.b32.xlu0 %v70_v4, %s85_s3 }
   0xb   :  { %44 = vrot.lane.b32.xlu1 %v71_v5, %s86_s4 }
   0xe   :  { %51 = vrot.lane.b32.xlu0 %v72_v7, %s87_s0 }
  0x74   :  { %v10_v8 = vpop.permute.xlu0 %9  }
  0x75   :  { %12 = vst.msk [vmem:[#allocation0] ss:$8 sm:$0x3] %vm11_vm1, %v10_v8   ;;  %v24_v9 = vpop.permute.xlu1 %23  }
  0x78   :  { %v17_v10 = vpop.permute.xlu0 %16  }
  0x79   :  { %19 = vst.msk [vmem:[#allocation0] ss:$8 sm:$0x3] %vm18_vm2, %v17_v10   ;;  %v31_v11 = vpop.permute.xlu1 %30  }
  0x7a   :  { %26 = vst.msk [vmem:[#allocation0] ss:$8 sm:$0x3] %vm25_vm3, %v24_v9  }
  0x7b   :  { %33 = vst.msk [vmem:[#allocation0] ss:$8 sm:$0x3] %vm32_vm4, %v31_v11  }
  0x7c   :  { %v38_v12 = vpop.permute.xlu0 %37  }
  0x7d   :  { %40 = vst.msk [vmem:[#allocation0] ss:$8 sm:$0x3] %vm39_vm5, %v38_v12   ;;  %v45_v13 = vpop.permute.xlu1 %44  }
  0x7e   :  { %47 = vst.msk [vmem:[#allocation0] ss:$8 sm:$0x3] %vm46_vm6, %v45_v13  }
  0x80   :  { %v52_v14 = vpop.permute.xlu0 %51  }
  0x81   :  { %54 = vst.msk [vmem:[#allocation0] ss:$8 sm:$0x3] %vm53_vm7, %v52_v14  }
  0x88   :  { %v58_v15 = vld [vmem:[#allocation0] sm:$0x1]  ;;  %v62_v16 = vld [vmem:[#allocation0 + $0x8] sm:$0x1] }
  0x89   :  { %60 = vst [vmem:[%s129_s1] sm:$0x1] %v58_v15  ;;  %73 = vst [vmem:[%s129_s1 + $0x1] sm:$0x1] %v62_v16 }

// kernel: lmi_forward.1
= control target key start
LH: loop header
LB: loop body
LE: loop exit
PB: predicated region body
PF: predicated region fallthrough
CT: control target
= control target key end

     0   :  { %s5682_s17 = smov 0   ;;  %s7933_s0 = inlined_call_operand.vmem [shape: bf16[2048,352], index: 0, kind: input, shape index: {}]   ;;  %s7934_s1 = inlined_call_operand.vmem [shape: f32[2048,33], index: 1, kind: input, shape index: {}]   ;;  %s7935_s2 = inlined_call_operand.vmem [shape: f32[2048,256], index: 2, kind: input, shape index: {}]   ;;  %s7936_s3 = inlined_call_operand.vmem [shape: bf16[352,256], index: 3, kind: input, shape index: {}]   ;;  %s7937_s4 = inlined_call_operand.vmem [shape: f32[1,256], index: 4, kind: input, shape index: {}]   ;;  %s7938_s5 = inlined_call_operand.vmem [shape: f32[33,16], index: 5, kind: input, shape index: {}]   ;;  %s7939_s6 = inlined_call_operand.vmem [shape: f32[1,16], index: 6, kind: input, shape index: {}]   ;;  %s7940_s7 = inlined_call_operand.vmem [shape: f32[16,256], index: 7, kind: input, shape index: {}]   ;;  %s7941_s8 = inlined_call_operand.vmem [shape: f32[1,256], index: 8, kind: input, shape index: {}]   ;;  %s7942_s9 = inlined_call_operand.vmem [shape: f32[256,128], index: 9, kind: input, shape index: {}]   ;;  %s7943_s10 = inlined_call_operand.vmem [shape: f32[1,128], index: 10, kind: input, shape index: {}]   ;;  %s7944_s11 = inlined_call_operand.vmem [shape: f32[2048,128], index: 11, kind: output, shape index: {}]  }
   0x1 LB: > { %s4588_s18 = sadd.s32 4294967295, %s5617_s17   ;;  %p4592_p0 = scmp.ge.s32.totalorder %s5617_s17, 1  ;;  %s5617_s17 = sphi %s5682_s17, %s21_s17  }
   0x2   : > { %p362_p1 = scmp.lt.s32.totalorder %s5617_s17, 5 }
   0x4   : > { %p363_p2 = pnand %p4592_p0, %p362_p1 }
   0x6   : > { %366 = sbr.rel (%p363_p2) target bundleno = 1530 (0x5fa), region = 64 }
   0xd   : > { %v5417_v0 = vld [vmem:[%s7936_s3 + $0x4] ss:$8 sps:$4 sm:$0xff]   ;;  %v5419_v1 = vld [vmem:[%s7936_s3] ss:$8 sps:$4 sm:$0xff]   ;;  %v5420_v2 = vld [vmem:[%s7936_s3 + $0x14] ss:$8 sps:$4 sm:$0xff]  }
   0xe   : > { %1422 = vmatprep.subr.bf16.mxu0 %v5417_v0  ;;  %v5422_v3 = vld [vmem:[%s7936_s3 + $0x10] ss:$8 sps:$4 sm:$0xff]   ;;  %v5423_v4 = vld [vmem:[%s7936_s3 + $0x24] ss:$8 sps:$4 sm:$0xff]   ;;  %s4593_s29 = sshll.u32 %s4588_s18, 6  ;;  %vm1325_vm0 = vcmask 785408  }
   0xf   : > { %1423 = vmatpush1.bf16.msra.mxu0 %v5419_v1  ;;  %v5425_v5 = vld [vmem:[%s7936_s3 + $0x20] ss:$8 sps:$4 sm:$0xff]   ;;  %p415_p3 = scmp.lt.s32.totalorder %s4593_s29, 255  ;;  %v5426_v6 = vld [vmem:[%s7936_s3 + $0x34] ss:$8 sps:$4 sm:$0xff]   ;;  %vm2525_vm1 = vcmask 1040384  }
  0x10   : > { %1424 = vmatprep.subr.bf16.mxu0 %v5420_v2  ;;  %v5428_v7 = vld [vmem:[%s7936_s3 + $0x30] ss:$8 sps:$4 sm:$0xff]   ;;  %v5429_v8 = vld [vmem:[%s7936_s3 + $0x44] ss:$8 sps:$4 sm:$0xff]   ;;  %v5431_v9 = vld [vmem:[%s7936_s3 + $0x40] ss:$8 sps:$4 sm:$0xff]  }
  0x11   : > { %s8186_s29 = smov (!%p415_p3, %s4593_s29), 255  ;;  %v5432_v10 = vld [vmem:[%s7936_s3 + $0x54] ss:$8 sps:$4 sm:$0xff]   ;;  %v5434_v11 = vld [vmem:[%s7936_s3 + $0x50] ss:$8 sps:$4 sm:$0xff]   ;;  %vm2332_vm2 = vcmask 269312  }
  0x12   : > { %s5405_s22 = smul.u32 12, %s8186_s29  ;;  %v5435_v12 = vld [vmem:[%s7936_s3 + $0x64] ss:$8 sps:$4 sm:$0xff]   ;;  %v5437_v14 = vld [vmem:[%s7936_s3 + $0x60] ss:$8 sps:$4 sm:$0xff]   ;;  %s4596_s23 = sshll.u32 %s8186_s29, 3 }
  0x13   : > { %1425 = vmatpush1.bf16.msra.mxu0 %v5422_v3  ;;  %v5438_v15 = vld [vmem:[%s7936_s3 + $0x74] ss:$8 sps:$4 sm:$0xff]   ;;  %v5440_v16 = vld [vmem:[%s7936_s3 + $0x70] ss:$8 sps:$4 sm:$0xff]   ;;  %v5441_v17 = vld [vmem:[%s7936_s3 + $0x84] ss:$8 sps:$4 sm:$0xff]   ;;  %s5998_s26 = scalar_lea.vmem %s7934_s1, %s4596_s23  ;;  %s7762_s15 = scalar_lea.vmem %s7944_s11, %s4596_s23 }
  0x14   : > { %1426 = vmatprep.subr.bf16.mxu0 %v5423_v4  ;;  %s5732_s30 = scalar_lea.vmem %s7933_s0, %s5405_s22  ;;  %v5443_v18 = vld [vmem:[%s7936_s3 + $0x80] ss:$8 sps:$4 sm:$0xff]   ;;  %v5444_v19 = vld [vmem:[%s7936_s3 + $0x94] ss:$8 sps:$4 sm:$0xff]   ;;  %v5446_v20 = vld [vmem:[%s7936_s3 + $0x90] ss:$8 sps:$4 sm:$0xff]  }
  0x15   : > { %v5467_v13 = vld [vmem:[%s5732_s30 + $0x4] ss:$12 sps:$4 sm:$0xff]   ;;  %v5449_v22 = vld [vmem:[%s7936_s3 + $0xa0] ss:$8 sps:$4 sm:$0xff]   ;;  %v5450_v23 = vld [vmem:[%s7936_s3 + $0xb4] ss:$8 sps:$4 sm:$0xff]  }
  0x16   : > { %1454 = vmatprep.mubr.bf16.mxu0 %v5467_v13  ;;  %v5447_v21 = vld [vmem:[%s7936_s3 + $0xa4] ss:$8 sps:$4 sm:$0xff]   ;;  %v5452_v24 = vld [vmem:[%s7936_s3 + $0xb0] ss:$8 sps:$4 sm:$0xff]   ;;  %v5455_v26 = vld [vmem:[%s7936_s3 + $0xc0] ss:$8 sps:$4 sm:$0xff]  }
  0x17   : > { %1427 = vmatpush1.bf16.msra.mxu0 %v5425_v5  ;;  %v5453_v25 = vld [vmem:[%s7936_s3 + $0xc4] ss:$8 sps:$4 sm:$0xff]   ;;  %v5456_v27 = vld [vmem:[%s7936_s3 + $0xd4] ss:$8 sps:$4 sm:$0xff]   ;;  %v5458_v28 = vld [vmem:[%s7936_s3 + $0xd0] ss:$8 sps:$4 sm:$0xff]  }
  0x18   : > { %1428 = vmatprep.subr.bf16.mxu0 %v5426_v6  ;;  %v5459_v29 = vld [vmem:[%s7936_s3 + $0xe4] ss:$8 sps:$4 sm:$0xff]   ;;  %v5461_v30 = vld [vmem:[%s7936_s3 + $0xe0] ss:$8 sps:$4 sm:$0xff]   ;;  %v5462_v31 = vld [vmem:[%s7936_s3 + $0xf4] ss:$8 sps:$4 sm:$0xff]  }
  0x19   : > { %v5464_v32 = vld [vmem:[%s7936_s3 + $0xf0] ss:$8 sps:$4 sm:$0xff]   ;;  %v5470_v33 = vld [vmem:[%s7936_s3 + $0x104] ss:$8 sps:$4 sm:$0xff]   ;;  %v5468_v35 = vld [vmem:[%s7936_s3 + $0x100] ss:$8 sps:$4 sm:$0xff]  }
  0x1a   : > { %v5465_v34 = vld [vmem:[%s5732_s30] ss:$12 sps:$4 sm:$0xff]   ;;  %v5471_v36 = vld [vmem:[%s5732_s30 + $0x1c] ss:$12 sps:$4 sm:$0xff]   ;;  %v5486_v38 = vld [vmem:[%s7936_s3 + $0x110] ss:$8 sps:$4 sm:$0xff]  }
  0x1b   : > { %1429 = vmatpush1.bf16.msra.mxu0 %v5428_v7  ;;  %v5488_v37 = vld [vmem:[%s7936_s3 + $0x114] ss:$8 sps:$4 sm:$0xff]   ;;  %v5506_v39 = vld [vmem:[%s7936_s3 + $0x124] ss:$8 sps:$4 sm:$0xff]   ;;  %v5504_v42 = vld [vmem:[%s7936_s3 + $0x120] ss:$8 sps:$4 sm:$0xff]  }
  0x1c   : > { %1430 = vmatprep.subr.bf16.mxu0 %v5429_v8  ;;  %v5473_v40 = vld [vmem:[%s5732_s30 + $0x18] ss:$12 sps:$4 sm:$0xff]   ;;  %v5474_v41 = vld [vmem:[%s5732_s30 + $0x34] ss:$12 sps:$4 sm:$0xff]   ;;  %v5476_v45 = vld [vmem:[%s5732_s30 + $0x30] ss:$12 sps:$4 sm:$0xff]  }
  0x1d   : > { %v5527_v43 = vld [vmem:[%s7936_s3 + $0x134] ss:$8 sps:$4 sm:$0xff]   ;;  %v5525_v44 = vld [vmem:[%s7936_s3 + $0x130] ss:$8 sps:$4 sm:$0xff]   ;;  %v5482_v49 = vld [vmem:[%s5732_s30 + $0x60] ss:$12 sps:$4 sm:$0xff]  }
  0x1e   : > { %v5477_v46 = vld [vmem:[%s5732_s30 + $0x4c] ss:$12 sps:$4 sm:$0xff]   ;;  %v5479_v47 = vld [vmem:[%s5732_s30 + $0x48] ss:$12 sps:$4 sm:$0xff]   ;;  %v5480_v48 = vld [vmem:[%s5732_s30 + $0x64] ss:$12 sps:$4 sm:$0xff]  }
  0x1f   : > { %1431 = vmatpush1.bf16.msra.mxu0 %v5431_v9  ;;  %v5483_v50 = vld [vmem:[%s5732_s30 + $0x7c] ss:$12 sps:$4 sm:$0xff]   ;;  %v5485_v51 = vld [vmem:[%s5732_s30 + $0x78] ss:$12 sps:$4 sm:$0xff]   ;;  %v5489_v52 = vld [vmem:[%s5732_s30 + $0x94] ss:$12 sps:$4 sm:$0xff]  }
  0x20   : > { %1432 = vmatprep.subr.bf16.mxu0 %v5432_v10  ;;  %v5543_v53 = vld [vmem:[%s7936_s3 + $0x140] ss:$8 sps:$4 sm:$0xff]   ;;  %v5545_v54 = vld [vmem:[%s7936_s3 + $0x144] ss:$8 sps:$4 sm:$0xff]   ;;  %v5491_v55 = vld [vmem:[%s5732_s30 + $0x90] ss:$12 sps:$4 sm:$0xff]  }
  0x21   : > { %v5492_v56 = vld [vmem:[%s5732_s30 + $0xac] ss:$12 sps:$4 sm:$0xff]   ;;  %v5494_v57 = vld [vmem:[%s5732_s30 + $0xa8] ss:$12 sps:$4 sm:$0xff]   ;;  %v5495_v58 = vld [vmem:[%s5732_s30 + $0xc4] ss:$12 sps:$4 sm:$0xff]  }
  0x22   : > { %v5497_v59 = vld [vmem:[%s5732_s30 + $0xc0] ss:$12 sps:$4 sm:$0xff]   ;;  %v5498_v60 = vld [vmem:[%s5732_s30 + $0xdc] ss:$12 sps:$4 sm:$0xff]   ;;  %v5500_v61 = vld [vmem:[%s5732_s30 + $0xd8] ss:$12 sps:$4 sm:$0xff]  }
  0x23   : > { %1433 = vmatpush1.bf16.msra.mxu0 %v5434_v11  ;;  %v5501_v62 = vld [vmem:[%s5732_s30 + $0xf4] ss:$12 sps:$4 sm:$0xff]   ;;  %v5503_v63 = vld [vmem:[%s5732_s30 + $0xf0] ss:$12 sps:$4 sm:$0xff]   ;;  %v5507_v0 = vld [vmem:[%s5732_s30 + $0x10c] ss:$12 sps:$4 sm:$0xff]  }
  0x24   : > { %1434 = vmatprep.subr.bf16.mxu0 %v5435_v12  ;;  %v5561_v1 = vld [vmem:[%s7936_s3 + $0x150] ss:$8 sps:$4 sm:$0xff]   ;;  %v5563_v2 = vld [vmem:[%s7936_s3 + $0x154] ss:$8 sps:$4 sm:$0xff]   ;;  %v5512_v5 = vld [vmem:[%s5732_s30 + $0x120] ss:$12 sps:$4 sm:$0xff]  }
  0x25   : > { %v5509_v3 = vld [vmem:[%s5732_s30 + $0x108] ss:$12 sps:$4 sm:$0xff]   ;;  %v5510_v4 = vld [vmem:[%s5732_s30 + $0x124] ss:$12 sps:$4 sm:$0xff]   ;;  %v5519_v10 = vld [vmem:[%s5732_s30 + $0x16c] ss:$12 sps:$4 sm:$0xff]  }
  0x26   : > { %v5513_v6 = vld [vmem:[%s5732_s30 + $0x13c] ss:$12 sps:$4 sm:$0xff]   ;;  %v5515_v7 = vld [vmem:[%s5732_s30 + $0x138] ss:$12 sps:$4 sm:$0xff]   ;;  %v5516_v8 = vld [vmem:[%s5732_s30 + $0x154] ss:$12 sps:$4 sm:$0xff]  }
  0x27   : > { %1435 = vmatpush1.bf16.msra.mxu0 %v5437_v14  ;;  %v5518_v9 = vld [vmem:[%s5732_s30 + $0x150] ss:$12 sps:$4 sm:$0xff]   ;;  %v5521_v11 = vld [vmem:[%s5732_s30 + $0x168] ss:$12 sps:$4 sm:$0xff]   ;;  %v5524_v13 = vld [vmem:[%s5732_s30 + $0x180] ss:$12 sps:$4 sm:$0xff]  }
  0x28   : > { %1436 = vmatprep.subr.bf16.mxu0 %v5438_v15  ;;  %v5522_v12 = vld [vmem:[%s5732_s30 + $0x184] ss:$12 sps:$4 sm:$0xff]   ;;  %v5528_v14 = vld [vmem:[%s5732_s30 + $0x19c] ss:$12 sps:$4 sm:$0xff]   ;;  %vm2994_vm3 = vcmask 130048   ;;  %s4907_s25 = sshll.u32 %s8186_s29, 4 }
  0x29   : > { %v2320_v15 = vld [vmem:[%s7938_s5] sm:$0xff]  ;;  %s6975_s27 = scalar_lea.vmem %s7935_s2, %s4907_s25 }
  0x2b   : > { %1437 = vmatpush1.bf16.msra.mxu0 %v5440_v16  ;;  %v2321_v16 = vld [vmem:[%s7938_s5 + $0x8] sm:$0xff] }
  0x2c   : > { %1438 = vmatprep.subr.bf16.mxu0 %v5441_v17  ;;  %v5871_v17 = vpack.c.bf16 %v2321_v16, %v2320_v15  ;;  %v2275_v15 = vld [vmem:[%s5998_s26 + $0x98] sm:$0xff] }
  0x2d   : > { %v5605_v16 = vld [vmem:[%s5732_s30 + $0x278] ss:$12 sps:$4 sm:$0xff]  }
  0x2e   : > { %5143 = vmatprep.subr.bf16.mxu1 %v5871_v17 }
  0x2f   : > { %1439 = vmatpush1.bf16.msra.mxu0 %v5443_v18  ;;  %v5530_v18 = vld [vmem:[%s5732_s30 + $0x198] ss:$12 sps:$4 sm:$0xff]   ;;  %5146 = vmatpush3.bf16.msra.mxu1 %v5871_v17 }
  0x30   : > { %1440 = vmatprep.subr.bf16.mxu0 %v5444_v19  ;;  %v5531_v19 = vld [vmem:[%s5732_s30 + $0x1b4] ss:$12 sps:$4 sm:$0xff]  }
  0x33   : > { %1441 = vmatpush1.bf16.msra.mxu0 %v5446_v20  ;;  %v5533_v20 = vld [vmem:[%s5732_s30 + $0x1b0] ss:$12 sps:$4 sm:$0xff]  }
  0x34   : > { %1442 = vmatprep.subr.bf16.mxu0 %v5447_v21  ;;  %v5534_v21 = vld [vmem:[%s5732_s30 + $0x1cc] ss:$12 sps:$4 sm:$0xff]  }
  0x37   : > { %1443 = vmatpush1.bf16.msra.mxu0 %v5449_v22  ;;  %v5536_v22 = vld [vmem:[%s5732_s30 + $0x1c8] ss:$12 sps:$4 sm:$0xff]  }
  0x38   : > { %1444 = vmatprep.subr.bf16.mxu0 %v5450_v23  ;;  %v5537_v23 = vld [vmem:[%s5732_s30 + $0x1e4] ss:$12 sps:$4 sm:$0xff]  }
  0x3b   : > { %1445 = vmatpush1.bf16.msra.mxu0 %v5452_v24  ;;  %v5539_v24 = vld [vmem:[%s5732_s30 + $0x1e0] ss:$12 sps:$4 sm:$0xff]  }
  0x3c   : > { %1446 = vmatprep.subr.bf16.mxu0 %v5453_v25  ;;  %v5540_v25 = vld [vmem:[%s5732_s30 + $0x1fc] ss:$12 sps:$4 sm:$0xff]  }
  0x3f   : > { %1447 = vmatpush1.bf16.msra.mxu0 %v5455_v26  ;;  %v5542_v26 = vld [vmem:[%s5732_s30 + $0x1f8] ss:$12 sps:$4 sm:$0xff]  }
  0x40   : > { %1448 = vmatprep.subr.bf16.mxu0 %v5456_v27  ;;  %v5546_v27 = vld [vmem:[%s5732_s30 + $0x214] ss:$12 sps:$4 sm:$0xff]  }
  0x43   : > { %1449 = vmatpush1.bf16.msra.mxu0 %v5458_v28  ;;  %v5548_v28 = vld [vmem:[%s5732_s30 + $0x210] ss:$12 sps:$4 sm:$0xff]  }
  0x44   : > { %1450 = vmatprep.subr.bf16.mxu0 %v5459_v29  ;;  %v5549_v29 = vld [vmem:[%s5732_s30 + $0x22c] ss:$12 sps:$4 sm:$0xff]  }
  0x47   : > { %1451 = vmatpush1.bf16.msra.mxu0 %v5461_v30  ;;  %v5551_v30 = vld [vmem:[%s5732_s30 + $0x228] ss:$12 sps:$4 sm:$0xff]  }
  0x48   : > { %1452 = vmatprep.subr.bf16.mxu0 %v5462_v31  ;;  %v5552_v31 = vld [vmem:[%s5732_s30 + $0x244] ss:$12 sps:$4 sm:$0xff]  }
  0x4b   : > { %1453 = vmatpush1.bf16.msra.mxu0 %v5464_v32  ;;  %v5554_v32 = vld [vmem:[%s5732_s30 + $0x240] ss:$12 sps:$4 sm:$0xff]  }
  0x4c   : > { %1775 = vmatprep.subr.bf16.mxu0 %v5470_v33  ;;  %v5555_v33 = vld [vmem:[%s5732_s30 + $0x25c] ss:$12 sps:$4 sm:$0xff]  }
  0x4e   : > { %1455 = vmatmul.mubr.bf16.vlgmr.msra.gmra.mrb[0].mxu0 %v5465_v34  ;;  %v5557_v34 = vld [vmem:[%s5732_s30 + $0x258] ss:$12 sps:$4 sm:$0xff]  }
  0x4f   : > { %1776 = vmatpush1.bf16.msra.mxu0 %v5468_v35  ;;  %1464 = vmatprep.mubr.bf16.mxu0 %v5471_v36  ;;  %v5558_v35 = vld [vmem:[%s5732_s30 + $0x274] ss:$12 sps:$4 sm:$0xff]   ;;  %v5560_v36 = vld [vmem:[%s5732_s30 + $0x270] ss:$12 sps:$4 sm:$0xff]  }
  0x50   : > { %1777 = vmatprep.subr.bf16.mxu0 %v5488_v37  ;;  %v5564_v37 = vld [vmem:[%s5732_s30 + $0x28c] ss:$12 sps:$4 sm:$0xff]  }
  0x53   : > { %1778 = vmatpush1.bf16.msra.mxu0 %v5486_v38  ;;  %v2322_v38 = vld [vmem:[%s7938_s5 + $0x10] sm:$0xff] }
  0x54   : > { %1779 = vmatprep.subr.bf16.mxu0 %v5506_v39  ;;  %v2323_v39 = vld [vmem:[%s7938_s5 + $0x18] sm:$0xff] }
  0x56   : > { %1465 = vmatmul.mubr.bf16.gmra.mrb[4].mxu0 %v5473_v40  ;;  %v5087_v40 = vpack.c.bf16 %v2323_v39, %v2322_v38  ;;  %v2283_v39 = vld [vmem:[%s5998_s26 + $0xd8] sm:$0xff] }
  0x57   : > { %1474 = vmatprep.mubr.bf16.mxu0 %v5474_v41  ;;  %1780 = vmatpush1.bf16.msra.mxu0 %v5504_v42  ;;  %v5566_v41 = vld [vmem:[%s5732_s30 + $0x288] ss:$12 sps:$4 sm:$0xff]   ;;  %v5567_v42 = vld [vmem:[%s5732_s30 + $0x2a4] ss:$12 sps:$4 sm:$0xff]  }
  0x58   : > { %1781 = vmatprep.subr.bf16.mxu0 %v5527_v43  ;;  %5144 = vmatprep.subr.bf16.mxu1 %v5087_v40  ;;  %v5569_v43 = vld [vmem:[%s5732_s30 + $0x2a0] ss:$12 sps:$4 sm:$0xff]  }
  0x59   : > { %5147 = vmatpush3.bf16.msra.mxu1 %v5087_v40 }
  0x5b   : > { %1782 = vmatpush1.bf16.msra.mxu0 %v5525_v44  ;;  %v5570_v44 = vld [vmem:[%s5732_s30 + $0x2bc] ss:$12 sps:$4 sm:$0xff]  }
  0x5c   : > { %1783 = vmatprep.subr.bf16.mxu0 %v5545_v54  ;;  %v5582_v54 = vld [vmem:[%s5732_s30 + $0x50] ss:$12 sps:$4 sm:$0xff]  }
  0x5e   : > { %1475 = vmatmul.mubr.bf16.gmra.mrb[8].mxu0 %v5476_v45  ;;  %v5572_v45 = vld [vmem:[%s5732_s30 + $0x2b8] ss:$12 sps:$4 sm:$0xff]  }
  0x5f   : > { %1484 = vmatprep.mubr.bf16.mxu0 %v5477_v46  ;;  %1784 = vmatpush1.bf16.msra.mxu0 %v5543_v53  ;;  %v5573_v46 = vld [vmem:[%s5732_s30 + $0x2d4] ss:$12 sps:$4 sm:$0xff]   ;;  %v5581_v53 = vld [vmem:[%s5732_s30 + $0x38] ss:$12 sps:$4 sm:$0xff]  }
  0x60   : > { %1785 = vmatprep.subr.bf16.mxu0 %v5563_v2  ;;  %v5593_v2 = vld [vmem:[%s5732_s30 + $0x158] ss:$12 sps:$4 sm:$0xff]  }
  0x63   : > { %1786 = vmatpush1.bf16.msra.mxu0 %v5561_v1  ;;  %v5592_v1 = vld [vmem:[%s5732_s30 + $0x140] ss:$12 sps:$4 sm:$0xff]  }
  0x64   : > { %5084 = vmatprep.subr.bf16.mxu0 %v5871_v17 }
  0x66   : > { %1485 = vmatmul.mubr.bf16.gmra.mrb[12].mxu0 %v5479_v47  ;;  %v5575_v47 = vld [vmem:[%s5732_s30 + $0x2d0] ss:$12 sps:$4 sm:$0xff]  }
  0x67   : > { %1494 = vmatprep.mubr.bf16.mxu0 %v5480_v48  ;;  %v5576_v48 = vld [vmem:[%s5732_s30 + $0x2ec] ss:$12 sps:$4 sm:$0xff]  }
  0x6e   : > { %1495 = vmatmul.mubr.bf16.gmra.mrb[16].mxu0 %v5482_v49  ;;  %v5578_v49 = vld [vmem:[%s5732_s30 + $0x2e8] ss:$12 sps:$4 sm:$0xff]  }
  0x6f   : > { %1504 = vmatprep.mubr.bf16.mxu0 %v5483_v50  ;;  %v5619_v50 = vmov 0  }
  0x76   : > { %1505 = vmatmul.mubr.bf16.gmra.mrb[20].mxu0 %v5485_v51  ;;  %v5579_v51 = vld [vmem:[%s5732_s30 + $0x8] ss:$12 sps:$4 sm:$0xff]  }
  0x77   : > { %1514 = vmatprep.mubr.bf16.mxu0 %v5489_v52  ;;  %v5580_v52 = vld [vmem:[%s5732_s30 + $0x20] ss:$12 sps:$4 sm:$0xff]  }
  0x7e   : > { %1515 = vmatmul.mubr.bf16.gmra.mrb[24].mxu0 %v5491_v55  ;;  %v5583_v55 = vld [vmem:[%s5732_s30 + $0x68] ss:$12 sps:$4 sm:$0xff]  }
  0x7f   : > { %1524 = vmatprep.mubr.bf16.mxu0 %v5492_v56  ;;  %v5584_v56 = vld [vmem:[%s5732_s30 + $0x80] ss:$12 sps:$4 sm:$0xff]  }
  0x86   : > { %1525 = vmatmul.mubr.bf16.gmra.mrb[28].mxu0 %v5494_v57  ;;  %v2324_v57 = vld [vmem:[%s7938_s5 + $0x20] sm:$0x1] }
  0x87   : > { %1534 = vmatprep.mubr.bf16.mxu0 %v5495_v58  ;;  %5145 = vmatprep.subr.msk.mxu1 %vm2525_vm1, %v2324_v57  ;;  %v5585_v58 = vld [vmem:[%s5732_s30 + $0x98] ss:$12 sps:$4 sm:$0xff]  }
  0x88   : > { %5148 = vmatpush3.msk.msra.mxu1 %vm2525_vm1, %v2324_v57 }
  0x8e   : > { %1535 = vmatmul.mubr.bf16.gmra.mrb[32].mxu0 %v5497_v59  ;;  %v5586_v59 = vld [vmem:[%s5732_s30 + $0xb0] ss:$12 sps:$4 sm:$0xff]  }
  0x8f   : > { %1544 = vmatprep.mubr.bf16.mxu0 %v5498_v60  ;;  %v5587_v60 = vld [vmem:[%s5732_s30 + $0xc8] ss:$12 sps:$4 sm:$0xff]  }
  0x96   : > { %1545 = vmatmul.mubr.bf16.gmra.mrb[36].mxu0 %v5500_v61  ;;  %v5588_v61 = vld [vmem:[%s5732_s30 + $0xe0] ss:$12 sps:$4 sm:$0xff]  }
  0x97   : > { %1554 = vmatprep.mubr.bf16.mxu0 %v5501_v62  ;;  %v5589_v62 = vld [vmem:[%s5732_s30 + $0xf8] ss:$12 sps:$4 sm:$0xff]  }
  0x9e   : > { %1555 = vmatmul.mubr.bf16.gmra.mrb[40].mxu0 %v5503_v63  ;;  %v5590_v63 = vld [vmem:[%s5732_s30 + $0x110] ss:$12 sps:$4 sm:$0xff]  }
  0x9f   : > { %1564 = vmatprep.mubr.bf16.mxu0 %v5507_v0  ;;  %v5591_v0 = vld [vmem:[%s5732_s30 + $0x128] ss:$12 sps:$4 sm:$0xff]  }
  0xa6   : > { %1565 = vmatmul.mubr.bf16.gmra.mrb[44].mxu0 %v5509_v3  ;;  %v5594_v3 = vld [vmem:[%s5732_s30 + $0x170] ss:$12 sps:$4 sm:$0xff]  }
  0xa7   : > { %1574 = vmatprep.mubr.bf16.mxu0 %v5510_v4  ;;  %v5595_v4 = vld [vmem:[%s5732_s30 + $0x188] ss:$12 sps:$4 sm:$0xff]  }
  0xae   : > { %1575 = vmatmul.mubr.bf16.gmra.mrb[48].mxu0 %v5512_v5  ;;  %v5596_v5 = vld [vmem:[%s5732_s30 + $0x1a0] ss:$12 sps:$4 sm:$0xff]  }
  0xaf   : > { %1584 = vmatprep.mubr.bf16.mxu0 %v5513_v6  ;;  %v5597_v6 = vld [vmem:[%s5732_s30 + $0x1b8] ss:$12 sps:$4 sm:$0xff]  }
  0xb6   : > { %1585 = vmatmul.mubr.bf16.gmra.mrb[52].mxu0 %v5515_v7  ;;  %v5598_v7 = vld [vmem:[%s5732_s30 + $0x1d0] ss:$12 sps:$4 sm:$0xff]  }
  0xb7   : > { %1594 = vmatprep.mubr.bf16.mxu0 %v5516_v8  ;;  %v5599_v8 = vld [vmem:[%s5732_s30 + $0x1e8] ss:$12 sps:$4 sm:$0xff]  }
  0xbe   : > { %1595 = vmatmul.mubr.bf16.gmra.mrb[56].mxu0 %v5518_v9  ;;  %v5600_v9 = vld [vmem:[%s5732_s30 + $0x200] ss:$12 sps:$4 sm:$0xff]  }
  0xbf   : > { %1604 = vmatprep.mubr.bf16.mxu0 %v5519_v10  ;;  %v5601_v10 = vld [vmem:[%s5732_s30 + $0x218] ss:$12 sps:$4 sm:$0xff]  }
  0xc6   : > { %1605 = vmatmul.mubr.bf16.gmra.mrb[60].mxu0 %v5521_v11  ;;  %v5602_v11 = vld [vmem:[%s5732_s30 + $0x230] ss:$12 sps:$4 sm:$0xff]  }
  0xc7   : > { %1614 = vmatprep.mubr.bf16.mxu0 %v5522_v12  ;;  %v5603_v12 = vld [vmem:[%s5732_s30 + $0x248] ss:$12 sps:$4 sm:$0xff]  }
  0xce   : > { %1615 = vmatmul.mubr.bf16.gmra.mrb[64].mxu0 %v5524_v13  ;;  %v5604_v13 = vld [vmem:[%s5732_s30 + $0x260] ss:$12 sps:$4 sm:$0xff]  }
  0xcf   : > { %1624 = vmatprep.mubr.bf16.mxu0 %v5528_v14  ;;  %v2274_v14 = vld [vmem:[%s5998_s26 + $0x90] sm:$0xff] }
  0xd0   : > { %5014 = vmatprep.mubr.msk.f32.mxu1 %vm2332_vm2, %v2274_v14  ;;  %v2291_v14 = vld [vmem:[%s5998_s26 + $0x118] sm:$0xff] }
  0xd1   : > { %5015 = vmatmul.mubr.msk.f32.vlgmr.msra.gmra.mrb[0].mxu1 %vm2332_vm2, %v2275_v15  ;;  %v2263_v15 = vld [vmem:[%s5998_s26 + $0x38] sm:$0xff] }
  0xd6   : > { %1625 = vmatmul.mubr.bf16.gmra.mrb[68].mxu0 %v5530_v18  ;;  %v2277_v18 = vld [vmem:[%s5998_s26 + $0xa8] sm:$0xff] }
  0xd7   : > { %1634 = vmatprep.mubr.bf16.mxu0 %v5531_v19 }
  0xde   : > { %1635 = vmatmul.mubr.bf16.gmra.mrb[72].mxu0 %v5533_v20 }
  0xdf   : > { %1644 = vmatprep.mubr.bf16.mxu0 %v5534_v21  ;;  %v5606_v21 = vld [vmem:[%s5732_s30 + $0x290] ss:$12 sps:$4 sm:$0xff]  }
  0xe6   : > { %1645 = vmatmul.mubr.bf16.gmra.mrb[76].mxu0 %v5536_v22 }
  0xe7   : > { %1654 = vmatprep.mubr.bf16.mxu0 %v5537_v23  ;;  %v2278_v23 = vld [vmem:[%s5998_s26 + $0xb0] sm:$0xff] }
  0xee   : > { %1655 = vmatmul.mubr.bf16.gmra.mrb[80].mxu0 %v5539_v24 }
  0xef   : > { %1664 = vmatprep.mubr.bf16.mxu0 %v5540_v25  ;;  %v2279_v25 = vld [vmem:[%s5998_s26 + $0xb8] sm:$0xff] }
  0xf6   : > { %1665 = vmatmul.mubr.bf16.gmra.mrb[84].mxu0 %v5542_v26 }
  0xf7   : > { %1674 = vmatprep.mubr.bf16.mxu0 %v5546_v27 }
  0xfe   : > { %1675 = vmatmul.mubr.bf16.gmra.mrb[88].mxu0 %v5548_v28  ;;  %v5607_v28 = vld [vmem:[%s5732_s30 + $0x2a8] ss:$12 sps:$4 sm:$0xff]  }
  0xff   : > { %1684 = vmatprep.mubr.bf16.mxu0 %v5549_v29 }
 0x106   : > { %1685 = vmatmul.mubr.bf16.gmra.mrb[92].mxu0 %v5551_v30  ;;  %v2280_v30 = vld [vmem:[%s5998_s26 + $0xc0] sm:$0xff] }
 0x107   : > { %1694 = vmatprep.mubr.bf16.mxu0 %v5552_v31 }
 0x10e   : > { %1695 = vmatmul.mubr.bf16.gmra.mrb[96].mxu0 %v5554_v32  ;;  %v2281_v32 = vld [vmem:[%s5998_s26 + $0xc8] sm:$0xff] }
 0x10f   : > { %1704 = vmatprep.mubr.bf16.mxu0 %v5555_v33 }
 0x116   : > { %1705 = vmatmul.mubr.bf16.gmra.mrb[100].mxu0 %v5557_v34 }
 0x117   : > { %1714 = vmatprep.mubr.bf16.mxu0 %v5558_v35  ;;  %v5608_v35 = vld [vmem:[%s5732_s30 + $0x2c0] ss:$12 sps:$4 sm:$0xff]  }
 0x11e   : > { %1715 = vmatmul.mubr.bf16.gmra.mrb[104].mxu0 %v5560_v36 }
 0x11f   : > { %1724 = vmatprep.mubr.bf16.mxu0 %v5564_v37  ;;  %v2282_v37 = vld [vmem:[%s5998_s26 + $0xd0] sm:$0xff] }
 0x126   : > { %1725 = vmatmul.mubr.bf16.gmra.mrb[108].mxu0 %v5566_v41 }
 0x127   : > { %1734 = vmatprep.mubr.bf16.mxu0 %v5567_v42  ;;  %v5609_v42 = vld [vmem:[%s5732_s30 + $0x2d8] ss:$12 sps:$4 sm:$0xff]  }
 0x12e   : > { %1735 = vmatmul.mubr.bf16.gmra.mrb[112].mxu0 %v5569_v43 }
 0x12f   : > { %1744 = vmatprep.mubr.bf16.mxu0 %v5570_v44  ;;  %v2284_v44 = vld [vmem:[%s5998_s26 + $0xe0] sm:$0xff] }
 0x136   : > { %1745 = vmatmul.mubr.bf16.gmra.mrb[116].mxu0 %v5572_v45 }
 0x137   : > { %1754 = vmatprep.mubr.bf16.mxu0 %v5573_v46  ;;  %v2285_v46 = vld [vmem:[%s5998_s26 + $0xe8] sm:$0xff] }
 0x13e   : > { %1755 = vmatmul.mubr.bf16.gmra.mrb[120].mxu0 %v5575_v47 }
 0x13f   : > { %1764 = vmatprep.mubr.bf16.mxu0 %v5576_v48 }
 0x146   : > { %1765 = vmatmul.mubr.bf16.gmra.mrb[124].mxu0 %v5578_v49  ;;  %v5610_v49 = vld [vmem:[%s5732_s30 + $0x2f0] ss:$12 sps:$4 sm:$0xff]  }
 0x147   : > { %1807 = vmatprep.mubr.bf16.mxu0 %v5619_v50 }
 0x14e   : > { %4742 = vmatmul.mubr.msk.bf16.vlgmr.msra.gmra.mrb[0].mxu0 %vm1325_vm0, %v5579_v51 }
 0x14f   : > { %5086 = vmatpush3.bf16.msra.mxu0 %v5871_v17  ;;  %1817 = vmatprep.mubr.bf16.mxu0 %v5619_v50  ;;  %v2276_v17 = vld [vmem:[%s5998_s26 + $0xa0] sm:$0xff] }
 0x150   : > { %5088 = vmatprep.subr.bf16.mxu0 %v5087_v40  ;;  %5017 = vmatprep.mubr.msk.f32.mxu1 %vm2332_vm2, %v2276_v17 }
 0x151   : > { %5018 = vmatmul.mubr.msk.f32.gmra.mrb[2].mxu1 %vm2332_vm2, %v2277_v18 }
 0x152   : > { %5020 = vmatprep.mubr.msk.f32.mxu1 %vm2332_vm2, %v2278_v23  ;;  %v2265_v23 = vld [vmem:[%s5998_s26 + $0x48] sm:$0xff] }
 0x153   : > { %5090 = vmatpush3.bf16.msra.mxu0 %v5087_v40 }
 0x154   : > { %4985 = vmatprep.subr.msk.mxu0 %vm2525_vm1, %v2324_v57 }
 0x155   : > { %5021 = vmatmul.mubr.msk.f32.gmra.mrb[4].mxu1 %vm2332_vm2, %v2279_v25  ;;  %v2292_v25 = vld [vmem:[%s5998_s26 + $0x120] sm:$0xff] }
 0x156   : > { %4743 = vmatmul.mubr.msk.bf16.gmra.mrb[4].mxu0 %vm1325_vm0, %v5580_v52  ;;  %5023 = vmatprep.mubr.msk.f32.mxu1 %vm2332_vm2, %v2280_v30  ;;  %v2286_v52 = vld [vmem:[%s5998_s26 + $0xf0] sm:$0xff] }
 0x157   : > { %1827 = vmatprep.mubr.bf16.mxu0 %v5619_v50  ;;  %4986 = vmatpush3.msk.msra.mxu0 %vm2525_vm1, %v2324_v57  ;;  %v2266_v30 = vld [vmem:[%s5998_s26 + $0x50] sm:$0xff] }
 0x159   : > { %5024 = vmatmul.mubr.msk.f32.gmra.mrb[6].mxu1 %vm2332_vm2, %v2281_v32  ;;  %v2293_v32 = vld [vmem:[%s5998_s26 + $0x128] sm:$0xff] }
 0x15a   : > { %5026 = vmatprep.mubr.msk.f32.mxu1 %vm2332_vm2, %v2282_v37  ;;  %v2268_v37 = vld [vmem:[%s5998_s26 + $0x60] sm:$0xff] }
 0x15d   : > { %5027 = vmatmul.mubr.msk.f32.gmra.mrb[8].mxu1 %vm2332_vm2, %v2283_v39 }
 0x15e   : > { %4744 = vmatmul.mubr.msk.bf16.gmra.mrb[8].mxu0 %vm1325_vm0, %v5581_v53  ;;  %5029 = vmatprep.mubr.msk.f32.mxu1 %vm2332_vm2, %v2284_v44 }
 0x15f   : > { %1837 = vmatprep.mubr.bf16.mxu0 %v5619_v50 }
 0x161   : > { %5030 = vmatmul.mubr.msk.f32.gmra.mrb[10].mxu1 %vm2332_vm2, %v2285_v46  ;;  %v2269_v46 = vld [vmem:[%s5998_s26 + $0x68] sm:$0xff] }
 0x162   : > { %5032 = vmatprep.mubr.msk.f32.mxu1 %vm2332_vm2, %v2286_v52 }
 0x166   : > { %4745 = vmatmul.mubr.msk.bf16.gmra.mrb[12].mxu0 %vm1325_vm0, %v5582_v54  ;;  %v2256_v54 = vld [vmem:[%s5998_s26] sm:$0xff] }
 0x167   : > { %1847 = vmatprep.mubr.bf16.mxu0 %v5619_v50 }
 0x16e   : > { %4746 = vmatmul.mubr.msk.bf16.gmra.mrb[16].mxu0 %vm1325_vm0, %v5583_v55  ;;  %v2287_v55 = vld [vmem:[%s5998_s26 + $0xf8] sm:$0xff] }
 0x16f   : > { %1857 = vmatprep.mubr.bf16.mxu0 %v5619_v50  ;;  %5033 = vmatmul.mubr.msk.f32.gmra.mrb[12].mxu1 %vm2332_vm2, %v2287_v55  ;;  %v2295_v55 = vld [vmem:[%s5998_s26 + $0x138] sm:$0xff] }
 0x176   : > { %4747 = vmatmul.mubr.msk.bf16.gmra.mrb[20].mxu0 %vm1325_vm0, %v5584_v56 }
 0x177   : > { %1867 = vmatprep.mubr.bf16.mxu0 %v5619_v50 }
 0x17e   : > { %4748 = vmatmul.mubr.msk.bf16.gmra.mrb[24].mxu0 %vm1325_vm0, %v5585_v58  ;;  %v2257_v58 = vld [vmem:[%s5998_s26 + $0x8] sm:$0xff] }
 0x17f   : > { %1877 = vmatprep.mubr.bf16.mxu0 %v5619_v50 }
 0x186   : > { %4749 = vmatmul.mubr.msk.bf16.gmra.mrb[28].mxu0 %vm1325_vm0, %v5586_v59  ;;  %v2288_v59 = vld [vmem:[%s5998_s26 + $0x100] sm:$0xff] }
 0x187   : > { %1887 = vmatprep.mubr.bf16.mxu0 %v5619_v50  ;;  %5035 = vmatprep.mubr.msk.f32.mxu1 %vm2332_vm2, %v2288_v59  ;;  %v2272_v59 = vld [vmem:[%s5998_s26 + $0x80] sm:$0xff] }
 0x18e   : > { %4750 = vmatmul.mubr.msk.bf16.gmra.mrb[32].mxu0 %vm1325_vm0, %v5587_v60 }
 0x18f   : > { %1897 = vmatprep.mubr.bf16.mxu0 %v5619_v50 }
 0x196   : > { %4751 = vmatmul.mubr.msk.bf16.gmra.mrb[36].mxu0 %vm1325_vm0, %v5588_v61  ;;  %v2258_v61 = vld [vmem:[%s5998_s26 + $0x10] sm:$0xff] }
 0x197   : > { %1907 = vmatprep.mubr.bf16.mxu0 %v5619_v50 }
 0x19e   : > { %4752 = vmatmul.mubr.msk.bf16.gmra.mrb[40].mxu0 %vm1325_vm0, %v5589_v62  ;;  %v2289_v62 = vld [vmem:[%s5998_s26 + $0x108] sm:$0xff] }
 0x19f   : > { %1917 = vmatprep.mubr.bf16.mxu0 %v5619_v50  ;;  %5036 = vmatmul.mubr.msk.f32.gmra.mrb[14].mxu1 %vm2332_vm2, %v2289_v62 }
 0x1a6   : > { %4753 = vmatmul.mubr.msk.bf16.gmra.mrb[44].mxu0 %vm1325_vm0, %v5590_v63  ;;  %v2979_v63 = vld [vmem:[%s7940_s7 + $0x8] sm:$0xff] }
 0x1a7   : > { %1927 = vmatprep.mubr.bf16.mxu0 %v5619_v50 }
 0x1ae   : > { %4754 = vmatmul.mubr.msk.bf16.gmra.mrb[48].mxu0 %vm1325_vm0, %v5591_v0  ;;  %v2981_v0 = vld [vmem:[%s7940_s7 + $0x18] sm:$0xff] }
 0x1af   : > { %1937 = vmatprep.mubr.bf16.mxu0 %v5619_v50 }
 0x1b6   : > { %4755 = vmatmul.mubr.msk.bf16.gmra.mrb[52].mxu0 %vm1325_vm0, %v5592_v1  ;;  %v2259_v1 = vld [vmem:[%s5998_s26 + $0x18] sm:$0xff] }
 0x1b7   : > { %1947 = vmatprep.mubr.bf16.mxu0 %v5619_v50 }
 0x1be   : > { %4756 = vmatmul.mubr.msk.bf16.gmra.mrb[56].mxu0 %vm1325_vm0, %v5593_v2  ;;  %v5091_v2 = vpack.c.bf16 %v2981_v0, %v2979_v63  ;;  %v2273_v0 = vld [vmem:[%s5998_s26 + $0x88] sm:$0xff] }
 0x1bf   : > { %1957 = vmatprep.mubr.bf16.mxu0 %v5619_v50 }
 0x1c0   : > { %5092 = vmatprep.subr.bf16.mxu1 %v5091_v2 }
 0x1c6   : > { %4757 = vmatmul.mubr.msk.bf16.gmra.mrb[60].mxu0 %vm1325_vm0, %v5594_v3  ;;  %v2978_v3 = vld [vmem:[%s7940_s7] sm:$0xff] }
 0x1c7   : > { %1967 = vmatprep.mubr.bf16.mxu0 %v5619_v50 }
 0x1ce   : > { %4758 = vmatmul.mubr.msk.bf16.gmra.mrb[64].mxu0 %vm1325_vm0, %v5595_v4  ;;  %v2980_v4 = vld [vmem:[%s7940_s7 + $0x10] sm:$0xff] }
 0x1cf   : > { %1977 = vmatprep.mubr.bf16.mxu0 %v5619_v50 }
 0x1d6   : > { %4759 = vmatmul.mubr.msk.bf16.gmra.mrb[68].mxu0 %vm1325_vm0, %v5596_v5  ;;  %v2260_v5 = vld [vmem:[%s5998_s26 + $0x20] sm:$0xff] }
 0x1d7   : > { %1987 = vmatprep.mubr.bf16.mxu0 %v5619_v50 }
 0x1de   : > { %4760 = vmatmul.mubr.msk.bf16.gmra.mrb[72].mxu0 %vm1325_vm0, %v5597_v6  ;;  %v5093_v6 = vpack.c.bf16 %v2980_v4, %v2978_v3  ;;  %v2297_v3 = vld [vmem:[%s5998_s26 + $0x148] sm:$0xff] }
 0x1df   : > { %1997 = vmatprep.mubr.bf16.mxu0 %v5619_v50 }
 0x1e0   : > { %5094 = vmatpush1.bf16.msra.mxu1 %v5093_v6 }
 0x1e6   : > { %4761 = vmatmul.mubr.msk.bf16.gmra.mrb[76].mxu0 %vm1325_vm0, %v5598_v7 }
 0x1e7   : > { %2007 = vmatprep.mubr.bf16.mxu0 %v5619_v50 }
 0x1ee   : > { %4762 = vmatmul.mubr.msk.bf16.gmra.mrb[80].mxu0 %vm1325_vm0, %v5599_v8 }
 0x1ef   : > { %2017 = vmatprep.mubr.bf16.mxu0 %v5619_v50 }
 0x1f6   : > { %4763 = vmatmul.mubr.msk.bf16.gmra.mrb[84].mxu0 %vm1325_vm0, %v5600_v9 }
 0x1f7   : > { %2027 = vmatprep.mubr.bf16.mxu0 %v5619_v50 }
 0x1fe   : > { %4764 = vmatmul.mubr.msk.bf16.gmra.mrb[88].mxu0 %vm1325_vm0, %v5601_v10  ;;  %v2261_v10 = vld [vmem:[%s5998_s26 + $0x28] sm:$0xff] }
 0x1ff   : > { %2037 = vmatprep.mubr.bf16.mxu0 %v5619_v50 }
 0x206   : > { %4765 = vmatmul.mubr.msk.bf16.gmra.mrb[92].mxu0 %vm1325_vm0, %v5602_v11  ;;  %v2290_v11 = vld [vmem:[%s5998_s26 + $0x110] sm:$0xff] }
 0x207   : > { %2047 = vmatprep.mubr.bf16.mxu0 %v5619_v50  ;;  %5038 = vmatprep.mubr.msk.f32.mxu1 %vm2332_vm2, %v2290_v11 }
 0x208   : > { %5039 = vmatmul.mubr.msk.f32.gmra.mrb[16].mxu1 %vm2332_vm2, %v2291_v14 }
 0x209   : > { %5041 = vmatprep.mubr.msk.f32.mxu1 %vm2332_vm2, %v2292_v25 }
 0x20c   : > { %5042 = vmatmul.mubr.msk.f32.gmra.mrb[18].mxu1 %vm2332_vm2, %v2293_v32  ;;  %v2302_v32 = vld [vmem:[%s5998_s26 + $0x170] sm:$0xff] }
 0x20e   : > { %4766 = vmatmul.mubr.msk.bf16.gmra.mrb[96].mxu0 %vm1325_vm0, %v5603_v12 }
 0x20f   : > { %2057 = vmatprep.mubr.bf16.mxu0 %v5619_v50 }
 0x216   : > { %4767 = vmatmul.mubr.msk.bf16.gmra.mrb[100].mxu0 %vm1325_vm0, %v5604_v13  ;;  %v2262_v13 = vld [vmem:[%s5998_s26 + $0x30] sm:$0xff] }
 0x217   : > { %2067 = vmatprep.mubr.bf16.mxu0 %v5619_v50 }
 0x21e   : > { %4768 = vmatmul.mubr.msk.bf16.gmra.mrb[104].mxu0 %vm1325_vm0, %v5605_v16  ;;  %v2264_v16 = vld [vmem:[%s5998_s26 + $0x40] sm:$0xff] }
 0x21f   : > { %2077 = vmatprep.mubr.bf16.mxu0 %v5619_v50 }
 0x221   : > { %v6013_v19 = vpop.f32.mrb[0].mxu0 }
 0x222   : > { %v6015_v20 = vpop.f32.mrb[1].mxu0 }
 0x223   : > { %v6018_v22 = vpop.f32.mrb[2].mxu0 }
 0x224   : > { %v6021_v24 = vpop.f32.mrb[3].mxu0 }
 0x226   : > { %4769 = vmatmul.mubr.msk.bf16.gmra.mrb[108].mxu0 %vm1325_vm0, %v5606_v21 }
 0x227   : > { %2087 = vmatprep.mubr.bf16.mxu0 %v5619_v50 }
 0x229   : > { %v6028_v26 = vpop.f32.mrb[4].mxu0 }
 0x22a   : > { %v6030_v27 = vpop.f32.mrb[5].mxu0 }
 0x22b   : > { %v6033_v29 = vpop.f32.mrb[6].mxu0 }
 0x22c   : > { %v6036_v31 = vpop.f32.mrb[7].mxu0 }
 0x22e   : > { %4770 = vmatmul.mubr.msk.bf16.gmra.mrb[112].mxu0 %vm1325_vm0, %v5607_v28 }
 0x22f   : > { %2097 = vmatprep.mubr.bf16.mxu0 %v5619_v50 }
 0x231   : > { %v6043_v33 = vpop.f32.mrb[8].mxu0 }
 0x232   : > { %v6045_v34 = vpop.f32.mrb[9].mxu0 }
 0x233   : > { %v6048_v36 = vpop.f32.mrb[10].mxu0 }
 0x234   : > { %v6051_v38 = vpop.f32.mrb[11].mxu0 }
 0x236   : > { %4771 = vmatmul.mubr.msk.bf16.gmra.mrb[116].mxu0 %vm1325_vm0, %v5608_v35  ;;  %v2267_v35 = vld [vmem:[%s5998_s26 + $0x58] sm:$0xff] }
 0x237   : > { %2107 = vmatprep.mubr.bf16.mxu0 %v5619_v50 }
 0x239   : > { %v6058_v40 = vpop.f32.mrb[12].mxu0 }
 0x23a   : > { %7949 = vst [vmem:[#allocation2_spill] sm:$0xff] %v6058_v40  ;;  %v6060_v41 = vpop.f32.mrb[13].mxu0 }
 0x23b   : > { %7950 = vst [vmem:[#allocation3_spill] sm:$0xff] %v6060_v41  ;;  %v6063_v43 = vpop.f32.mrb[14].mxu0 }
 0x23c   : > { %7951 = vst [vmem:[#allocation4_spill] sm:$0xff] %v6063_v43  ;;  %v6066_v45 = vpop.f32.mrb[15].mxu0 }
 0x23d   : > { %7952 = vst [vmem:[#allocation5_spill] sm:$0xff] %v6066_v45 }
 0x23e   : > { %4772 = vmatmul.mubr.msk.bf16.gmra.mrb[120].mxu0 %vm1325_vm0, %v5609_v42 }
 0x23f   : > { %2117 = vmatprep.mubr.bf16.mxu0 %v5619_v50 }
 0x241   : > { %v6073_v47 = vpop.f32.mrb[16].mxu0 }
 0x242   : > { %7953 = vst [vmem:[#allocation6_spill] sm:$0xff] %v6073_v47  ;;  %v6075_v48 = vpop.f32.mrb[17].mxu0 }
 0x243   : > { %7954 = vst [vmem:[#allocation7_spill] sm:$0xff] %v6075_v48  ;;  %v6078_v51 = vpop.f32.mrb[18].mxu0 }
 0x244   : > { %7955 = vst [vmem:[#allocation8_spill] sm:$0xff] %v6078_v51  ;;  %v6081_v53 = vpop.f32.mrb[19].mxu0  ;;  %v4039_v51 = vld [vmem:[%s7942_s9 + $0x98] sm:$0xff] }
 0x245   : > { %7956 = vst [vmem:[#allocation9_spill] sm:$0xff] %v6081_v53 }
 0x246   : > { %4773 = vmatmul.mubr.msk.bf16.gmra.mrb[124].mxu0 %vm1325_vm0, %v5610_v49  ;;  %v2294_v49 = vld [vmem:[%s5998_s26 + $0x130] sm:$0xff] }
 0x247   : > { %4987 = vmatprep.mubr.msk.f32.mxu0 %vm2332_vm2, %v2256_v54  ;;  %v2270_v54 = vld [vmem:[%s5998_s26 + $0x70] sm:$0xff]  ;;  %5044 = vmatprep.mubr.msk.f32.mxu1 %vm2332_vm2, %v2294_v49 }
 0x248   : > { %5045 = vmatmul.mubr.msk.f32.gmra.mrb[20].mxu1 %vm2332_vm2, %v2295_v55  ;;  %v2304_v55 = vld [vmem:[%s5998_s26 + $0x180] sm:$0xff] }
 0x249   : > { %v6089_v50 = vpop.f32.mrb[20].mxu0 }
 0x24a   : > { %7957 = vst [vmem:[#allocation10_spill] sm:$0xff] %v6089_v50  ;;  %v6091_v56 = vpop.f32.mrb[21].mxu0  ;;  %v4036_v50 = vld [vmem:[%s7942_s9 + $0x80] sm:$0xff] }
 0x24b   : > { %7958 = vst [vmem:[#allocation11_spill] sm:$0xff] %v6091_v56  ;;  %v6093_v57 = vpop.f32.mrb[22].mxu0 }
 0x24c   : > { %7959 = vst [vmem:[#allocation12_spill] sm:$0xff] %v6093_v57  ;;  %v6097_v60 = vpop.f32.mrb[23].mxu0  ;;  %v4034_v57 = vld [vmem:[%s7942_s9 + $0x70] sm:$0xff] }
 0x24d   : > { %7960 = vst [vmem:[#allocation13_spill] sm:$0xff] %v6097_v60 }
 0x24e   : > { %4988 = vmatmul.mubr.msk.f32.vlgmr.msra.gmra.mrb[128].mxu0 %vm2332_vm2, %v2257_v58  ;;  %v2271_v58 = vld [vmem:[%s5998_s26 + $0x78] sm:$0xff] }
 0x24f   : > { %4990 = vmatprep.mubr.msk.f32.mxu0 %vm2332_vm2, %v2258_v61 }
 0x251   : > { %v6119_v7 = vpop.f32.mrb[24].mxu0 }
 0x252   : > { %7961 = vst [vmem:[#allocation14_spill] sm:$0xff] %v6119_v7  ;;  %v6121_v8 = vpop.f32.mrb[25].mxu0  ;;  %4991 = vmatmul.mubr.msk.f32.gmra.mrb[130].mxu0 %vm2332_vm2, %v2259_v1  ;;  %v2296_v1 = vld [vmem:[%s5998_s26 + $0x140] sm:$0xff] }
 0x253   : > { %7962 = vst [vmem:[#allocation15_spill] sm:$0xff] %v6121_v8  ;;  %v6124_v9 = vpop.f32.mrb[26].mxu0  ;;  %4993 = vmatprep.mubr.msk.f32.mxu0 %vm2332_vm2, %v2260_v5  ;;  %5047 = vmatprep.mubr.msk.f32.mxu1 %vm2332_vm2, %v2296_v1  ;;  %v2307_v1 = vld [vmem:[%s5998_s26 + $0x198] sm:$0xff]  ;;  %v4032_v7 = vld [vmem:[%s7942_s9 + $0x60] sm:$0xff] }
 0x254   : > { %7963 = vst [vmem:[#allocation16_spill] sm:$0xff] %v6124_v9  ;;  %v6129_v12 = vpop.f32.mrb[27].mxu0  ;;  %5048 = vmatmul.mubr.msk.f32.gmra.mrb[22].mxu1 %vm2332_vm2, %v2297_v3 }
 0x255   : > { %7964 = vst [vmem:[#allocation17_spill] sm:$0xff] %v6129_v12 }
 0x256   : > { %4994 = vmatmul.mubr.msk.f32.gmra.mrb[132].mxu0 %vm2332_vm2, %v2261_v10  ;;  %v2298_v10 = vld [vmem:[%s5998_s26 + $0x150] sm:$0xff] }
 0x257   : > { %4996 = vmatprep.mubr.msk.f32.mxu0 %vm2332_vm2, %v2262_v13  ;;  %5050 = vmatprep.mubr.msk.f32.mxu1 %vm2332_vm2, %v2298_v10  ;;  %v2299_v13 = vld [vmem:[%s5998_s26 + $0x158] sm:$0xff] }
 0x258   : > { %5051 = vmatmul.mubr.msk.f32.gmra.mrb[24].mxu1 %vm2332_vm2, %v2299_v13 }
 0x259   : > { %v6139_v17 = vpop.f32.mrb[28].mxu0 }
 0x25a   : > { %7965 = vst [vmem:[#allocation18_spill] sm:$0xff] %v6139_v17  ;;  %v6141_v18 = vpop.f32.mrb[29].mxu0  ;;  %4997 = vmatmul.mubr.msk.f32.gmra.mrb[134].mxu0 %vm2332_vm2, %v2263_v15  ;;  %v4028_v17 = vld [vmem:[%s7942_s9 + $0x40] sm:$0xff] }
 0x25b   : > { %7966 = vst [vmem:[#allocation19_spill] sm:$0xff] %v6141_v18  ;;  %v6144_v21 = vpop.f32.mrb[30].mxu0  ;;  %4999 = vmatprep.mubr.msk.f32.mxu0 %vm2332_vm2, %v2264_v16  ;;  %v4027_v18 = vld [vmem:[%s7942_s9 + $0x38] sm:$0xff] }
 0x25c   : > { %7967 = vst [vmem:[#allocation20_spill] sm:$0xff] %v6144_v21  ;;  %v6149_v28 = vpop.f32.mrb[31].mxu0  ;;  %v4026_v21 = vld [vmem:[%s7942_s9 + $0x30] sm:$0xff] }
 0x25d   : > { %7968 = vst [vmem:[#allocation21_spill] sm:$0xff] %v6149_v28 }
 0x25e   : > { %5000 = vmatmul.mubr.msk.f32.gmra.mrb[136].mxu0 %vm2332_vm2, %v2265_v23  ;;  %v2300_v23 = vld [vmem:[%s5998_s26 + $0x160] sm:$0xff] }
 0x25f   : > { %5002 = vmatprep.mubr.msk.f32.mxu0 %vm2332_vm2, %v2266_v30  ;;  %5053 = vmatprep.mubr.msk.f32.mxu1 %vm2332_vm2, %v2300_v23  ;;  %v2301_v30 = vld [vmem:[%s5998_s26 + $0x168] sm:$0xff]  ;;  %v2308_v23 = vld [vmem:[%s5998_s26 + $0x1a0] sm:$0xff] }
 0x260   : > { %5054 = vmatmul.mubr.msk.f32.gmra.mrb[26].mxu1 %vm2332_vm2, %v2301_v30  ;;  %v2309_v30 = vld [vmem:[%s5998_s26 + $0x1a8] sm:$0xff] }
 0x261   : > { %v6159_v39 = vpop.f32.mrb[32].mxu0  ;;  %5056 = vmatprep.mubr.msk.f32.mxu1 %vm2332_vm2, %v2302_v32  ;;  %v2310_v32 = vld [vmem:[%s5998_s26 + $0x1b0] sm:$0xff] }
 0x262   : > { %7969 = vst [vmem:[#allocation22_spill] sm:$0xff] %v6159_v39  ;;  %v6161_v42 = vpop.f32.mrb[33].mxu0  ;;  %5003 = vmatmul.mubr.msk.f32.gmra.mrb[138].mxu0 %vm2332_vm2, %v2267_v35  ;;  %v4024_v39 = vld [vmem:[%s7942_s9 + $0x20] sm:$0xff] }
 0x263   : > { %7970 = vst [vmem:[#allocation23_spill] sm:$0xff] %v6161_v42  ;;  %v6164_v44 = vpop.f32.mrb[34].mxu0  ;;  %5005 = vmatprep.mubr.msk.f32.mxu0 %vm2332_vm2, %v2268_v37  ;;  %v2303_v37 = vld [vmem:[%s5998_s26 + $0x178] sm:$0xff]  ;;  %v8066_v42 = vmov 0.0|0.0  }
 0x264   : > { %7971 = vst [vmem:[#allocation24_spill] sm:$0xff] %v6164_v44  ;;  %v6169_v52 = vpop.f32.mrb[35].mxu0  ;;  %5057 = vmatmul.mubr.msk.f32.gmra.mrb[28].mxu1 %vm2332_vm2, %v2303_v37 }
 0x265   : > { %7972 = vst [vmem:[#allocation25_spill] sm:$0xff] %v6169_v52  ;;  %5059 = vmatprep.mubr.msk.f32.mxu1 %vm2332_vm2, %v2304_v55  ;;  %v2311_v55 = vld [vmem:[%s5998_s26 + $0x1b8] sm:$0xff] }
 0x266   : > { %5006 = vmatmul.mubr.msk.f32.gmra.mrb[140].mxu0 %vm2332_vm2, %v2269_v46 }
 0x267   : > { %5008 = vmatprep.mubr.msk.f32.mxu0 %vm2332_vm2, %v2270_v54 }
 0x269   : > { %v6179_v61 = vpop.f32.mrb[36].mxu0 }
 0x26a   : > { %7973 = vst [vmem:[#allocation26_spill] sm:$0xff] %v6179_v61  ;;  %v6181_v62 = vpop.f32.mrb[37].mxu0  ;;  %5009 = vmatmul.mubr.msk.f32.gmra.mrb[142].mxu0 %vm2332_vm2, %v2271_v58  ;;  %v2305_v58 = vld [vmem:[%s5998_s26 + $0x188] sm:$0xff]  ;;  %v4023_v61 = vld [vmem:[%s7942_s9 + $0x18] sm:$0xff] }
 0x26b   : > { %7974 = vst [vmem:[#allocation27_spill] sm:$0xff] %v6181_v62  ;;  %v6184_v63 = vpop.f32.mrb[38].mxu0  ;;  %5011 = vmatprep.mubr.msk.f32.mxu0 %vm2332_vm2, %v2272_v59  ;;  %5060 = vmatmul.mubr.msk.f32.gmra.mrb[30].mxu1 %vm2332_vm2, %v2305_v58  ;;  %v2306_v59 = vld [vmem:[%s5998_s26 + $0x190] sm:$0xff] }
 0x26c   : > { %7975 = vst [vmem:[#allocation28_spill] sm:$0xff] %v6184_v63  ;;  %v6189_v2 = vpop.f32.mrb[39].mxu0  ;;  %5062 = vmatprep.mubr.msk.f32.mxu1 %vm2332_vm2, %v2306_v59  ;;  %v4022_v62 = vld [vmem:[%s7942_s9 + $0x10] sm:$0xff] }
 0x26d   : > { %7976 = vst [vmem:[#allocation29_spill] sm:$0xff] %v6189_v2 }
 0x26e   : > { %5012 = vmatmul.mubr.msk.f32.gmra.mrb[144].mxu0 %vm2332_vm2, %v2273_v0 }
 0x26f   : > { %5063 = vmatmul.mubr.msk.f32.gmra.mrb[32].mxu1 %vm2332_vm2, %v2307_v1 }
 0x270   : > { %5065 = vmatprep.mubr.msk.f32.mxu1 %vm2332_vm2, %v2308_v23  ;;  %v2312_v23 = vld [vmem:[%s5998_s26 + $0x1c0] sm:$0xff] }
 0x271   : > { %v6195_v4 = vpop.f32.mrb[40].mxu0 }
 0x272   : > { %7977 = vst [vmem:[#allocation30_spill] sm:$0xff] %v6195_v4  ;;  %v6197_v5 = vpop.f32.mrb[41].mxu0 }
 0x273   : > { %7978 = vst [vmem:[#allocation31_spill] sm:$0xff] %v6197_v5  ;;  %v6199_v6 = vpop.f32.mrb[42].mxu0  ;;  %5066 = vmatmul.mubr.msk.f32.gmra.mrb[34].mxu1 %vm2332_vm2, %v2309_v30  ;;  %v2313_v30 = vld [vmem:[%s5998_s26 + $0x1c8] sm:$0xff] }
 0x274   : > { %7979 = vst [vmem:[#allocation32_spill] sm:$0xff] %v6199_v6  ;;  %v6202_v11 = vpop.f32.mrb[43].mxu0  ;;  %5068 = vmatprep.mubr.msk.f32.mxu1 %vm2332_vm2, %v2310_v32  ;;  %v2314_v32 = vld [vmem:[%s5998_s26 + $0x1d0] sm:$0xff] }
 0x275   : > { %7980 = vst [vmem:[#allocation33_spill] sm:$0xff] %v6202_v11 }
 0x277   : > { %5069 = vmatmul.mubr.msk.f32.gmra.mrb[36].mxu1 %vm2332_vm2, %v2311_v55 }
 0x278   : > { %5071 = vmatprep.mubr.msk.f32.mxu1 %vm2332_vm2, %v2312_v23  ;;  %v2317_v23 = vld [vmem:[%s5998_s26 + $0x1e8] sm:$0xff] }
 0x279   : > { %v6207_v14 = vpop.f32.mrb[44].mxu0 }
 0x27a   : > { %7981 = vst [vmem:[#allocation34_spill] sm:$0xff] %v6207_v14  ;;  %v6209_v15 = vpop.f32.mrb[45].mxu0 }
 0x27b   : > { %7982 = vst [vmem:[#allocation35_spill] sm:$0xff] %v6209_v15  ;;  %v6211_v16 = vpop.f32.mrb[46].mxu0  ;;  %5072 = vmatmul.mubr.msk.f32.gmra.mrb[38].mxu1 %vm2332_vm2, %v2313_v30  ;;  %v2318_v30 = vld [vmem:[%s5998_s26 + $0x1f0] sm:$0xff] }
 0x27c   : > { %7983 = vst [vmem:[#allocation36_spill] sm:$0xff] %v6211_v16  ;;  %v6214_v25 = vpop.f32.mrb[47].mxu0  ;;  %5074 = vmatprep.mubr.msk.f32.mxu1 %vm2332_vm2, %v2314_v32  ;;  %v2319_v32 = vld [vmem:[%s5998_s26 + $0x1f8] sm:$0xff] }
 0x27d   : > { %7984 = vst [vmem:[#allocation37_spill] sm:$0xff] %v6214_v25 }
 0x281   : > { %v6220_v35 = vpop.f32.mrb[48].mxu0 }
 0x282   : > { %7985 = vst [vmem:[#allocation38_spill] sm:$0xff] %v6220_v35  ;;  %v6224_v46 = vpop.f32.mrb[49].mxu0 }
 0x283   : > { %7986 = vst [vmem:[#allocation39_spill] sm:$0xff] %v6224_v46  ;;  %v6227_v49 = vpop.f32.mrb[50].mxu0 }
 0x284   : > { %7987 = vst [vmem:[#allocation40_spill] sm:$0xff] %v6227_v49  ;;  %v6229_v54 = vpop.f32.mrb[51].mxu0 }
 0x285   : > { %7988 = vst [vmem:[#allocation41_spill] sm:$0xff] %v6229_v54 }
 0x289   : > { %v6236_v0 = vpop.f32.mrb[52].mxu0 }
 0x28a   : > { %7989 = vst [vmem:[#allocation42_spill] sm:$0xff] %v6236_v0  ;;  %v6240_v3 = vpop.f32.mrb[53].mxu0 }
 0x28b   : > { %7990 = vst [vmem:[#allocation43_spill] sm:$0xff] %v6240_v3  ;;  %v6243_v10 = vpop.f32.mrb[54].mxu0 }
 0x28c   : > { %7991 = vst [vmem:[#allocation44_spill] sm:$0xff] %v6243_v10  ;;  %v6245_v13 = vpop.f32.mrb[55].mxu0 }
 0x28d   : > { %7992 = vst [vmem:[#allocation45_spill] sm:$0xff] %v6245_v13  ;;  %v2316_v13 = vld [vmem:[%s5998_s26 + $0x1e0] sm:$0xff] }
 0x291   : > { %v6252_v37 = vpop.f32.mrb[56].mxu0 }
 0x292   : > { %7993 = vst [vmem:[#allocation46_spill] sm:$0xff] %v6252_v37  ;;  %v6256_v58 = vpop.f32.mrb[57].mxu0 }
 0x293   : > { %7994 = vst [vmem:[#allocation47_spill] sm:$0xff] %v6256_v58  ;;  %v6259_v59 = vpop.f32.mrb[58].mxu0  ;;  %v2315_v58 = vld [vmem:[%s5998_s26 + $0x1d8] sm:$0xff] }
 0x294   : > { %7995 = vst [vmem:[#allocation48_spill] sm:$0xff] %v6259_v59  ;;  %v6261_v1 = vpop.f32.mrb[59].mxu0  ;;  %5075 = vmatmul.mubr.msk.f32.gmra.mrb[40].mxu1 %vm2332_vm2, %v2315_v58 }
 0x295   : > { %7996 = vst [vmem:[#allocation49_spill] sm:$0xff] %v6261_v1  ;;  %5077 = vmatprep.mubr.msk.f32.mxu1 %vm2332_vm2, %v2316_v13  ;;  %v7947_v13 = vmov 0.0|0.0  }
 0x296   : > { %5095 = vmatprep.subr.bf16.mxu1 %v7947_v13 }
 0x298   : > { %5078 = vmatmul.mubr.msk.f32.gmra.mrb[42].mxu1 %vm2332_vm2, %v2317_v23 }
 0x299   : > { %v6268_v37 = vpop.f32.mrb[60].mxu0  ;;  %5080 = vmatprep.mubr.msk.f32.mxu1 %vm2332_vm2, %v2318_v30 }
 0x29a   : > { %7997 = vst [vmem:[#allocation50_spill] sm:$0xff] %v6268_v37  ;;  %v6272_v55 = vpop.f32.mrb[61].mxu0 }
 0x29b   : > { %7998 = vst [vmem:[#allocation51_spill] sm:$0xff] %v6272_v55  ;;  %v6275_v59 = vpop.f32.mrb[62].mxu0 }
 0x29c   : > { %7999 = vst [vmem:[#allocation52_spill] sm:$0xff] %v6275_v59  ;;  %v6277_v1 = vpop.f32.mrb[63].mxu0  ;;  %5081 = vmatmul.mubr.msk.f32.gmra.mrb[44].mxu1 %vm2332_vm2, %v2319_v32 }
 0x29d   : > { %8000 = vst [vmem:[#allocation53_spill] sm:$0xff] %v6277_v1  ;;  %v7945_v1 = vmov 0.0  }
 0x29e   : > { %3251 = vmatprep.mubr.f32.mxu1 %v7945_v1 }
 0x2a1   : > { %v6284_v10 = vpop.f32.mrb[64].mxu0 }
 0x2a2   : > { %8001 = vst [vmem:[#allocation54_spill] sm:$0xff] %v6284_v10  ;;  %v6288_v37 = vpop.f32.mrb[65].mxu0 }
 0x2a3   : > { %8002 = vst [vmem:[#allocation55_spill] sm:$0xff] %v6288_v37  ;;  %v6291_v58 = vpop.f32.mrb[66].mxu0 }
 0x2a4   : > { %8003 = vst [vmem:[#allocation56_spill] sm:$0xff] %v6291_v58  ;;  %v6293_v59 = vpop.f32.mrb[67].mxu0 }
 0x2a5   : > { %8004 = vst [vmem:[#allocation57_spill] sm:$0xff] %v6293_v59 }
 0x2a9   : > { %v6297_v23 = vpop.f32.mrb[68].mxu0 }
 0x2aa   : > { %8005 = vst [vmem:[#allocation58_spill] sm:$0xff] %v6297_v23  ;;  %v6299_v10 = vpop.f32.mrb[69].mxu0 }
 0x2ab   : > { %8006 = vst [vmem:[#allocation59_spill] sm:$0xff] %v6299_v10  ;;  %v6301_v30 = vpop.f32.mrb[70].mxu0 }
 0x2ac   : > { %8007 = vst [vmem:[#allocation60_spill] sm:$0xff] %v6301_v30  ;;  %v6303_v55 = vpop.f32.mrb[71].mxu0 }
 0x2ad   : > { %8008 = vst [vmem:[#allocation61_spill] sm:$0xff] %v6303_v55 }
 0x2b1   : > { %v6305_v37 = vpop.f32.mrb[72].mxu0 }
 0x2b2   : > { %8009 = vst [vmem:[#allocation62_spill] sm:$0xff] %v6305_v37  ;;  %v6307_v32 = vpop.f32.mrb[73].mxu0 }
 0x2b3   : > { %8010 = vst [vmem:[#allocation63_spill] sm:$0xff] %v6307_v32  ;;  %v6309_v58 = vpop.f32.mrb[74].mxu0 }
 0x2b4   : > { %8011 = vst [vmem:[#allocation64_spill] sm:$0xff] %v6309_v58  ;;  %v6311_v59 = vpop.f32.mrb[75].mxu0 }
 0x2b5   : > { %8012 = vst [vmem:[#allocation65_spill] sm:$0xff] %v6311_v59 }
 0x2b9   : > { %v6313_v1 = vpop.f32.mrb[76].mxu0 }
 0x2ba   : > { %8013 = vst [vmem:[#allocation66_spill] sm:$0xff] %v6313_v1  ;;  %v6315_v3 = vpop.f32.mrb[77].mxu0 }
 0x2bb   : > { %8014 = vst [vmem:[#allocation67_spill] sm:$0xff] %v6315_v3  ;;  %v6317_v13 = vpop.f32.mrb[78].mxu0 }
 0x2bc   : > { %8015 = vst [vmem:[#allocation68_spill] sm:$0xff] %v6317_v13  ;;  %v6319_v23 = vpop.f32.mrb[79].mxu0 }
 0x2bd   : > { %8016 = vst [vmem:[#allocation69_spill] sm:$0xff] %v6319_v23 }
 0x2c1   : > { %v6321_v10 = vpop.f32.mrb[80].mxu0 }
 0x2c2   : > { %8017 = vst [vmem:[#allocation70_spill] sm:$0xff] %v6321_v10  ;;  %v6323_v30 = vpop.f32.mrb[81].mxu0 }
 0x2c3   : > { %8018 = vst [vmem:[#allocation71_spill] sm:$0xff] %v6323_v30  ;;  %v6325_v55 = vpop.f32.mrb[82].mxu0 }
 0x2c4   : > { %8019 = vst [vmem:[#allocation72_spill] sm:$0xff] %v6325_v55  ;;  %v6327_v37 = vpop.f32.mrb[83].mxu0 }
 0x2c5   : > { %8020 = vst [vmem:[#allocation73_spill] sm:$0xff] %v6327_v37 }
 0x2c9   : > { %v6329_v32 = vpop.f32.mrb[84].mxu0 }
 0x2ca   : > { %8021 = vst [vmem:[#allocation74_spill] sm:$0xff] %v6329_v32  ;;  %v6331_v58 = vpop.f32.mrb[85].mxu0 }
 0x2cb   : > { %8022 = vst [vmem:[#allocation75_spill] sm:$0xff] %v6331_v58  ;;  %v6333_v59 = vpop.f32.mrb[86].mxu0 }
 0x2cc   : > { %8023 = vst [vmem:[#allocation76_spill] sm:$0xff] %v6333_v59  ;;  %v6335_v1 = vpop.f32.mrb[87].mxu0 }
 0x2cd   : > { %8024 = vst [vmem:[#allocation77_spill] sm:$0xff] %v6335_v1 }
 0x2d1   : > { %v6337_v3 = vpop.f32.mrb[88].mxu0 }
 0x2d2   : > { %8025 = vst [vmem:[#allocation78_spill] sm:$0xff] %v6337_v3  ;;  %v6339_v13 = vpop.f32.mrb[89].mxu0 }
 0x2d3   : > { %8026 = vst [vmem:[#allocation79_spill] sm:$0xff] %v6339_v13  ;;  %v6341_v23 = vpop.f32.mrb[90].mxu0  ;;  %v6361_v13 = vpop.f32.mrb[0].mxu1 }
 0x2d4   : > { %8027 = vst [vmem:[#allocation80_spill] sm:$0xff] %v6341_v23  ;;  %v6343_v10 = vpop.f32.mrb[91].mxu0 }
 0x2d5   : > { %8028 = vst [vmem:[#allocation81_spill] sm:$0xff] %v6343_v10  ;;  %v6365_v10 = vpop.f32.mrb[1].mxu1 }
 0x2d9   : > { %v6345_v30 = vpop.f32.mrb[92].mxu0 }
 0x2da   : > { %8029 = vst [vmem:[#allocation82_spill] sm:$0xff] %v6345_v30  ;;  %v6347_v55 = vpop.f32.mrb[93].mxu0 }
 0x2db   : > { %8030 = vst [vmem:[#allocation83_spill] sm:$0xff] %v6347_v55  ;;  %v6349_v37 = vpop.f32.mrb[94].mxu0 }
 0x2dc   : > { %8031 = vst [vmem:[#allocation84_spill] sm:$0xff] %v6349_v37  ;;  %v6351_v32 = vpop.f32.mrb[95].mxu0 }
 0x2dd   : > { %8032 = vst [vmem:[#allocation85_spill] sm:$0xff] %v6351_v32  ;;  %v6373_v32 = vpop.f32.mrb[2].mxu1 }
 0x2e1   : > { %v6353_v58 = vpop.f32.mrb[96].mxu0 }
 0x2e2   : > { %8033 = vst [vmem:[#allocation86_spill] sm:$0xff] %v6353_v58  ;;  %v6355_v59 = vpop.f32.mrb[97].mxu0 }
 0x2e3   : > { %8034 = vst [vmem:[#allocation87_spill] sm:$0xff] %v6355_v59  ;;  %v6357_v1 = vpop.f32.mrb[98].mxu0  ;;  %v6377_v59 = vpop.f32.mrb[3].mxu1 }
 0x2e4   : > { %8035 = vst [vmem:[#allocation88_spill] sm:$0xff] %v6357_v1  ;;  %v6359_v3 = vpop.f32.mrb[99].mxu0 }
 0x2e5   : > { %8036 = vst [vmem:[#allocation89_spill] sm:$0xff] %v6359_v3 }
 0x2e9   : > { %v6363_v23 = vpop.f32.mrb[100].mxu0 }
 0x2ea   : > { %8037 = vst [vmem:[#allocation90_spill] sm:$0xff] %v6363_v23  ;;  %v6367_v30 = vpop.f32.mrb[101].mxu0  ;;  %v6385_v23 = vpop.f32.mrb[4].mxu1 }
 0x2eb   : > { %8038 = vst [vmem:[#allocation91_spill] sm:$0xff] %v6367_v30  ;;  %v6369_v55 = vpop.f32.mrb[102].mxu0  ;;  %v6389_v30 = vpop.f32.mrb[5].mxu1 }
 0x2ec   : > { %8039 = vst [vmem:[#allocation92_spill] sm:$0xff] %v6369_v55  ;;  %v6371_v37 = vpop.f32.mrb[103].mxu0 }
 0x2ed   : > { %8040 = vst [vmem:[#allocation93_spill] sm:$0xff] %v6371_v37 }
 0x2f1   : > { %v6375_v58 = vpop.f32.mrb[104].mxu0 }
 0x2f2   : > { %8041 = vst [vmem:[#allocation94_spill] sm:$0xff] %v6375_v58  ;;  %v6379_v1 = vpop.f32.mrb[105].mxu0  ;;  %v6397_v58 = vpop.f32.mrb[6].mxu1 }
 0x2f3   : > { %8042 = vst [vmem:[#allocation95_spill] sm:$0xff] %v6379_v1  ;;  %v6381_v3 = vpop.f32.mrb[106].mxu0  ;;  %v6401_v1 = vpop.f32.mrb[7].mxu1 }
 0x2f4   : > { %8043 = vst [vmem:[#allocation96_spill] sm:$0xff] %v6381_v3  ;;  %v6383_v0 = vpop.f32.mrb[107].mxu0 }
 0x2f5   : > { %8044 = vst [vmem:[#allocation97_spill] sm:$0xff] %v6383_v0 }
 0x2f9   : > { %v6387_v54 = vpop.f32.mrb[108].mxu0 }
 0x2fa   : > { %8045 = vst [vmem:[#allocation98_spill] sm:$0xff] %v6387_v54  ;;  %v6391_v55 = vpop.f32.mrb[109].mxu0  ;;  %v6409_v54 = vpop.f32.mrb[8].mxu1 }
 0x2fb   : > { %8046 = vst [vmem:[#allocation99_spill] sm:$0xff] %v6391_v55  ;;  %v6393_v37 = vpop.f32.mrb[110].mxu0  ;;  %v6413_v55 = vpop.f32.mrb[9].mxu1 }
 0x2fc   : > { %8047 = vst [vmem:[#allocation100_spill] sm:$0xff] %v6393_v37  ;;  %v6395_v49 = vpop.f32.mrb[111].mxu0 }
 0x2fd   : > { %8048 = vst [vmem:[#allocation101_spill] sm:$0xff] %v6395_v49 }
 0x301   : > { %v6399_v46 = vpop.f32.mrb[112].mxu0 }
 0x302   : > { %8049 = vst [vmem:[#allocation102_spill] sm:$0xff] %v6399_v46  ;;  %v6403_v3 = vpop.f32.mrb[113].mxu0  ;;  %v6421_v46 = vpop.f32.mrb[10].mxu1 }
 0x303   : > { %8050 = vst [vmem:[#allocation103_spill] sm:$0xff] %v6403_v3  ;;  %v6405_v0 = vpop.f32.mrb[114].mxu0  ;;  %v6425_v3 = vpop.f32.mrb[11].mxu1 }
 0x304   : > { %8051 = vst [vmem:[#allocation104_spill] sm:$0xff] %v6405_v0  ;;  %v6407_v35 = vpop.f32.mrb[115].mxu0 }
 0x305   : > { %8052 = vst [vmem:[#allocation105_spill] sm:$0xff] %v6407_v35 }
 0x309   : > { %v6411_v25 = vpop.f32.mrb[116].mxu0 }
 0x30a   : > { %8053 = vst [vmem:[#allocation106_spill] sm:$0xff] %v6411_v25  ;;  %v6415_v37 = vpop.f32.mrb[117].mxu0  ;;  %v6433_v25 = vpop.f32.mrb[12].mxu1 }
 0x30b   : > { %8054 = vst [vmem:[#allocation107_spill] sm:$0xff] %v6415_v37  ;;  %v6417_v49 = vpop.f32.mrb[118].mxu0  ;;  %v6437_v37 = vpop.f32.mrb[13].mxu1 }
 0x30c   : > { %8055 = vst [vmem:[#allocation108_spill] sm:$0xff] %v6417_v49  ;;  %v6419_v16 = vpop.f32.mrb[119].mxu0 }
 0x30d   : > { %8056 = vst [vmem:[#allocation109_spill] sm:$0xff] %v6419_v16 }
 0x311   : > { %v6423_v15 = vpop.f32.mrb[120].mxu0 }
 0x312   : > { %8057 = vst [vmem:[#allocation110_spill] sm:$0xff] %v6423_v15  ;;  %v6427_v0 = vpop.f32.mrb[121].mxu0 }
 0x313   : > { %8058 = vst [vmem:[#allocation111_spill] sm:$0xff] %v6427_v0  ;;  %v6429_v35 = vpop.f32.mrb[122].mxu0  ;;  %v6448_v0 = vld [vmem:[%s7939_s6] ss:$0 sm:$0xff] }
 0x314   : > { %8059 = vst [vmem:[#allocation112_spill] sm:$0xff] %v6429_v35  ;;  %v6431_v14 = vpop.f32.mrb[123].mxu0  ;;  %v6450_v35 = vpop.f32.mrb[14].mxu1 }
 0x315   : > { %8060 = vst [vmem:[#allocation113_spill] sm:$0xff] %v6431_v14  ;;  %v6458_v15 = vpop.f32.mrb[15].mxu1 }
 0x319   : > { %v6435_v11 = vpop.f32.mrb[124].mxu0 }
 0x31a   : > { %8061 = vst [vmem:[#allocation114_spill] sm:$0xff] %v6435_v11  ;;  %v6439_v49 = vpop.f32.mrb[125].mxu0  ;;  %v4020_v11 = vld [vmem:[%s7942_s9] sm:$0xff] }
 0x31b   : > { %8062 = vst [vmem:[#allocation115_spill] sm:$0xff] %v6439_v49  ;;  %v6441_v16 = vpop.f32.mrb[126].mxu0  ;;  %v4021_v49 = vld [vmem:[%s7942_s9 + $0x8] sm:$0xff] }
 0x31c   : > { %8063 = vst [vmem:[#allocation116_spill] sm:$0xff] %v6441_v16  ;;  %v6443_v6 = vpop.f32.mrb[127].mxu0  ;;  %v5096_v5 = vpack.c.bf16 %v4021_v49, %v4020_v11  ;;  %v5099_v11 = vpack.c.bf16 %v4023_v61, %v4022_v62 }
 0x31d   : > { %8064 = vst [vmem:[#allocation117_spill] sm:$0xff] %v6443_v6 }
 0x321   : > { %v4989_v14 = vpop.f32.mrb[128].mxu0 }
 0x322   : > { %v2595_v16 = vpop.f32.mrb[129].mxu0  ;;  %v2601_v4 = vadd.f32 %v4989_v14, %v6448_v0  ;;  %v6471_v14 = vpop.f32.mrb[16].mxu1 }
 0x323   : > { %v2596_v6 = vadd.f32 %v6448_v0, %v2595_v16  ;;  %v8065_v16 = vmov 0.0   ;;  %v6480_v28 = vpop.f32.mrb[17].mxu1 }
 0x325   : > { %v2914_v2 = vmax.f32 %v2596_v6, 0.0  ;;  %v4992_v63 = vpop.f32.mrb[130].mxu0  ;;  %v2915_v6 = vmax.f32 %v2601_v4, 0.0 }
 0x326   : > { %v2605_v52 = vpop.f32.mrb[131].mxu0  ;;  %v2611_v62 = vadd.f32 %v4992_v63, %v6448_v0  ;;  %v6495_v63 = vpop.f32.mrb[18].mxu1 }
 0x327   : > { %4840 = vmatmul.mubr.msk.f32.vlgmr.msra.gmra.mrb[46].mxu1 %vm2994_vm3, %v2914_v2  ;;  %v2606_v44 = vadd.f32 %v6448_v0, %v2605_v52  ;;  %v4025_v2 = vld [vmem:[%s7942_s9 + $0x28] sm:$0xff]  ;;  %v6504_v12 = vpop.f32.mrb[19].mxu1 }
 0x328   : > { %5097 = vmatpush1.bf16.msra.mxu1 %v5096_v5  ;;  %3257 = vmatprep.mubr.f32.mxu1 %v8065_v16  ;;  %v5102_v61 = vpack.c.bf16 %v4025_v2, %v4024_v39  ;;  %v5105_v39 = vpack.c.bf16 %v4027_v18, %v4026_v21 }
 0x329   : > { %v4995_v49 = vpop.f32.mrb[132].mxu0  ;;  %5098 = vmatprep.subr.bf16.mxu1 %v8066_v42  ;;  %v2916_v5 = vmax.f32 %v2606_v44, 0.0 }
 0x32a   : > { %v2615_v52 = vpop.f32.mrb[133].mxu0  ;;  %v2621_v21 = vadd.f32 %v4995_v49, %v6448_v0  ;;  %v6521_v49 = vpop.f32.mrb[20].mxu1 }
 0x32b   : > { %4841 = vmatmul.mubr.msk.f32.gmra.mrb[48].mxu1 %vm2994_vm3, %v2915_v6  ;;  %v2616_v6 = vadd.f32 %v6448_v0, %v2615_v52 }
 0x32c   : > { %3263 = vmatprep.mubr.f32.mxu1 %v8065_v16  ;;  %5100 = vmatpush1.bf16.msra.mxu1 %v5099_v11  ;;  %v2917_v11 = vmax.f32 %v2611_v62, 0.0  ;;  %v4030_v62 = vld [vmem:[%s7942_s9 + $0x50] sm:$0xff] }
 0x32d   : > { %v4998_v4 = vpop.f32.mrb[134].mxu0  ;;  %5101 = vmatprep.subr.bf16.mxu1 %v8066_v42  ;;  %v2918_v9 = vmax.f32 %v2616_v6, 0.0  ;;  %v4031_v6 = vld [vmem:[%s7942_s9 + $0x58] sm:$0xff] }
 0x32e   : > { %v2625_v44 = vpop.f32.mrb[135].mxu0 }
 0x32f   : > { %4842 = vmatmul.mubr.msk.f32.gmra.mrb[50].mxu1 %vm2994_vm3, %v2916_v5  ;;  %v4029_v5 = vld [vmem:[%s7942_s9 + $0x48] sm:$0xff] }
 0x330   : > { %3269 = vmatprep.mubr.f32.mxu1 %v8065_v16  ;;  %5103 = vmatpush1.bf16.msra.mxu1 %v5102_v61  ;;  %v5108_v18 = vpack.c.bf16 %v4029_v5, %v4028_v17  ;;  %v5111_v17 = vpack.c.bf16 %v4031_v6, %v4030_v62  ;;  %v2631_v62 = vadd.f32 %v4998_v4, %v6448_v0 }
 0x331   : > { %v5001_v2 = vpop.f32.mrb[136].mxu0  ;;  %5104 = vmatprep.subr.bf16.mxu1 %v8066_v42 }
 0x332   : > { %v2635_v52 = vpop.f32.mrb[137].mxu0 }
 0x333   : > { %4843 = vmatmul.mubr.msk.f32.gmra.mrb[52].mxu1 %vm2994_vm3, %v2917_v11  ;;  %v2919_v11 = vmax.f32 %v2621_v21, 0.0 }
 0x334   : > { %3275 = vmatprep.mubr.f32.mxu1 %v8065_v16  ;;  %5106 = vmatpush1.bf16.msra.mxu1 %v5105_v39  ;;  %v2626_v39 = vadd.f32 %v6448_v0, %v2625_v44  ;;  %v6532_v44 = vpop.f32.mrb[21].mxu1 }
 0x335   : > { %v6509_v61 = vpop.f32.mrb[138].mxu0  ;;  %5107 = vmatprep.subr.bf16.mxu1 %v8066_v42  ;;  %v6549_v4 = vpop.f32.mrb[22].mxu1 }
 0x336   : > { %v2645_v8 = vpop.f32.mrb[139].mxu0 }
 0x337   : > { %4844 = vmatmul.mubr.msk.f32.gmra.mrb[54].mxu1 %vm2994_vm3, %v2918_v9  ;;  %v4033_v9 = vld [vmem:[%s7942_s9 + $0x68] sm:$0xff] }
 0x338   : > { %3281 = vmatprep.mubr.f32.mxu1 %v8065_v16  ;;  %5109 = vmatpush1.bf16.msra.mxu1 %v5108_v18  ;;  %v2920_v18 = vmax.f32 %v2626_v39, 0.0  ;;  %v5114_v21 = vpack.c.bf16 %v4033_v9, %v4032_v7  ;;  %v4035_v39 = vld [vmem:[%s7942_s9 + $0x78] sm:$0xff] }
 0x339   : > { %v6523_v5 = vpop.f32.mrb[140].mxu0  ;;  %5110 = vmatprep.subr.bf16.mxu1 %v8066_v42  ;;  %v5117_v7 = vpack.c.bf16 %v4035_v39, %v4034_v57  ;;  %v4038_v39 = vld [vmem:[%s7942_s9 + $0x90] sm:$0xff] }
 0x33a   : > { %v2655_v60 = vpop.f32.mrb[141].mxu0 }
 0x33b   : > { %4845 = vmatmul.mubr.msk.f32.gmra.mrb[56].mxu1 %vm2994_vm3, %v2919_v11  ;;  %v2921_v11 = vmax.f32 %v2631_v62, 0.0  ;;  %v2641_v62 = vadd.f32 %v5001_v2, %v6448_v0 }
 0x33c   : > { %3287 = vmatprep.mubr.f32.mxu1 %v8065_v16  ;;  %5112 = vmatpush1.bf16.msra.mxu1 %v5111_v17  ;;  %v2636_v17 = vadd.f32 %v6448_v0, %v2635_v52  ;;  %v6560_v52 = vpop.f32.mrb[23].mxu1 }
 0x33d   : > { %v6537_v6 = vpop.f32.mrb[142].mxu0  ;;  %5113 = vmatprep.subr.bf16.mxu1 %v8066_v42  ;;  %v2923_v2 = vmax.f32 %v2641_v62, 0.0  ;;  %v2656_v62 = vadd.f32 %v6448_v0, %v2655_v60 }
 0x33e   : > { %v2665_v56 = vpop.f32.mrb[143].mxu0 }
 0x33f   : > { %4846 = vmatmul.mubr.msk.f32.gmra.mrb[58].mxu1 %vm2994_vm3, %v2920_v18  ;;  %v4037_v18 = vld [vmem:[%s7942_s9 + $0x88] sm:$0xff] }
 0x340   : > { %3293 = vmatprep.mubr.f32.mxu1 %v8065_v16  ;;  %5115 = vmatpush1.bf16.msra.mxu1 %v5114_v21  ;;  %v2922_v21 = vmax.f32 %v2636_v17, 0.0  ;;  %v5120_v57 = vpack.c.bf16 %v4037_v18, %v4036_v50  ;;  %v2646_v17 = vadd.f32 %v6448_v0, %v2645_v8  ;;  %v5123_v50 = vpack.c.bf16 %v4039_v51, %v4038_v39  ;;  %v4041_v18 = vld [vmem:[%s7942_s9 + $0xa8] sm:$0xff] }
 0x341   : > { %v6551_v9 = vpop.f32.mrb[144].mxu0  ;;  %5116 = vmatprep.subr.bf16.mxu1 %v8066_v42 }
 0x342   : > { %v2675_v53 = vpop.f32.mrb[145].mxu0  ;;  %v2924_v8 = vmax.f32 %v2646_v17, 0.0 }
 0x343   : > { %4847 = vmatmul.mubr.msk.f32.gmra.mrb[60].mxu1 %vm2994_vm3, %v2921_v11  ;;  %v4040_v11 = vld [vmem:[%s7942_s9 + $0xa0] sm:$0xff] }
 0x344   : > { %3299 = vmatprep.mubr.f32.mxu1 %v8065_v16  ;;  %5118 = vmatpush1.bf16.msra.mxu1 %v5117_v7  ;;  %v6575_v7 = vpop.f32.mrb[24].mxu1  ;;  %v5126_v51 = vpack.c.bf16 %v4041_v18, %v4040_v11  ;;  %v2666_v18 = vadd.f32 %v6448_v0, %v2665_v56  ;;  %v2671_v56 = vadd.f32 %v6537_v6, %v6448_v0 }
 0x345   : > { %5119 = vmatprep.subr.bf16.mxu1 %v8066_v42  ;;  %v2681_v6 = vadd.f32 %v6551_v9, %v6448_v0 }
 0x347   : > { %4848 = vmatmul.mubr.msk.f32.gmra.mrb[62].mxu1 %vm2994_vm3, %v2922_v21  ;;  %v6584_v21 = vpop.f32.mrb[25].mxu1 }
 0x348   : > { %3305 = vmatprep.mubr.f32.mxu1 %v8065_v16  ;;  %5121 = vmatpush1.bf16.msra.mxu1 %v5120_v57  ;;  %v2651_v57 = vadd.f32 %v6509_v61, %v6448_v0  ;;  %v6594_v39 = vpop.f32.mrb[26].mxu1  ;;  %v2661_v61 = vadd.f32 %v6523_v5, %v6448_v0 }
 0x349   : > { %5122 = vmatprep.subr.bf16.mxu1 %v8066_v42 }
 0x34a   : > { %v2925_v17 = vmax.f32 %v2651_v57, 0.0  ;;  %v2927_v5 = vmax.f32 %v2661_v61, 0.0  ;;  %v2676_v61 = vadd.f32 %v6448_v0, %v2675_v53  ;;  %v2686_v53 = vadd.f32 %v6448_v0, %v6365_v10 }
 0x34b   : > { %4849 = vmatmul.mubr.msk.f32.gmra.mrb[64].mxu1 %vm2994_vm3, %v2923_v2  ;;  %v6596_v2 = vpop.f32.mrb[27].mxu1  ;;  %v2691_v10 = vadd.f32 %v6361_v13, %v6448_v0  ;;  %v2701_v13 = vadd.f32 %v6373_v32, %v6448_v0 }
 0x34c   : > { %3311 = vmatprep.mubr.f32.mxu1 %v8065_v16  ;;  %5124 = vmatpush1.bf16.msra.mxu1 %v5123_v50  ;;  %v2926_v50 = vmax.f32 %v2656_v62, 0.0  ;;  %v6603_v11 = vpop.f32.mrb[28].mxu1 }
 0x34d   : > { %5125 = vmatprep.subr.bf16.mxu1 %v8066_v42  ;;  %v6605_v60 = vpop.f32.mrb[29].mxu1 }
 0x34e   : > { %v6616_v62 = vpop.f32.mrb[30].mxu1 }
 0x34f   : > { %4850 = vmatmul.mubr.msk.f32.gmra.mrb[66].mxu1 %vm2994_vm3, %v2924_v8  ;;  %v4042_v8 = vld [vmem:[%s7942_s9 + $0xb0] sm:$0xff] }
 0x350   : > { %3317 = vmatprep.mubr.f32.mxu1 %v8065_v16  ;;  %5127 = vmatpush1.bf16.msra.mxu1 %v5126_v51  ;;  %v4043_v51 = vld [vmem:[%s7942_s9 + $0xb8] sm:$0xff] }
 0x351   : > { %5128 = vmatprep.subr.bf16.mxu1 %v8066_v42  ;;  %v5129_v57 = vpack.c.bf16 %v4043_v51, %v4042_v8 }
 0x353   : > { %4851 = vmatmul.mubr.msk.f32.gmra.mrb[68].mxu1 %vm2994_vm3, %v2925_v17  ;;  %v6618_v17 = vpop.f32.mrb[31].mxu1 }
 0x354   : > { %3323 = vmatprep.mubr.f32.mxu1 %v8065_v16  ;;  %5130 = vmatpush1.bf16.msra.mxu1 %v5129_v57  ;;  %v6625_v48 = vpop.f32.mrb[32].mxu1  ;;  %v2930_v57 = vmax.f32 %v2676_v61, 0.0  ;;  %v4045_v61 = vld [vmem:[%s7942_s9 + $0xc8] sm:$0xff] }
 0x355   : > { %5131 = vmatprep.subr.bf16.mxu1 %v8066_v42  ;;  %v6627_v47 = vpop.f32.mrb[33].mxu1 }
 0x356   : > { %v6632_v8 = vpop.f32.mrb[34].mxu1 }
 0x357   : > { %4852 = vmatmul.mubr.msk.f32.gmra.mrb[70].mxu1 %vm2994_vm3, %v2926_v50  ;;  %v2928_v50 = vmax.f32 %v2666_v18, 0.0  ;;  %v2929_v18 = vmax.f32 %v2671_v56, 0.0  ;;  %v6634_v51 = vpop.f32.mrb[35].mxu1  ;;  %v4044_v56 = vld [vmem:[%s7942_s9 + $0xc0] sm:$0xff] }
 0x358   : > { %3329 = vmatprep.mubr.f32.mxu1 %v8065_v16  ;;  %v5132_v9 = vpack.c.bf16 %v4045_v61, %v4044_v56 }
 0x35a   : > { %5133 = vmatpush1.bf16.msra.mxu1 %v5132_v9 }
 0x35b   : > { %4853 = vmatmul.mubr.msk.f32.gmra.mrb[72].mxu1 %vm2994_vm3, %v2927_v5  ;;  %v6640_v5 = vpop.f32.mrb[36].mxu1  ;;  %5134 = vmatprep.subr.bf16.mxu1 %v8066_v42 }
 0x35c   : > { %3335 = vmatprep.mubr.f32.mxu1 %v8065_v16 }
 0x35f   : > { %4854 = vmatmul.mubr.msk.f32.gmra.mrb[74].mxu1 %vm2994_vm3, %v2928_v50  ;;  %v6642_v50 = vpop.f32.mrb[37].mxu1 }
 0x360   : > { %3341 = vmatprep.mubr.f32.mxu1 %v8065_v16  ;;  %v6654_v45 = vpop.f32.mrb[38].mxu1 }
 0x361   : > { %v6656_v43 = vpop.f32.mrb[39].mxu1 }
 0x363   : > { %4855 = vmatmul.mubr.msk.f32.gmra.mrb[76].mxu1 %vm2994_vm3, %v2929_v18  ;;  %v2931_v18 = vmax.f32 %v2681_v6, 0.0  ;;  %v2696_v6 = vadd.f32 %v6448_v0, %v6377_v59  ;;  %v2706_v59 = vadd.f32 %v6448_v0, %v6389_v30  ;;  %v2711_v30 = vadd.f32 %v6385_v23, %v6448_v0 }
 0x364   : > { %3347 = vmatprep.mubr.f32.mxu1 %v8065_v16  ;;  %v2726_v23 = vadd.f32 %v6448_v0, %v6413_v55  ;;  %v2731_v55 = vadd.f32 %v6409_v54, %v6448_v0 }
 0x365   : > { %v2934_v9 = vmax.f32 %v2696_v6, 0.0  ;;  %v4047_v6 = vld [vmem:[%s7942_s9 + $0xd8] sm:$0xff] }
 0x367   : > { %4856 = vmatmul.mubr.msk.f32.gmra.mrb[78].mxu1 %vm2994_vm3, %v2930_v57  ;;  %v2932_v57 = vmax.f32 %v2686_v53, 0.0  ;;  %v6663_v41 = vpop.f32.mrb[40].mxu1  ;;  %v2933_v53 = vmax.f32 %v2691_v10, 0.0  ;;  %v4046_v10 = vld [vmem:[%s7942_s9 + $0xd0] sm:$0xff] }
 0x368   : > { %3353 = vmatprep.mubr.f32.mxu1 %v8065_v16  ;;  %v6665_v40 = vpop.f32.mrb[41].mxu1  ;;  %v5135_v32 = vpack.c.bf16 %v4047_v6, %v4046_v10  ;;  %v2937_v10 = vmax.f32 %v2711_v30, 0.0  ;;  %v4049_v6 = vld [vmem:[%s7942_s9 + $0xe8] sm:$0xff]  ;;  %v2941_v30 = vmax.f32 %v2731_v55, 0.0 }
 0x36a   : > { %5136 = vmatpush1.bf16.msra.mxu1 %v5135_v32  ;;  %v2940_v32 = vmax.f32 %v2726_v23, 0.0  ;;  %v2756_v23 = vadd.f32 %v6448_v0, %v6458_v15 }
 0x36b   : > { %4857 = vmatmul.mubr.msk.f32.gmra.mrb[80].mxu1 %vm2994_vm3, %v2931_v18  ;;  %v6671_v56 = vpop.f32.mrb[42].mxu1  ;;  %5137 = vmatprep.subr.bf16.mxu1 %v8066_v42 }
 0x36c   : > { %3359 = vmatprep.mubr.f32.mxu1 %v8065_v16  ;;  %v6673_v61 = vpop.f32.mrb[43].mxu1 }
 0x36f   : > { %4858 = vmatmul.mubr.msk.f32.gmra.mrb[82].mxu1 %vm2994_vm3, %v2932_v57  ;;  %v6679_v18 = vpop.f32.mrb[44].mxu1 }
 0x370   : > { %3365 = vmatprep.mubr.f32.mxu1 %v8065_v16  ;;  %8067 = vst [vmem:[#allocation118_spill] sm:$0xff] %v6679_v18  ;;  %v6681_v57 = vpop.f32.mrb[45].mxu1  ;;  %v2936_v18 = vmax.f32 %v2706_v59, 0.0  ;;  %v2721_v59 = vadd.f32 %v6397_v58, %v6448_v0 }
 0x373   : > { %4859 = vmatmul.mubr.msk.f32.gmra.mrb[84].mxu1 %vm2994_vm3, %v2933_v53  ;;  %v2935_v53 = vmax.f32 %v2701_v13, 0.0 }
 0x374   : > { %3371 = vmatprep.mubr.f32.mxu1 %v8065_v16 }
 0x377   : > { %4860 = vmatmul.mubr.msk.f32.gmra.mrb[86].mxu1 %vm2994_vm3, %v2934_v9  ;;  %v2716_v9 = vadd.f32 %v6448_v0, %v6401_v1  ;;  %v4048_v1 = vld [vmem:[%s7942_s9 + $0xe0] sm:$0xff] }
 0x378   : > { %3377 = vmatprep.mubr.f32.mxu1 %v8065_v16  ;;  %v5138_v58 = vpack.c.bf16 %v4049_v6, %v4048_v1  ;;  %v2946_v1 = vmax.f32 %v2756_v23, 0.0  ;;  %v2761_v6 = vadd.f32 %v6450_v35, %v6448_v0  ;;  %v2776_v35 = vadd.f32 %v6448_v0, %v6504_v12 }
 0x379   : > { %v2938_v13 = vmax.f32 %v2716_v9, 0.0  ;;  %v2836_v23 = vadd.f32 %v6448_v0, %v6618_v17  ;;  %v2851_v17 = vadd.f32 %v6625_v48, %v6448_v0 }
 0x37a   : > { %5139 = vmatpush1.bf16.msra.mxu1 %v5138_v58  ;;  %v2771_v58 = vadd.f32 %v6471_v14, %v6448_v0  ;;  %v2786_v14 = vadd.f32 %v6448_v0, %v6532_v44 }
 0x37b   : > { %4861 = vmatmul.mubr.msk.f32.gmra.mrb[88].mxu1 %vm2994_vm3, %v2935_v53  ;;  %5140 = vmatprep.subr.bf16.mxu1 %v8066_v42  ;;  %v2736_v53 = vadd.f32 %v6448_v0, %v6425_v3  ;;  %v2746_v42 = vadd.f32 %v6448_v0, %v6437_v37  ;;  %v4050_v3 = vld [vmem:[%s7942_s9 + $0xf0] sm:$0xff]  ;;  %v2751_v37 = vadd.f32 %v6433_v25, %v6448_v0 }
 0x37c   : > { %3383 = vmatprep.mubr.f32.mxu1 %v8065_v16  ;;  %v2766_v25 = vadd.f32 %v6448_v0, %v6480_v28  ;;  %v2949_v55 = vmax.f32 %v2771_v58, 0.0  ;;  %v2950_v28 = vmax.f32 %v2776_v35, 0.0  ;;  %v2952_v12 = vmax.f32 %v2786_v14, 0.0 }
 0x37d   : > { %v2942_v9 = vmax.f32 %v2736_v53, 0.0  ;;  %v2781_v53 = vadd.f32 %v6495_v63, %v6448_v0  ;;  %v2796_v63 = vadd.f32 %v6448_v0, %v6560_v52  ;;  %v2856_v35 = vadd.f32 %v6448_v0, %v6634_v51 }
 0x37e   : > { %v2948_v15 = vmax.f32 %v2766_v25, 0.0 }
 0x37f   : > { %4862 = vmatmul.mubr.msk.f32.gmra.mrb[90].mxu1 %vm2994_vm3, %v2936_v18  ;;  %v2939_v18 = vmax.f32 %v2721_v59, 0.0  ;;  %v2944_v59 = vmax.f32 %v2746_v42, 0.0  ;;  %v2954_v44 = vmax.f32 %v2796_v63, 0.0  ;;  %v2801_v42 = vadd.f32 %v6549_v4, %v6448_v0 }
 0x380   : > { %3389 = vmatprep.mubr.f32.mxu1 %v8065_v16  ;;  %v2816_v4 = vadd.f32 %v6448_v0, %v6596_v2  ;;  %v2831_v2 = vadd.f32 %v6603_v11, %v6448_v0  ;;  %v2966_v14 = vmax.f32 %v2856_v35, 0.0 }
 0x383   : > { %4863 = vmatmul.mubr.msk.f32.gmra.mrb[92].mxu1 %vm2994_vm3, %v2937_v10  ;;  %v2741_v10 = vadd.f32 %v6421_v46, %v6448_v0 }
 0x384   : > { %3395 = vmatprep.mubr.f32.mxu1 %v8065_v16 }
 0x385   : > { %v2943_v54 = vmax.f32 %v2741_v10, 0.0 }
 0x387   : > { %4864 = vmatmul.mubr.msk.f32.gmra.mrb[94].mxu1 %vm2994_vm3, %v2938_v13  ;;  %v4051_v13 = vld [vmem:[%s7942_s9 + $0xf8] sm:$0xff] }
 0x388   : > { %3401 = vmatprep.mubr.f32.mxu1 %v8065_v16  ;;  %v5141_v46 = vpack.c.bf16 %v4051_v13, %v4050_v3  ;;  %v2811_v3 = vadd.f32 %v6575_v7, %v6448_v0 }
 0x38a   : > { %5142 = vmatpush1.bf16.msra.mxu1 %v5141_v46  ;;  %v2957_v13 = vmax.f32 %v2811_v3, 0.0  ;;  %v2826_v46 = vadd.f32 %v6448_v0, %v6605_v60  ;;  %v2841_v60 = vadd.f32 %v6616_v62, %v6448_v0 }
 0x38b   : > { %4865 = vmatmul.mubr.msk.f32.gmra.mrb[96].mxu1 %vm2994_vm3, %v2939_v18  ;;  %v2945_v18 = vmax.f32 %v2751_v37, 0.0 }
 0x38c   : > { %3407 = vmatprep.mubr.f32.mxu1 %v8065_v16  ;;  %v2960_v37 = vmax.f32 %v2826_v46, 0.0  ;;  %v2963_v11 = vmax.f32 %v2841_v60, 0.0 }
 0x38f   : > { %4866 = vmatmul.mubr.msk.f32.gmra.mrb[98].mxu1 %vm2994_vm3, %v2940_v32  ;;  %v2947_v32 = vmax.f32 %v2761_v6, 0.0  ;;  %v2846_v6 = vadd.f32 %v6448_v0, %v6627_v47  ;;  %v2965_v47 = vmax.f32 %v2851_v17, 0.0  ;;  %v2881_v17 = vadd.f32 %v6654_v45, %v6448_v0 }
 0x390   : > { %3413 = vmatprep.mubr.f32.mxu1 %v8065_v16 }
 0x393   : > { %4867 = vmatmul.mubr.msk.f32.gmra.mrb[100].mxu1 %vm2994_vm3, %v2941_v30  ;;  %v2951_v30 = vmax.f32 %v2781_v53, 0.0  ;;  %v2861_v53 = vadd.f32 %v6632_v8, %v6448_v0 }
 0x394   : > { %3419 = vmatprep.mubr.f32.mxu1 %v8065_v16 }
 0x395   : > { %v2967_v63 = vmax.f32 %v2861_v53, 0.0 }
 0x397   : > { %4868 = vmatmul.mubr.msk.f32.gmra.mrb[102].mxu1 %vm2994_vm3, %v2942_v9  ;;  %v2791_v9 = vadd.f32 %v6521_v49, %v6448_v0  ;;  %v2806_v49 = vadd.f32 %v6448_v0, %v6584_v21  ;;  %v2958_v21 = vmax.f32 %v2816_v4, 0.0 }
 0x398   : > { %3425 = vmatprep.mubr.f32.mxu1 %v8065_v16 }
 0x399   : > { %v2953_v10 = vmax.f32 %v2791_v9, 0.0  ;;  %v2956_v52 = vmax.f32 %v2806_v49, 0.0 }
 0x39b   : > { %4869 = vmatmul.mubr.msk.f32.gmra.mrb[104].mxu1 %vm2994_vm3, %v2943_v54  ;;  %v2955_v54 = vmax.f32 %v2801_v42, 0.0 }
 0x39c   : > { %3431 = vmatprep.mubr.f32.mxu1 %v8065_v16 }
 0x39f   : > { %4870 = vmatmul.mubr.msk.f32.gmra.mrb[106].mxu1 %vm2994_vm3, %v2944_v59  ;;  %v2821_v59 = vadd.f32 %v6594_v39, %v6448_v0  ;;  %v2961_v39 = vmax.f32 %v2831_v2, 0.0 }
 0x3a0   : > { %3437 = vmatprep.mubr.f32.mxu1 %v8065_v16 }
 0x3a1   : > { %v2959_v7 = vmax.f32 %v2821_v59, 0.0 }
 0x3a3   : > { %4871 = vmatmul.mubr.msk.f32.gmra.mrb[108].mxu1 %vm2994_vm3, %v2945_v18  ;;  %v2962_v18 = vmax.f32 %v2836_v23, 0.0 }
 0x3a4   : > { %3443 = vmatprep.mubr.f32.mxu1 %v8065_v16 }
 0x3a7   : > { %4872 = vmatmul.mubr.msk.f32.gmra.mrb[110].mxu1 %vm2994_vm3, %v2946_v1  ;;  %v615_v1 = vlaneseq }
 0x3a8   : > { %3449 = vmatprep.mubr.f32.mxu1 %v8065_v16 }
 0x3a9   : > { %v616_v25 = vshrl.u32 %v615_v1, 7 }
 0x3ab   : > { %4873 = vmatmul.mubr.msk.f32.gmra.mrb[112].mxu1 %vm2994_vm3, %v2947_v32  ;;  %v2964_v32 = vmax.f32 %v2846_v6, 0.0  ;;  %v617_v62 = vsub.s32 0, %v616_v25  ;;  %v621_v58 = vsub.s32 1, %v616_v25 }
 0x3ac   : > { %3455 = vmatprep.mubr.f32.mxu1 %v8065_v16 }
 0x3af   : > { %4874 = vmatmul.mubr.msk.f32.gmra.mrb[114].mxu1 %vm2994_vm3, %v2948_v15  ;;  %v613_v15 = vld [vmem:[%s7937_s4] sm:$0x3] }
 0x3b0   : > { %3461 = vmatprep.mubr.f32.mxu1 %v8065_v16  ;;  %v6833_v48 = vrot.slane %v613_v15, %v621_v58 }
 0x3b2   : > { %v5154_v2 = vadd.f32 %v6030_v27, %v6833_v48  ;;  %v5156_v25 = vadd.f32 %v6036_v31, %v6833_v48  ;;  %v5158_v53 = vadd.f32 %v6045_v34, %v6833_v48 }
 0x3b3   : > { %4875 = vmatmul.mubr.msk.f32.gmra.mrb[116].mxu1 %vm2994_vm3, %v2949_v55  ;;  %v6830_v55 = vrot.slane %v613_v15, %v617_v62 }
 0x3b4   : > { %3467 = vmatprep.mubr.f32.mxu1 %v8065_v16  ;;  %v2133_v6 = vmax.f32 %v5154_v2, 0.0  ;;  %v2896_v2 = vadd.f32 %v6448_v0, %v6673_v61 }
 0x3b5   : > { %v5153_v59 = vadd.f32 %v6028_v26, %v6830_v55  ;;  %v5155_v1 = vadd.f32 %v6033_v29, %v6830_v55 }
 0x3b7   : > { %4876 = vmatmul.mubr.msk.f32.gmra.mrb[118].mxu1 %vm2994_vm3, %v2950_v28  ;;  %v2982_v28 = vld [vmem:[%s7941_s8] sm:$0x3] }
 0x3b8   : > { %3473 = vmatprep.mubr.f32.mxu1 %v8065_v16  ;;  %v6844_v51 = vrot.slane %v2982_v28, %v617_v62  ;;  %v6849_v9 = vrot.slane %v2982_v28, %v621_v58  ;;  %v2134_v58 = vmax.f32 %v5155_v1, 0.0  ;;  %v2135_v28 = vmax.f32 %v5156_v25, 0.0  ;;  %v8071_v25 = vld [vmem:[#allocation5_spill] sm:$0xff] }
 0x3bb   : > { %4877 = vmatmul.mubr.msk.f32.gmra.mrb[120].mxu1 %vm2994_vm3, %v2951_v30  ;;  %v5149_v30 = vadd.f32 %v6013_v19, %v6830_v55  ;;  %v5151_v19 = vadd.f32 %v6018_v22, %v6830_v55 }
 0x3bc   : > { %3479 = vmatprep.mubr.f32.mxu1 %v8065_v16 }
 0x3bf   : > { %4878 = vmatmul.mubr.msk.f32.gmra.mrb[122].mxu1 %vm2994_vm3, %v2952_v12  ;;  %v5150_v12 = vadd.f32 %v6015_v20, %v6833_v48  ;;  %v5152_v20 = vadd.f32 %v6021_v24, %v6833_v48 }
 0x3c0   : > { %3485 = vmatprep.mubr.f32.mxu1 %v8065_v16 }
 0x3c1   : > { %v2131_v46 = vmax.f32 %v5152_v20, 0.0 }
 0x3c3   : > { %4879 = vmatmul.mubr.msk.f32.gmra.mrb[124].mxu1 %vm2994_vm3, %v2953_v10  ;;  %v2866_v10 = vadd.f32 %v6448_v0, %v6642_v50  ;;  %v2871_v50 = vadd.f32 %v6640_v5, %v6448_v0 }
 0x3c4   : > { %3491 = vmatprep.mubr.f32.mxu1 %v8065_v16 }
 0x3c5   : > { %v2968_v3 = vmax.f32 %v2866_v10, 0.0 }
 0x3c7   : > { %4880 = vmatmul.mubr.msk.f32.gmra.mrb[126].mxu1 %vm2994_vm3, %v2954_v44  ;;  %v2128_v44 = vmax.f32 %v5149_v30, 0.0  ;;  %v2886_v30 = vadd.f32 %v6448_v0, %v6665_v40 }
 0x3c8   : > { %3497 = vmatprep.mubr.f32.mxu1 %v8065_v16 }
 0x3cb   : > { %4881 = vmatmul.mubr.msk.f32.gmra.mrb[128].mxu1 %vm2994_vm3, %v2955_v54  ;;  %v2129_v54 = vmax.f32 %v5150_v12, 0.0 }
 0x3cc   : > { %3503 = vmatprep.mubr.f32.mxu1 %v8065_v16 }
 0x3cf   : > { %4882 = vmatmul.mubr.msk.f32.gmra.mrb[130].mxu1 %vm2994_vm3, %v2956_v52 }
 0x3d0   : > { %3509 = vmatprep.mubr.f32.mxu1 %v8065_v16 }
 0x3d3   : > { %4883 = vmatmul.mubr.msk.f32.gmra.mrb[132].mxu1 %vm2994_vm3, %v2957_v13 }
 0x3d4   : > { %3515 = vmatprep.mubr.f32.mxu1 %v8065_v16 }
 0x3d7   : > { %4884 = vmatmul.mubr.msk.f32.gmra.mrb[134].mxu1 %vm2994_vm3, %v2958_v21  ;;  %v2130_v21 = vmax.f32 %v5151_v19, 0.0  ;;  %v2137_v19 = vmax.f32 %v5158_v53, 0.0 }
 0x3d8   : > { %3521 = vmatprep.mubr.f32.mxu1 %v8065_v16 }
 0x3db   : > { %4885 = vmatmul.mubr.msk.f32.gmra.mrb[136].mxu1 %vm2994_vm3, %v2959_v7 }
 0x3dc   : > { %3527 = vmatprep.mubr.f32.mxu1 %v8065_v16 }
 0x3df   : > { %4886 = vmatmul.mubr.msk.f32.gmra.mrb[138].mxu1 %vm2994_vm3, %v2960_v37  ;;  %v2969_v37 = vmax.f32 %v2871_v50, 0.0 }
 0x3e0   : > { %3533 = vmatprep.mubr.f32.mxu1 %v8065_v16 }
 0x3e3   : > { %4887 = vmatmul.mubr.msk.f32.gmra.mrb[140].mxu1 %vm2994_vm3, %v2961_v39  ;;  %v2876_v39 = vadd.f32 %v6448_v0, %v6656_v43 }
 0x3e4   : > { %3539 = vmatprep.mubr.f32.mxu1 %v8065_v16 }
 0x3e7   : > { %4888 = vmatmul.mubr.msk.f32.gmra.mrb[142].mxu1 %vm2994_vm3, %v2962_v18  ;;  %v2132_v18 = vmax.f32 %v5153_v59, 0.0 }
 0x3e8   : > { %3545 = vmatprep.mubr.f32.mxu1 %v8065_v16 }
 0x3eb   : > { %4889 = vmatmul.mubr.msk.f32.gmra.mrb[144].mxu1 %vm2994_vm3, %v2963_v11 }
 0x3ec   : > { %3551 = vmatprep.mubr.f32.mxu1 %v8065_v16 }
 0x3ef   : > { %4890 = vmatmul.mubr.msk.f32.gmra.mrb[146].mxu1 %vm2994_vm3, %v2964_v32  ;;  %v2970_v32 = vmax.f32 %v2876_v39, 0.0 }
 0x3f0   : > { %3557 = vmatprep.mubr.f32.mxu1 %v8065_v16 }
 0x3f3   : > { %4891 = vmatmul.mubr.msk.f32.gmra.mrb[148].mxu1 %vm2994_vm3, %v2965_v47  ;;  %v5157_v47 = vadd.f32 %v6043_v33, %v6830_v55 }
 0x3f4   : > { %3563 = vmatprep.mubr.f32.mxu1 %v8065_v16 }
 0x3f5   : > { %v2136_v10 = vmax.f32 %v5157_v47, 0.0 }
 0x3f7   : > { %4892 = vmatmul.mubr.msk.f32.gmra.mrb[150].mxu1 %vm2994_vm3, %v2966_v14  ;;  %v2971_v14 = vmax.f32 %v2881_v17, 0.0  ;;  %v2901_v17 = vadd.f32 %v6671_v56, %v6448_v0 }
 0x3f8   : > { %3569 = vmatprep.mubr.f32.mxu1 %v8065_v16 }
 0x3fa   : > { %v3253_v8 = vpop.f32.mrb[46].mxu1 }
 0x3fb   : > { %v3254_v42 = vadd.f32 %v3253_v8, %v6844_v51  ;;  %v3255_v49 = vpop.f32.mrb[47].mxu1  ;;  %4893 = vmatmul.mubr.msk.f32.gmra.mrb[152].mxu1 %vm2994_vm3, %v2967_v63  ;;  %v5159_v8 = vadd.f32 %v6048_v36, %v6830_v55 }
 0x3fc   : > { %v3256_v52 = vadd.f32 %v3255_v49, %v6849_v9  ;;  %3575 = vmatprep.mubr.f32.mxu1 %v8065_v16  ;;  %v2891_v49 = vadd.f32 %v6663_v41, %v6448_v0 }
 0x3fd   : > { %v6863_v4 = vmul.f32 %v3254_v42, %v2128_v44  ;;  %v5160_v42 = vadd.f32 %v6051_v38, %v6833_v48  ;;  %v2138_v50 = vmax.f32 %v5159_v8, 0.0  ;;  %v2906_v8 = vadd.f32 %v6448_v0, %v6681_v57 }
 0x3fe   : > { %v6865_v22 = vmul.f32 %v3256_v52, %v2129_v54  ;;  %v3259_v13 = vpop.f32.mrb[48].mxu1  ;;  %v2972_v54 = vmax.f32 %v2886_v30, 0.0  ;;  %v8073_v30 = vld [vmem:[#allocation7_spill] sm:$0xff] }
 0x3ff   : > { %v3260_v7 = vadd.f32 %v3259_v13, %v6844_v51  ;;  %v3261_v24 = vpop.f32.mrb[49].mxu1  ;;  %4894 = vmatmul.mubr.msk.f32.gmra.mrb[154].mxu1 %vm2994_vm3, %v2968_v3  ;;  %v8068_v3 = vld [vmem:[#allocation2_spill] sm:$0xff]  ;;  %v2139_v59 = vmax.f32 %v5160_v42, 0.0  ;;  %v5166_v56 = vadd.f32 %v8073_v30, %v6833_v48  ;;  %v8080_v30 = vld [vmem:[#allocation13_spill] sm:$0xff] }
 0x400   : > { %v3262_v5 = vadd.f32 %v3261_v24, %v6849_v9  ;;  %3581 = vmatprep.mubr.f32.mxu1 %v8065_v16  ;;  %v5161_v13 = vadd.f32 %v8068_v3, %v6830_v55  ;;  %v8075_v3 = vld [vmem:[#allocation9_spill] sm:$0xff] }
 0x401   : > { %v6877_v23 = vmul.f32 %v3260_v7, %v2130_v21  ;;  %v8069_v7 = vld [vmem:[#allocation3_spill] sm:$0xff] }
 0x402   : > { %v6879_v26 = vmul.f32 %v3262_v5, %v2131_v46  ;;  %v3265_v60 = vpop.f32.mrb[50].mxu1  ;;  %v5162_v24 = vadd.f32 %v8069_v7, %v6833_v48  ;;  %v2973_v46 = vmax.f32 %v2891_v49, 0.0 }
 0x403   : > { %v3266_v11 = vadd.f32 %v3265_v60, %v6844_v51  ;;  %v3267_v27 = vpop.f32.mrb[51].mxu1  ;;  %4895 = vmatmul.mubr.msk.f32.gmra.mrb[156].mxu1 %vm2994_vm3, %v2969_v37  ;;  %v2140_v60 = vmax.f32 %v5161_v13, 0.0  ;;  %v5168_v13 = vadd.f32 %v8075_v3, %v6833_v48 }
 0x404   : > { %v3268_v43 = vadd.f32 %v3267_v27, %v6849_v9  ;;  %3587 = vmatprep.mubr.f32.mxu1 %v8065_v16 }
 0x405   : > { %v6891_v62 = vmul.f32 %v3266_v11, %v2132_v18  ;;  %v8070_v18 = vld [vmem:[#allocation4_spill] sm:$0xff] }
 0x406   : > { %v6893_v29 = vmul.f32 %v3268_v43, %v2133_v6  ;;  %v3271_v15 = vpop.f32.mrb[52].mxu1  ;;  %v5163_v1 = vadd.f32 %v8070_v18, %v6830_v55  ;;  %v2141_v6 = vmax.f32 %v5162_v24, 0.0  ;;  %v5164_v43 = vadd.f32 %v8071_v25, %v6833_v48 }
 0x407   : > { %v3272_v35 = vadd.f32 %v3271_v15, %v6844_v51  ;;  %v3273_v31 = vpop.f32.mrb[53].mxu1  ;;  %4896 = vmatmul.mubr.msk.f32.gmra.mrb[158].mxu1 %vm2994_vm3, %v2970_v32  ;;  %v2974_v32 = vmax.f32 %v2896_v2, 0.0  ;;  %v8077_v2 = vld [vmem:[#allocation10_spill] sm:$0xff] }
 0x408   : > { %v3274_v45 = vadd.f32 %v3273_v31, %v6849_v9  ;;  %3593 = vmatprep.mubr.f32.mxu1 %v8065_v16  ;;  %v8072_v31 = vld [vmem:[#allocation6_spill] sm:$0xff] }
 0x409   : > { %v6905_v12 = vmul.f32 %v3272_v35, %v2134_v58  ;;  %v2142_v35 = vmax.f32 %v5163_v1, 0.0  ;;  %v3765_v1 = vld [vmem:[%s6975_s27 + $0x8] sm:$0xff] }
 0x40a   : > { %v6907_v33 = vmul.f32 %v3274_v45, %v2135_v28  ;;  %v3277_v63 = vpop.f32.mrb[54].mxu1  ;;  %v5165_v28 = vadd.f32 %v8072_v31, %v6830_v55  ;;  %v8079_v31 = vld [vmem:[#allocation12_spill] sm:$0xff] }
 0x40b   : > { %v3278_v44 = vadd.f32 %v3277_v63, %v6844_v51  ;;  %v3279_v34 = vpop.f32.mrb[55].mxu1  ;;  %4897 = vmatmul.mubr.msk.f32.gmra.mrb[160].mxu1 %vm2994_vm3, %v2971_v14  ;;  %v2143_v14 = vmax.f32 %v5164_v43, 0.0 }
 0x40c   : > { %v3280_v40 = vadd.f32 %v3279_v34, %v6849_v9  ;;  %3599 = vmatprep.mubr.f32.mxu1 %v8065_v16  ;;  %v2144_v42 = vmax.f32 %v5165_v28, 0.0  ;;  %v5171_v28 = vadd.f32 %v8079_v31, %v6830_v55 }
 0x40d   : > { %v6919_v20 = vmul.f32 %v3278_v44, %v2136_v10  ;;  %v2975_v10 = vmax.f32 %v2901_v17, 0.0 }
 0x40e   : > { %v6921_v36 = vmul.f32 %v3280_v40, %v2137_v19  ;;  %v3283_v52 = vpop.f32.mrb[56].mxu1  ;;  %v8074_v40 = vld [vmem:[#allocation8_spill] sm:$0xff] }
 0x40f   : > { %v3284_v21 = vadd.f32 %v3283_v52, %v6844_v51  ;;  %v3285_v38 = vpop.f32.mrb[57].mxu1  ;;  %4898 = vmatmul.mubr.msk.f32.gmra.mrb[162].mxu1 %vm2994_vm3, %v2972_v54  ;;  %v5167_v49 = vadd.f32 %v8074_v40, %v6830_v55  ;;  %v3766_v40 = vld [vmem:[%s6975_s27 + $0x10] sm:$0xff] }
 0x410   : > { %v3286_v41 = vadd.f32 %v3285_v38, %v6849_v9  ;;  %3605 = vmatprep.mubr.f32.mxu1 %v8065_v16 }
 0x411   : > { %v6933_v5 = vmul.f32 %v3284_v21, %v2138_v50  ;;  %v2145_v50 = vmax.f32 %v5166_v56, 0.0  ;;  %v8076_v21 = vld [vmem:[#allocation118_spill] sm:$0xff]  ;;  %v5172_v56 = vadd.f32 %v8080_v30, %v6833_v48 }
 0x412   : > { %v6935_v37 = vmul.f32 %v3286_v41, %v2139_v59  ;;  %v3289_v39 = vpop.f32.mrb[58].mxu1  ;;  %v2911_v38 = vadd.f32 %v8076_v21, %v6448_v0  ;;  %v2976_v59 = vmax.f32 %v2906_v8, 0.0  ;;  %v8078_v0 = vld [vmem:[#allocation11_spill] sm:$0xff] }
 0x413   : > { %v3290_v11 = vadd.f32 %v3289_v39, %v6844_v51  ;;  %v3291_v27 = vpop.f32.mrb[59].mxu1  ;;  %4899 = vmatmul.mubr.msk.f32.gmra.mrb[164].mxu1 %vm2994_vm3, %v2973_v46  ;;  %v2146_v46 = vmax.f32 %v5167_v49, 0.0  ;;  %v5169_v39 = vadd.f32 %v8077_v2, %v6830_v55  ;;  %v2150_v49 = vmax.f32 %v5171_v28, 0.0  ;;  %v3770_v28 = vld [vmem:[%s6975_s27 + $0x30] sm:$0xff] }
 0x414   : > { %v3292_v61 = vadd.f32 %v3291_v27, %v6849_v9  ;;  %3611 = vmatprep.mubr.f32.mxu1 %v8065_v16  ;;  %v5170_v27 = vadd.f32 %v8078_v0, %v6833_v48  ;;  %v2977_v25 = vmax.f32 %v2911_v38, 0.0 }
 0x415   : > { %v6947_v15 = vmul.f32 %v3290_v11, %v2140_v60  ;;  %v2147_v11 = vmax.f32 %v5168_v13, 0.0  ;;  %v3769_v13 = vld [vmem:[%s6975_s27 + $0x28] sm:$0xff] }
 0x416   : > { %v6949_v58 = vmul.f32 %v3292_v61, %v2141_v6  ;;  %v3295_v47 = vpop.f32.mrb[60].mxu1  ;;  %v3764_v61 = vld [vmem:[%s6975_s27] sm:$0xff]  ;;  %v3897_v2 = vmul.f32 %v3769_v13, %v6893_v29 }
 0x417   : > { %v3296_v53 = vadd.f32 %v3295_v47, %v6844_v51  ;;  %v3297_v45 = vpop.f32.mrb[61].mxu1  ;;  %4900 = vmatmul.mubr.msk.f32.gmra.mrb[166].mxu1 %vm2994_vm3, %v2974_v32  ;;  %v3893_v47 = vmul.f32 %v3765_v1, %v6865_v22  ;;  %v3892_v22 = vmul.f32 %v3764_v61, %v6863_v4  ;;  %v2151_v4 = vmax.f32 %v5172_v56, 0.0  ;;  %v3773_v56 = vld [vmem:[%s6975_s27 + $0x48] sm:$0xff] }
 0x418   : > { %v3298_v63 = vadd.f32 %v3297_v45, %v6849_v9  ;;  %3617 = vmatprep.mubr.f32.mxu1 %v8065_v16 }
 0x419   : > { %v6962_v44 = vmul.f32 %v3296_v53, %v2142_v35  ;;  %v2148_v35 = vmax.f32 %v5169_v39, 0.0  ;;  %v3768_v39 = vld [vmem:[%s6975_s27 + $0x20] sm:$0xff] }
 0x41a   : > { %v6964_v34 = vmul.f32 %v3298_v63, %v2143_v14  ;;  %v3301_v19 = vpop.f32.mrb[62].mxu1  ;;  %v2149_v14 = vmax.f32 %v5170_v27, 0.0  ;;  %v3771_v27 = vld [vmem:[%s6975_s27 + $0x38] sm:$0xff] }
 0x41b   : > { %v3302_v54 = vadd.f32 %v3301_v19, %v6844_v51  ;;  %v3303_v52 = vpop.f32.mrb[63].mxu1  ;;  %4901 = vmatmul.mubr.msk.f32.gmra.mrb[168].mxu1 %vm2994_vm3, %v2975_v10  ;;  %v3899_v31 = vmul.f32 %v3771_v27, %v6907_v33 }
 0x41c   : > { %v3304_v57 = vadd.f32 %v3303_v52, %v6849_v9  ;;  %3623 = vmatprep.mubr.f32.mxu1 %v8065_v16 }
 0x41d   : > { %v6981_v7 = vmul.f32 %v3302_v54, %v2144_v42  ;;  %v8081_v54 = vld [vmem:[#allocation14_spill] sm:$0xff] }
 0x41e   : > { %v6983_v24 = vmul.f32 %v3304_v57, %v2145_v50  ;;  %v3307_v41 = vpop.f32.mrb[64].mxu1  ;;  %v5173_v52 = vadd.f32 %v8081_v54, %v6830_v55  ;;  %v8082_v57 = vld [vmem:[#allocation15_spill] sm:$0xff]  ;;  %v3901_v54 = vmul.f32 %v3773_v56, %v6921_v36 }
 0x41f   : > { %v3308_v60 = vadd.f32 %v3307_v41, %v6844_v51  ;;  %v3309_v18 = vpop.f32.mrb[65].mxu1  ;;  %4902 = vmatmul.mubr.msk.f32.gmra.mrb[170].mxu1 %vm2994_vm3, %v2976_v59  ;;  %v5174_v21 = vadd.f32 %v8082_v57, %v6833_v48  ;;  %v3894_v59 = vmul.f32 %v3766_v40, %v6877_v23  ;;  %v8084_v23 = vld [vmem:[#allocation17_spill] sm:$0xff] }
 0x420   : > { %v3310_v6 = vadd.f32 %v3309_v18, %v6849_v9  ;;  %3629 = vmatprep.mubr.f32.mxu1 %v8065_v16  ;;  %v3767_v16 = vld [vmem:[%s6975_s27 + $0x18] sm:$0xff]  ;;  %v8083_v18 = vld [vmem:[#allocation16_spill] sm:$0xff] }
 0x421   : > { %v6994_v43 = vmul.f32 %v3308_v60, %v2146_v46  ;;  %v3895_v42 = vmul.f32 %v3767_v16, %v6879_v26  ;;  %v2152_v60 = vmax.f32 %v5173_v52, 0.0  ;;  %v5175_v1 = vadd.f32 %v8083_v18, %v6830_v55  ;;  %v3772_v52 = vld [vmem:[%s6975_s27 + $0x40] sm:$0xff] }
 0x422   : > { %v6997_v17 = vmul.f32 %v3310_v6, %v2147_v11  ;;  %v3313_v32 = vpop.f32.mrb[66].mxu1  ;;  %v2153_v6 = vmax.f32 %v5174_v21, 0.0  ;;  %v3775_v21 = vld [vmem:[%s6975_s27 + $0x58] sm:$0xff] }
 0x423   : > { %v3314_v53 = vadd.f32 %v3313_v32, %v6844_v51  ;;  %v3315_v45 = vpop.f32.mrb[67].mxu1  ;;  %4903 = vmatmul.mubr.msk.f32.gmra.mrb[172].mxu1 %vm2994_vm3, %v2977_v25  ;;  %v5176_v25 = vadd.f32 %v8084_v23, %v6833_v48  ;;  %v3896_v32 = vmul.f32 %v3768_v39, %v6891_v62  ;;  %v8086_v62 = vld [vmem:[#allocation19_spill] sm:$0xff]  ;;  %v3903_v18 = vmul.f32 %v3775_v21, %v6935_v37 }
 0x424   : > { %v3316_v63 = vadd.f32 %v3315_v45, %v6849_v9  ;;  %4123 = vmatprep.mubr.f32.mxu1 %v3893_v47  ;;  %v8085_v45 = vld [vmem:[#allocation18_spill] sm:$0xff] }
 0x425   : > { %v7009_v10 = vmul.f32 %v3314_v53, %v2148_v35  ;;  %v2154_v53 = vmax.f32 %v5175_v1, 0.0  ;;  %v5177_v16 = vadd.f32 %v8085_v45, %v6830_v55  ;;  %v3774_v1 = vld [vmem:[%s6975_s27 + $0x50] sm:$0xff] }
 0x426   : > { %v7011_v8 = vmul.f32 %v3316_v63, %v2149_v14  ;;  %v3319_v19 = vpop.f32.mrb[68].mxu1  ;;  %v2155_v63 = vmax.f32 %v5176_v25, 0.0  ;;  %v3777_v25 = vld [vmem:[%s6975_s27 + $0x68] sm:$0xff] }
 0x427   : > { %v3320_v50 = vadd.f32 %v3319_v19, %v6844_v51  ;;  %v3321_v3 = vpop.f32.mrb[69].mxu1  ;;  %4124 = vmatmul.mubr.f32.vlgmr.msra.gmra.mrb[174].mxu1 %v3892_v22  ;;  %v5178_v22 = vadd.f32 %v8086_v62, %v6833_v48  ;;  %v3905_v45 = vmul.f32 %v3777_v25, %v6949_v58 }
 0x428   : > { %v3322_v38 = vadd.f32 %v3321_v3, %v6849_v9  ;;  %4128 = vmatprep.mubr.f32.mxu1 %v3895_v42  ;;  %v3898_v42 = vmul.f32 %v3770_v28, %v6905_v12  ;;  %v8087_v3 = vld [vmem:[#allocation20_spill] sm:$0xff]  ;;  %v8088_v12 = vld [vmem:[#allocation21_spill] sm:$0xff] }
 0x429   : > { %v7022_v26 = vmul.f32 %v3320_v50, %v2150_v49  ;;  %v2156_v50 = vmax.f32 %v5177_v16, 0.0  ;;  %v5179_v13 = vadd.f32 %v8087_v3, %v6830_v55  ;;  %v3776_v16 = vld [vmem:[%s6975_s27 + $0x60] sm:$0xff] }
 0x42a   : > { %v7025_v41 = vmul.f32 %v3322_v38, %v2151_v4  ;;  %v3325_v46 = vpop.f32.mrb[70].mxu1  ;;  %v2157_v38 = vmax.f32 %v5178_v22, 0.0  ;;  %v3779_v22 = vld [vmem:[%s6975_s27 + $0x78] sm:$0xff] }
 0x42b   : > { %v3326_v11 = vadd.f32 %v3325_v46, %v6844_v51  ;;  %v3327_v0 = vpop.f32.mrb[71].mxu1  ;;  %4129 = vmatmul.mubr.f32.gmra.mrb[176].mxu1 %v3894_v59  ;;  %v5180_v59 = vadd.f32 %v8088_v12, %v6833_v48  ;;  %v3907_v3 = vmul.f32 %v3779_v22, %v6964_v34 }
 0x42c   : > { %v3328_v61 = vadd.f32 %v3327_v0, %v6849_v9  ;;  %4133 = vmatprep.mubr.f32.mxu1 %v3897_v2  ;;  %v3900_v2 = vmul.f32 %v3772_v52, %v6919_v20  ;;  %v8089_v0 = vld [vmem:[#allocation22_spill] sm:$0xff]  ;;  %v8090_v20 = vld [vmem:[#allocation23_spill] sm:$0xff] }
 0x42d   : > { %v7036_v29 = vmul.f32 %v3326_v11, %v2152_v60  ;;  %v2158_v11 = vmax.f32 %v5179_v13, 0.0  ;;  %v5181_v27 = vadd.f32 %v8089_v0, %v6830_v55  ;;  %v3778_v13 = vld [vmem:[%s6975_s27 + $0x70] sm:$0xff] }
 0x42e   : > { %v7039_v47 = vmul.f32 %v3328_v61, %v2153_v6  ;;  %v3331_v35 = vpop.f32.mrb[72].mxu1  ;;  %v2159_v61 = vmax.f32 %v5180_v59, 0.0  ;;  %v3781_v59 = vld [vmem:[%s6975_s27 + $0x88] sm:$0xff] }
 0x42f   : > { %v3332_v14 = vadd.f32 %v3331_v35, %v6844_v51  ;;  %v3333_v30 = vpop.f32.mrb[73].mxu1  ;;  %4134 = vmatmul.mubr.f32.gmra.mrb[178].mxu1 %v3896_v32  ;;  %v5182_v32 = vadd.f32 %v8090_v20, %v6833_v48  ;;  %v3909_v0 = vmul.f32 %v3781_v59, %v6983_v24 }
 0x430   : > { %v3334_v19 = vadd.f32 %v3333_v30, %v6849_v9  ;;  %4138 = vmatprep.mubr.f32.mxu1 %v3899_v31  ;;  %v3902_v31 = vmul.f32 %v3774_v1, %v6933_v5  ;;  %v8091_v30 = vld [vmem:[#allocation24_spill] sm:$0xff]  ;;  %v8092_v5 = vld [vmem:[#allocation25_spill] sm:$0xff] }
 0x431   : > { %v7050_v33 = vmul.f32 %v3332_v14, %v2154_v53  ;;  %v2160_v14 = vmax.f32 %v5181_v27, 0.0  ;;  %v5183_v56 = vadd.f32 %v8091_v30, %v6830_v55  ;;  %v3780_v27 = vld [vmem:[%s6975_s27 + $0x80] sm:$0xff] }
 0x432   : > { %v7053_v40 = vmul.f32 %v3334_v19, %v2155_v63  ;;  %v3337_v49 = vpop.f32.mrb[74].mxu1  ;;  %v2161_v19 = vmax.f32 %v5182_v32, 0.0  ;;  %v3783_v32 = vld [vmem:[%s6975_s27 + $0x98] sm:$0xff] }
 0x433   : > { %v3338_v4 = vadd.f32 %v3337_v49, %v6844_v51  ;;  %v3339_v57 = vpop.f32.mrb[75].mxu1  ;;  %4139 = vmatmul.mubr.f32.gmra.mrb[180].mxu1 %v3898_v42  ;;  %v5184_v42 = vadd.f32 %v8092_v5, %v6833_v48  ;;  %v3911_v30 = vmul.f32 %v3783_v32, %v6997_v17 }
 0x434   : > { %v3340_v46 = vadd.f32 %v3339_v57, %v6849_v9  ;;  %4143 = vmatprep.mubr.f32.mxu1 %v3901_v54  ;;  %v3904_v54 = vmul.f32 %v3776_v16, %v6947_v15  ;;  %v8093_v57 = vld [vmem:[#allocation26_spill] sm:$0xff]  ;;  %v8094_v15 = vld [vmem:[#allocation27_spill] sm:$0xff] }
 0x435   : > { %v7064_v36 = vmul.f32 %v3338_v4, %v2156_v50  ;;  %v2162_v4 = vmax.f32 %v5183_v56, 0.0  ;;  %v5185_v21 = vadd.f32 %v8093_v57, %v6830_v55  ;;  %v3782_v56 = vld [vmem:[%s6975_s27 + $0x90] sm:$0xff] }
 0x436   : > { %v7067_v39 = vmul.f32 %v3340_v46, %v2157_v38  ;;  %v3343_v60 = vpop.f32.mrb[76].mxu1  ;;  %v2163_v46 = vmax.f32 %v5184_v42, 0.0  ;;  %v3785_v42 = vld [vmem:[%s6975_s27 + $0xa8] sm:$0xff] }
 0x437   : > { %v3344_v6 = vadd.f32 %v3343_v60, %v6844_v51  ;;  %v3345_v23 = vpop.f32.mrb[77].mxu1  ;;  %4144 = vmatmul.mubr.f32.gmra.mrb[182].mxu1 %v3900_v2  ;;  %v5186_v2 = vadd.f32 %v8094_v15, %v6833_v48  ;;  %v3913_v57 = vmul.f32 %v3785_v42, %v7011_v8 }
 0x438   : > { %v3346_v35 = vadd.f32 %v3345_v23, %v6849_v9  ;;  %4148 = vmatprep.mubr.f32.mxu1 %v3903_v18  ;;  %v3906_v18 = vmul.f32 %v3778_v13, %v6962_v44  ;;  %v8095_v23 = vld [vmem:[#allocation28_spill] sm:$0xff]  ;;  %v8096_v44 = vld [vmem:[#allocation29_spill] sm:$0xff] }
 0x439   : > { %v7078_v37 = vmul.f32 %v3344_v6, %v2158_v11  ;;  %v2164_v6 = vmax.f32 %v5185_v21, 0.0  ;;  %v5187_v25 = vadd.f32 %v8095_v23, %v6830_v55  ;;  %v3784_v21 = vld [vmem:[%s6975_s27 + $0xa0] sm:$0xff] }
 0x43a   : > { %v7081_v28 = vmul.f32 %v3346_v35, %v2159_v61  ;;  %v3349_v53 = vpop.f32.mrb[78].mxu1  ;;  %v2165_v35 = vmax.f32 %v5186_v2, 0.0  ;;  %v3787_v2 = vld [vmem:[%s6975_s27 + $0xb8] sm:$0xff] }
 0x43b   : > { %v3350_v63 = vadd.f32 %v3349_v53, %v6844_v51  ;;  %v3351_v62 = vpop.f32.mrb[79].mxu1  ;;  %4149 = vmatmul.mubr.f32.gmra.mrb[184].mxu1 %v3902_v31  ;;  %v5188_v31 = vadd.f32 %v8096_v44, %v6833_v48  ;;  %v3915_v23 = vmul.f32 %v3787_v2, %v7025_v41 }
 0x43c   : > { %v3352_v49 = vadd.f32 %v3351_v62, %v6849_v9  ;;  %4153 = vmatprep.mubr.f32.mxu1 %v3905_v45  ;;  %v3908_v45 = vmul.f32 %v3780_v27, %v6981_v7  ;;  %v8097_v62 = vld [vmem:[#allocation30_spill] sm:$0xff]  ;;  %v8098_v7 = vld [vmem:[#allocation31_spill] sm:$0xff] }
 0x43d   : > { %v7092_v58 = vmul.f32 %v3350_v63, %v2160_v14  ;;  %v2166_v63 = vmax.f32 %v5187_v25, 0.0  ;;  %v5189_v22 = vadd.f32 %v8097_v62, %v6830_v55  ;;  %v3786_v25 = vld [vmem:[%s6975_s27 + $0xb0] sm:$0xff] }
 0x43e   : > { %v7095_v52 = vmul.f32 %v3352_v49, %v2161_v19  ;;  %v3355_v50 = vpop.f32.mrb[80].mxu1  ;;  %v2167_v49 = vmax.f32 %v5188_v31, 0.0  ;;  %v3789_v31 = vld [vmem:[%s6975_s27 + $0xc8] sm:$0xff] }
 0x43f   : > { %v3356_v38 = vadd.f32 %v3355_v50, %v6844_v51  ;;  %v3357_v12 = vpop.f32.mrb[81].mxu1  ;;  %4154 = vmatmul.mubr.f32.gmra.mrb[186].mxu1 %v3904_v54  ;;  %v5190_v54 = vadd.f32 %v8098_v7, %v6833_v48  ;;  %v3917_v62 = vmul.f32 %v3789_v31, %v7039_v47 }
 0x440   : > { %v3358_v60 = vadd.f32 %v3357_v12, %v6849_v9  ;;  %4158 = vmatprep.mubr.f32.mxu1 %v3907_v3  ;;  %v3910_v3 = vmul.f32 %v3782_v56, %v6994_v43  ;;  %v8099_v12 = vld [vmem:[#allocation32_spill] sm:$0xff]  ;;  %v8100_v43 = vld [vmem:[#allocation33_spill] sm:$0xff] }
 0x441   : > { %v7106_v34 = vmul.f32 %v3356_v38, %v2162_v4  ;;  %v2168_v38 = vmax.f32 %v5189_v22, 0.0  ;;  %v5191_v59 = vadd.f32 %v8099_v12, %v6830_v55  ;;  %v3788_v22 = vld [vmem:[%s6975_s27 + $0xc0] sm:$0xff] }
 0x442   : > { %v7109_v1 = vmul.f32 %v3358_v60, %v2163_v46  ;;  %v3361_v11 = vpop.f32.mrb[82].mxu1  ;;  %v2169_v60 = vmax.f32 %v5190_v54, 0.0  ;;  %v3791_v54 = vld [vmem:[%s6975_s27 + $0xd8] sm:$0xff] }
 0x443   : > { %v3362_v61 = vadd.f32 %v3361_v11, %v6844_v51  ;;  %v3363_v20 = vpop.f32.mrb[83].mxu1  ;;  %4159 = vmatmul.mubr.f32.gmra.mrb[188].mxu1 %v3906_v18  ;;  %v5192_v18 = vadd.f32 %v8100_v43, %v6833_v48  ;;  %v3919_v12 = vmul.f32 %v3791_v54, %v7053_v40 }
 0x444   : > { %v3364_v53 = vadd.f32 %v3363_v20, %v6849_v9  ;;  %4163 = vmatprep.mubr.f32.mxu1 %v3909_v0  ;;  %v3912_v0 = vmul.f32 %v3784_v21, %v7009_v10  ;;  %v8101_v20 = vld [vmem:[#allocation34_spill] sm:$0xff]  ;;  %v8102_v10 = vld [vmem:[#allocation35_spill] sm:$0xff] }
 0x445   : > { %v7120_v24 = vmul.f32 %v3362_v61, %v2164_v6  ;;  %v2170_v61 = vmax.f32 %v5191_v59, 0.0  ;;  %v5193_v32 = vadd.f32 %v8101_v20, %v6830_v55  ;;  %v3790_v59 = vld [vmem:[%s6975_s27 + $0xd0] sm:$0xff] }
 0x446   : > { %v7123_v16 = vmul.f32 %v3364_v53, %v2165_v35  ;;  %v3367_v14 = vpop.f32.mrb[84].mxu1  ;;  %v2171_v53 = vmax.f32 %v5192_v18, 0.0  ;;  %v3793_v18 = vld [vmem:[%s6975_s27 + $0xe8] sm:$0xff] }
 0x447   : > { %v3368_v19 = vadd.f32 %v3367_v14, %v6844_v51  ;;  %v3369_v5 = vpop.f32.mrb[85].mxu1  ;;  %4164 = vmatmul.mubr.f32.gmra.mrb[190].mxu1 %v3908_v45  ;;  %v5194_v45 = vadd.f32 %v8102_v10, %v6833_v48  ;;  %v3921_v20 = vmul.f32 %v3793_v18, %v7067_v39 }
 0x448   : > { %v3370_v50 = vadd.f32 %v3369_v5, %v6849_v9  ;;  %4168 = vmatprep.mubr.f32.mxu1 %v3911_v30  ;;  %v3914_v30 = vmul.f32 %v3786_v25, %v7022_v26  ;;  %v8103_v5 = vld [vmem:[#allocation36_spill] sm:$0xff]  ;;  %v8104_v26 = vld [vmem:[#allocation37_spill] sm:$0xff] }
 0x449   : > { %v7134_v17 = vmul.f32 %v3368_v19, %v2166_v63  ;;  %v2172_v19 = vmax.f32 %v5193_v32, 0.0  ;;  %v5195_v42 = vadd.f32 %v8103_v5, %v6830_v55  ;;  %v3792_v32 = vld [vmem:[%s6975_s27 + $0xe0] sm:$0xff] }
 0x44a   : > { %v7137_v13 = vmul.f32 %v3370_v50, %v2167_v49  ;;  %v3373_v4 = vpop.f32.mrb[86].mxu1  ;;  %v2173_v50 = vmax.f32 %v5194_v45, 0.0  ;;  %v3795_v45 = vld [vmem:[%s6975_s27 + $0xf8] sm:$0xff] }
 0x44b   : > { %v3374_v46 = vadd.f32 %v3373_v4, %v6844_v51  ;;  %v3375_v15 = vpop.f32.mrb[87].mxu1  ;;  %4169 = vmatmul.mubr.f32.gmra.mrb[192].mxu1 %v3910_v3  ;;  %v5196_v3 = vadd.f32 %v8104_v26, %v6833_v48  ;;  %v3923_v5 = vmul.f32 %v3795_v45, %v7081_v28 }
 0x44c   : > { %v3376_v11 = vadd.f32 %v3375_v15, %v6849_v9  ;;  %4173 = vmatprep.mubr.f32.mxu1 %v3913_v57  ;;  %v3916_v57 = vmul.f32 %v3788_v22, %v7036_v29  ;;  %v8105_v15 = vld [vmem:[#allocation38_spill] sm:$0xff]  ;;  %v8106_v29 = vld [vmem:[#allocation39_spill] sm:$0xff] }
 0x44d   : > { %v7148_v8 = vmul.f32 %v3374_v46, %v2168_v38  ;;  %v2174_v46 = vmax.f32 %v5195_v42, 0.0  ;;  %v5197_v2 = vadd.f32 %v8105_v15, %v6830_v55  ;;  %v3794_v42 = vld [vmem:[%s6975_s27 + $0xf0] sm:$0xff] }
 0x44e   : > { %v7151_v27 = vmul.f32 %v3376_v11, %v2169_v60  ;;  %v3379_v6 = vpop.f32.mrb[88].mxu1  ;;  %v2175_v11 = vmax.f32 %v5196_v3, 0.0  ;;  %v3797_v3 = vld [vmem:[%s6975_s27 + $0x108] sm:$0xff] }
 0x44f   : > { %v3380_v35 = vadd.f32 %v3379_v6, %v6844_v51  ;;  %v3381_v44 = vpop.f32.mrb[89].mxu1  ;;  %4174 = vmatmul.mubr.f32.gmra.mrb[194].mxu1 %v3912_v0  ;;  %v5198_v0 = vadd.f32 %v8106_v29, %v6833_v48  ;;  %v3925_v15 = vmul.f32 %v3797_v3, %v7095_v52 }
 0x450   : > { %v3382_v14 = vadd.f32 %v3381_v44, %v6849_v9  ;;  %4178 = vmatprep.mubr.f32.mxu1 %v3915_v23  ;;  %v3918_v23 = vmul.f32 %v3790_v59, %v7050_v33  ;;  %v8107_v44 = vld [vmem:[#allocation40_spill] sm:$0xff]  ;;  %v8108_v33 = vld [vmem:[#allocation41_spill] sm:$0xff] }
 0x451   : > { %v7162_v41 = vmul.f32 %v3380_v35, %v2170_v61  ;;  %v2176_v35 = vmax.f32 %v5197_v2, 0.0  ;;  %v5199_v31 = vadd.f32 %v8107_v44, %v6830_v55  ;;  %v3796_v2 = vld [vmem:[%s6975_s27 + $0x100] sm:$0xff] }
 0x452   : > { %v7165_v56 = vmul.f32 %v3382_v14, %v2171_v53  ;;  %v3385_v63 = vpop.f32.mrb[90].mxu1  ;;  %v2177_v14 = vmax.f32 %v5198_v0, 0.0  ;;  %v3799_v0 = vld [vmem:[%s6975_s27 + $0x118] sm:$0xff] }
 0x453   : > { %v3386_v49 = vadd.f32 %v3385_v63, %v6844_v51  ;;  %v3387_v7 = vpop.f32.mrb[91].mxu1  ;;  %4179 = vmatmul.mubr.f32.gmra.mrb[196].mxu1 %v3914_v30  ;;  %v5200_v30 = vadd.f32 %v8108_v33, %v6833_v48  ;;  %v3927_v44 = vmul.f32 %v3799_v0, %v7109_v1 }
 0x454   : > { %v3388_v4 = vadd.f32 %v3387_v7, %v6849_v9  ;;  %4183 = vmatprep.mubr.f32.mxu1 %v3917_v62  ;;  %v3920_v62 = vmul.f32 %v3792_v32, %v7064_v36  ;;  %v8109_v7 = vld [vmem:[#allocation42_spill] sm:$0xff]  ;;  %v8110_v36 = vld [vmem:[#allocation43_spill] sm:$0xff] }
 0x455   : > { %v7176_v47 = vmul.f32 %v3386_v49, %v2172_v19  ;;  %v2178_v49 = vmax.f32 %v5199_v31, 0.0  ;;  %v5201_v54 = vadd.f32 %v8109_v7, %v6830_v55  ;;  %v3798_v31 = vld [vmem:[%s6975_s27 + $0x110] sm:$0xff] }
 0x456   : > { %v7179_v21 = vmul.f32 %v3388_v4, %v2173_v50  ;;  %v3391_v38 = vpop.f32.mrb[92].mxu1  ;;  %v2179_v4 = vmax.f32 %v5200_v30, 0.0  ;;  %v3801_v30 = vld [vmem:[%s6975_s27 + $0x128] sm:$0xff] }
 0x457   : > { %v3392_v60 = vadd.f32 %v3391_v38, %v6844_v51  ;;  %v3393_v43 = vpop.f32.mrb[93].mxu1  ;;  %4184 = vmatmul.mubr.f32.gmra.mrb[198].mxu1 %v3916_v57  ;;  %v5202_v57 = vadd.f32 %v8110_v36, %v6833_v48  ;;  %v3929_v7 = vmul.f32 %v3801_v30, %v7123_v16 }
 0x458   : > { %v3394_v6 = vadd.f32 %v3393_v43, %v6849_v9  ;;  %4188 = vmatprep.mubr.f32.mxu1 %v3919_v12  ;;  %v3922_v12 = vmul.f32 %v3794_v42, %v7078_v37  ;;  %v8111_v43 = vld [vmem:[#allocation44_spill] sm:$0xff]  ;;  %v8112_v37 = vld [vmem:[#allocation45_spill] sm:$0xff] }
 0x459   : > { %v7190_v40 = vmul.f32 %v3392_v60, %v2174_v46  ;;  %v2180_v60 = vmax.f32 %v5201_v54, 0.0  ;;  %v5203_v18 = vadd.f32 %v8111_v43, %v6830_v55  ;;  %v3800_v54 = vld [vmem:[%s6975_s27 + $0x120] sm:$0xff] }
 0x45a   : > { %v7193_v25 = vmul.f32 %v3394_v6, %v2175_v11  ;;  %v3397_v61 = vpop.f32.mrb[94].mxu1  ;;  %v2181_v6 = vmax.f32 %v5202_v57, 0.0  ;;  %v3803_v57 = vld [vmem:[%s6975_s27 + $0x138] sm:$0xff] }
 0x45b   : > { %v3398_v53 = vadd.f32 %v3397_v61, %v6844_v51  ;;  %v3399_v10 = vpop.f32.mrb[95].mxu1  ;;  %4189 = vmatmul.mubr.f32.gmra.mrb[200].mxu1 %v3918_v23  ;;  %v5204_v23 = vadd.f32 %v8112_v37, %v6833_v48  ;;  %v3931_v43 = vmul.f32 %v3803_v57, %v7137_v13 }
 0x45c   : > { %v3400_v63 = vadd.f32 %v3399_v10, %v6849_v9  ;;  %4193 = vmatprep.mubr.f32.mxu1 %v3921_v20  ;;  %v3924_v20 = vmul.f32 %v3796_v2, %v7092_v58  ;;  %v8113_v10 = vld [vmem:[#allocation46_spill] sm:$0xff]  ;;  %v8114_v58 = vld [vmem:[#allocation47_spill] sm:$0xff] }
 0x45d   : > { %v7204_v39 = vmul.f32 %v3398_v53, %v2176_v35  ;;  %v2182_v53 = vmax.f32 %v5203_v18, 0.0  ;;  %v5205_v45 = vadd.f32 %v8113_v10, %v6830_v55  ;;  %v3802_v18 = vld [vmem:[%s6975_s27 + $0x130] sm:$0xff] }
 0x45e   : > { %v7207_v22 = vmul.f32 %v3400_v63, %v2177_v14  ;;  %v3403_v19 = vpop.f32.mrb[96].mxu1  ;;  %v2183_v63 = vmax.f32 %v5204_v23, 0.0  ;;  %v3805_v23 = vld [vmem:[%s6975_s27 + $0x148] sm:$0xff] }
 0x45f   : > { %v3404_v50 = vadd.f32 %v3403_v19, %v6844_v51  ;;  %v3405_v26 = vpop.f32.mrb[97].mxu1  ;;  %4194 = vmatmul.mubr.f32.gmra.mrb[202].mxu1 %v3920_v62  ;;  %v5206_v62 = vadd.f32 %v8114_v58, %v6833_v48  ;;  %v3933_v10 = vmul.f32 %v3805_v23, %v7151_v27 }
 0x460   : > { %v3406_v38 = vadd.f32 %v3405_v26, %v6849_v9  ;;  %4198 = vmatprep.mubr.f32.mxu1 %v3923_v5  ;;  %v3926_v5 = vmul.f32 %v3798_v31, %v7106_v34  ;;  %v8115_v26 = vld [vmem:[#allocation48_spill] sm:$0xff]  ;;  %v8116_v34 = vld [vmem:[#allocation49_spill] sm:$0xff] }
 0x461   : > { %v7218_v28 = vmul.f32 %v3404_v50, %v2178_v49  ;;  %v2184_v50 = vmax.f32 %v5205_v45, 0.0  ;;  %v5207_v3 = vadd.f32 %v8115_v26, %v6830_v55  ;;  %v3804_v45 = vld [vmem:[%s6975_s27 + $0x140] sm:$0xff] }
 0x462   : > { %v7221_v59 = vmul.f32 %v3406_v38, %v2179_v4  ;;  %v3409_v46 = vpop.f32.mrb[98].mxu1  ;;  %v2185_v38 = vmax.f32 %v5206_v62, 0.0  ;;  %v3807_v62 = vld [vmem:[%s6975_s27 + $0x158] sm:$0xff] }
 0x463   : > { %v3410_v11 = vadd.f32 %v3409_v46, %v6844_v51  ;;  %v3411_v29 = vpop.f32.mrb[99].mxu1  ;;  %4199 = vmatmul.mubr.f32.gmra.mrb[204].mxu1 %v3922_v12  ;;  %v5208_v12 = vadd.f32 %v8116_v34, %v6833_v48  ;;  %v3935_v26 = vmul.f32 %v3807_v62, %v7165_v56 }
 0x464   : > { %v3412_v61 = vadd.f32 %v3411_v29, %v6849_v9  ;;  %4203 = vmatprep.mubr.f32.mxu1 %v3925_v15  ;;  %v3928_v15 = vmul.f32 %v3800_v54, %v7120_v24  ;;  %v8117_v29 = vld [vmem:[#allocation50_spill] sm:$0xff]  ;;  %v8118_v24 = vld [vmem:[#allocation51_spill] sm:$0xff] }
 0x465   : > { %v7232_v52 = vmul.f32 %v3410_v11, %v2180_v60  ;;  %v2186_v11 = vmax.f32 %v5207_v3, 0.0  ;;  %v5209_v0 = vadd.f32 %v8117_v29, %v6830_v55  ;;  %v3806_v3 = vld [vmem:[%s6975_s27 + $0x150] sm:$0xff] }
 0x466   : > { %v7235_v32 = vmul.f32 %v3412_v61, %v2181_v6  ;;  %v3415_v35 = vpop.f32.mrb[100].mxu1  ;;  %v2187_v61 = vmax.f32 %v5208_v12, 0.0  ;;  %v3809_v12 = vld [vmem:[%s6975_s27 + $0x168] sm:$0xff] }
 0x467   : > { %v3416_v14 = vadd.f32 %v3415_v35, %v6844_v51  ;;  %v3417_v33 = vpop.f32.mrb[101].mxu1  ;;  %4204 = vmatmul.mubr.f32.gmra.mrb[206].mxu1 %v3924_v20  ;;  %v5210_v20 = vadd.f32 %v8118_v24, %v6833_v48  ;;  %v3937_v29 = vmul.f32 %v3809_v12, %v7179_v21 }
 0x468   : > { %v3418_v19 = vadd.f32 %v3417_v33, %v6849_v9  ;;  %4208 = vmatprep.mubr.f32.mxu1 %v3927_v44  ;;  %v3930_v44 = vmul.f32 %v3802_v18, %v7134_v17  ;;  %v8119_v33 = vld [vmem:[#allocation52_spill] sm:$0xff]  ;;  %v8120_v17 = vld [vmem:[#allocation53_spill] sm:$0xff] }
 0x469   : > { %v7246_v1 = vmul.f32 %v3416_v14, %v2182_v53  ;;  %v2188_v14 = vmax.f32 %v5209_v0, 0.0  ;;  %v5211_v30 = vadd.f32 %v8119_v33, %v6830_v55  ;;  %v3808_v0 = vld [vmem:[%s6975_s27 + $0x160] sm:$0xff] }
 0x46a   : > { %v7249_v42 = vmul.f32 %v3418_v19, %v2183_v63  ;;  %v3421_v49 = vpop.f32.mrb[102].mxu1  ;;  %v2189_v19 = vmax.f32 %v5210_v20, 0.0  ;;  %v3811_v20 = vld [vmem:[%s6975_s27 + $0x178] sm:$0xff] }
 0x46b   : > { %v3422_v4 = vadd.f32 %v3421_v49, %v6844_v51  ;;  %v3423_v36 = vpop.f32.mrb[103].mxu1  ;;  %4209 = vmatmul.mubr.f32.gmra.mrb[208].mxu1 %v3926_v5  ;;  %v5212_v5 = vadd.f32 %v8120_v17, %v6833_v48  ;;  %v3939_v33 = vmul.f32 %v3811_v20, %v7193_v25 }
 0x46c   : > { %v3424_v46 = vadd.f32 %v3423_v36, %v6849_v9  ;;  %4213 = vmatprep.mubr.f32.mxu1 %v3929_v7  ;;  %v3932_v7 = vmul.f32 %v3804_v45, %v7148_v8  ;;  %v8121_v36 = vld [vmem:[#allocation54_spill] sm:$0xff]  ;;  %v8122_v8 = vld [vmem:[#allocation55_spill] sm:$0xff] }
 0x46d   : > { %v7260_v16 = vmul.f32 %v3422_v4, %v2184_v50  ;;  %v2190_v4 = vmax.f32 %v5211_v30, 0.0  ;;  %v5213_v57 = vadd.f32 %v8121_v36, %v6830_v55  ;;  %v3810_v30 = vld [vmem:[%s6975_s27 + $0x170] sm:$0xff] }
 0x46e   : > { %v7263_v2 = vmul.f32 %v3424_v46, %v2185_v38  ;;  %v3427_v60 = vpop.f32.mrb[104].mxu1  ;;  %v2191_v46 = vmax.f32 %v5212_v5, 0.0  ;;  %v3813_v5 = vld [vmem:[%s6975_s27 + $0x188] sm:$0xff] }
 0x46f   : > { %v3428_v6 = vadd.f32 %v3427_v60, %v6844_v51  ;;  %v3429_v37 = vpop.f32.mrb[105].mxu1  ;;  %4214 = vmatmul.mubr.f32.gmra.mrb[210].mxu1 %v3928_v15  ;;  %v5214_v15 = vadd.f32 %v8122_v8, %v6833_v48  ;;  %v3941_v36 = vmul.f32 %v3813_v5, %v7207_v22 }
 0x470   : > { %v3430_v35 = vadd.f32 %v3429_v37, %v6849_v9  ;;  %4218 = vmatprep.mubr.f32.mxu1 %v3931_v43  ;;  %v3934_v43 = vmul.f32 %v3806_v3, %v7162_v41  ;;  %v8123_v37 = vld [vmem:[#allocation56_spill] sm:$0xff]  ;;  %v8124_v41 = vld [vmem:[#allocation57_spill] sm:$0xff] }
 0x471   : > { %v7274_v13 = vmul.f32 %v3428_v6, %v2186_v11  ;;  %v2192_v6 = vmax.f32 %v5213_v57, 0.0  ;;  %v5215_v23 = vadd.f32 %v8123_v37, %v6830_v55  ;;  %v3812_v57 = vld [vmem:[%s6975_s27 + $0x180] sm:$0xff] }
 0x472   : > { %v7277_v31 = vmul.f32 %v3430_v35, %v2187_v61  ;;  %v3433_v53 = vpop.f32.mrb[106].mxu1  ;;  %v2193_v35 = vmax.f32 %v5214_v15, 0.0  ;;  %v3815_v15 = vld [vmem:[%s6975_s27 + $0x198] sm:$0xff] }
 0x473   : > { %v3434_v63 = vadd.f32 %v3433_v53, %v6844_v51  ;;  %v3435_v58 = vpop.f32.mrb[107].mxu1  ;;  %4219 = vmatmul.mubr.f32.gmra.mrb[212].mxu1 %v3930_v44  ;;  %v5216_v44 = vadd.f32 %v8124_v41, %v6833_v48  ;;  %v3943_v37 = vmul.f32 %v3815_v15, %v7221_v59 }
 0x474   : > { %v3436_v49 = vadd.f32 %v3435_v58, %v6849_v9  ;;  %4223 = vmatprep.mubr.f32.mxu1 %v3933_v10  ;;  %v3936_v10 = vmul.f32 %v3808_v0, %v7176_v47  ;;  %v8125_v58 = vld [vmem:[#allocation58_spill] sm:$0xff]  ;;  %v8126_v47 = vld [vmem:[#allocation59_spill] sm:$0xff] }
 0x475   : > { %v7288_v27 = vmul.f32 %v3434_v63, %v2188_v14  ;;  %v2194_v63 = vmax.f32 %v5215_v23, 0.0  ;;  %v5217_v62 = vadd.f32 %v8125_v58, %v6830_v55  ;;  %v3814_v23 = vld [vmem:[%s6975_s27 + $0x190] sm:$0xff] }
 0x476   : > { %v7291_v54 = vmul.f32 %v3436_v49, %v2189_v19  ;;  %v3439_v50 = vpop.f32.mrb[108].mxu1  ;;  %v2195_v49 = vmax.f32 %v5216_v44, 0.0  ;;  %v3817_v44 = vld [vmem:[%s6975_s27 + $0x1a8] sm:$0xff] }
 0x477   : > { %v3440_v38 = vadd.f32 %v3439_v50, %v6844_v51  ;;  %v3441_v34 = vpop.f32.mrb[109].mxu1  ;;  %4224 = vmatmul.mubr.f32.gmra.mrb[214].mxu1 %v3932_v7  ;;  %v5218_v7 = vadd.f32 %v8126_v47, %v6833_v48  ;;  %v3945_v58 = vmul.f32 %v3817_v44, %v7235_v32 }
 0x478   : > { %v3442_v60 = vadd.f32 %v3441_v34, %v6849_v9  ;;  %4228 = vmatprep.mubr.f32.mxu1 %v3935_v26  ;;  %v3938_v26 = vmul.f32 %v3810_v30, %v7190_v40  ;;  %v8127_v34 = vld [vmem:[#allocation60_spill] sm:$0xff]  ;;  %v8128_v40 = vld [vmem:[#allocation61_spill] sm:$0xff] }
 0x479   : > { %v7302_v56 = vmul.f32 %v3440_v38, %v2190_v4  ;;  %v2196_v38 = vmax.f32 %v5217_v62, 0.0  ;;  %v5219_v12 = vadd.f32 %v8127_v34, %v6830_v55  ;;  %v3816_v62 = vld [vmem:[%s6975_s27 + $0x1a0] sm:$0xff] }
 0x47a   : > { %v7305_v18 = vmul.f32 %v3442_v60, %v2191_v46  ;;  %v3445_v11 = vpop.f32.mrb[110].mxu1  ;;  %v2197_v60 = vmax.f32 %v5218_v7, 0.0  ;;  %v3819_v7 = vld [vmem:[%s6975_s27 + $0x1b8] sm:$0xff] }
 0x47b   : > { %v3446_v61 = vadd.f32 %v3445_v11, %v6844_v51  ;;  %v3447_v24 = vpop.f32.mrb[111].mxu1  ;;  %4229 = vmatmul.mubr.f32.gmra.mrb[216].mxu1 %v3934_v43  ;;  %v5220_v43 = vadd.f32 %v8128_v40, %v6833_v48  ;;  %v3947_v34 = vmul.f32 %v3819_v7, %v7249_v42 }
 0x47c   : > { %v3448_v53 = vadd.f32 %v3447_v24, %v6849_v9  ;;  %4233 = vmatprep.mubr.f32.mxu1 %v3937_v29  ;;  %v3940_v29 = vmul.f32 %v3812_v57, %v7204_v39  ;;  %v8129_v24 = vld [vmem:[#allocation62_spill] sm:$0xff]  ;;  %v8130_v39 = vld [vmem:[#allocation63_spill] sm:$0xff] }
 0x47d   : > { %v7316_v21 = vmul.f32 %v3446_v61, %v2192_v6  ;;  %v2198_v61 = vmax.f32 %v5219_v12, 0.0  ;;  %v5221_v20 = vadd.f32 %v8129_v24, %v6830_v55  ;;  %v3818_v12 = vld [vmem:[%s6975_s27 + $0x1b0] sm:$0xff] }
 0x47e   : > { %v7319_v45 = vmul.f32 %v3448_v53, %v2193_v35  ;;  %v3451_v14 = vpop.f32.mrb[112].mxu1  ;;  %v2199_v53 = vmax.f32 %v5220_v43, 0.0  ;;  %v3821_v43 = vld [vmem:[%s6975_s27 + $0x1c8] sm:$0xff] }
 0x47f   : > { %v3452_v19 = vadd.f32 %v3451_v14, %v6844_v51  ;;  %v3453_v17 = vpop.f32.mrb[113].mxu1  ;;  %4234 = vmatmul.mubr.f32.gmra.mrb[218].mxu1 %v3936_v10  ;;  %v5222_v10 = vadd.f32 %v8130_v39, %v6833_v48  ;;  %v3949_v24 = vmul.f32 %v3821_v43, %v7263_v2 }
 0x480   : > { %v3454_v50 = vadd.f32 %v3453_v17, %v6849_v9  ;;  %4238 = vmatprep.mubr.f32.mxu1 %v3939_v33  ;;  %v3942_v33 = vmul.f32 %v3814_v23, %v7218_v28  ;;  %v8131_v17 = vld [vmem:[#allocation64_spill] sm:$0xff]  ;;  %v8132_v28 = vld [vmem:[#allocation65_spill] sm:$0xff] }
 0x481   : > { %v7330_v25 = vmul.f32 %v3452_v19, %v2194_v63  ;;  %v2200_v19 = vmax.f32 %v5221_v20, 0.0  ;;  %v5223_v5 = vadd.f32 %v8131_v17, %v6830_v55  ;;  %v3820_v20 = vld [vmem:[%s6975_s27 + $0x1c0] sm:$0xff] }
 0x482   : > { %v7333_v3 = vmul.f32 %v3454_v50, %v2195_v49  ;;  %v3457_v4 = vpop.f32.mrb[114].mxu1  ;;  %v2201_v50 = vmax.f32 %v5222_v10, 0.0  ;;  %v3823_v10 = vld [vmem:[%s6975_s27 + $0x1d8] sm:$0xff] }
 0x483   : > { %v3458_v46 = vadd.f32 %v3457_v4, %v6844_v51  ;;  %v3459_v8 = vpop.f32.mrb[115].mxu1  ;;  %4239 = vmatmul.mubr.f32.gmra.mrb[220].mxu1 %v3938_v26  ;;  %v5224_v26 = vadd.f32 %v8132_v28, %v6833_v48  ;;  %v3951_v17 = vmul.f32 %v3823_v10, %v7277_v31 }
 0x484   : > { %v3460_v11 = vadd.f32 %v3459_v8, %v6849_v9  ;;  %4243 = vmatprep.mubr.f32.mxu1 %v3941_v36  ;;  %v3944_v36 = vmul.f32 %v3816_v62, %v7232_v52  ;;  %v8133_v8 = vld [vmem:[#allocation66_spill] sm:$0xff]  ;;  %v8134_v52 = vld [vmem:[#allocation67_spill] sm:$0xff] }
 0x485   : > { %v7344_v22 = vmul.f32 %v3458_v46, %v2196_v38  ;;  %v2202_v46 = vmax.f32 %v5223_v5, 0.0  ;;  %v5225_v15 = vadd.f32 %v8133_v8, %v6830_v55  ;;  %v3822_v5 = vld [vmem:[%s6975_s27 + $0x1d0] sm:$0xff] }
 0x486   : > { %v7347_v0 = vmul.f32 %v3460_v11, %v2197_v60  ;;  %v3463_v6 = vpop.f32.mrb[116].mxu1  ;;  %v2203_v11 = vmax.f32 %v5224_v26, 0.0  ;;  %v3825_v26 = vld [vmem:[%s6975_s27 + $0x1e8] sm:$0xff] }
 0x487   : > { %v3464_v35 = vadd.f32 %v3463_v6, %v6844_v51  ;;  %v3465_v41 = vpop.f32.mrb[117].mxu1  ;;  %4244 = vmatmul.mubr.f32.gmra.mrb[222].mxu1 %v3940_v29  ;;  %v5226_v29 = vadd.f32 %v8134_v52, %v6833_v48  ;;  %v3953_v8 = vmul.f32 %v3825_v26, %v7291_v54 }
 0x488   : > { %v3466_v14 = vadd.f32 %v3465_v41, %v6849_v9  ;;  %4248 = vmatprep.mubr.f32.mxu1 %v3943_v37  ;;  %v3946_v37 = vmul.f32 %v3818_v12, %v7246_v1  ;;  %v8135_v41 = vld [vmem:[#allocation68_spill] sm:$0xff]  ;;  %v8136_v1 = vld [vmem:[#allocation69_spill] sm:$0xff] }
 0x489   : > { %v7358_v59 = vmul.f32 %v3464_v35, %v2198_v61  ;;  %v2204_v35 = vmax.f32 %v5225_v15, 0.0  ;;  %v5227_v44 = vadd.f32 %v8135_v41, %v6830_v55  ;;  %v3824_v15 = vld [vmem:[%s6975_s27 + $0x1e0] sm:$0xff] }
 0x48a   : > { %v7361_v30 = vmul.f32 %v3466_v14, %v2199_v53  ;;  %v3469_v63 = vpop.f32.mrb[118].mxu1  ;;  %v2205_v14 = vmax.f32 %v5226_v29, 0.0  ;;  %v3827_v29 = vld [vmem:[%s6975_s27 + $0x1f8] sm:$0xff] }
 0x48b   : > { %v3470_v49 = vadd.f32 %v3469_v63, %v6844_v51  ;;  %v3471_v47 = vpop.f32.mrb[119].mxu1  ;;  %4249 = vmatmul.mubr.f32.gmra.mrb[224].mxu1 %v3942_v33  ;;  %v5228_v33 = vadd.f32 %v8136_v1, %v6833_v48  ;;  %v3955_v41 = vmul.f32 %v3827_v29, %v7305_v18 }
 0x48c   : > { %v3472_v4 = vadd.f32 %v3471_v47, %v6849_v9  ;;  %4253 = vmatprep.mubr.f32.mxu1 %v3945_v58  ;;  %v3948_v58 = vmul.f32 %v3820_v20, %v7260_v16  ;;  %v8137_v47 = vld [vmem:[#allocation70_spill] sm:$0xff]  ;;  %v8138_v16 = vld [vmem:[#allocation71_spill] sm:$0xff] }
 0x48d   : > { %v7372_v32 = vmul.f32 %v3470_v49, %v2200_v19  ;;  %v2206_v49 = vmax.f32 %v5227_v44, 0.0  ;;  %v5229_v7 = vadd.f32 %v8137_v47, %v6830_v55  ;;  %v3826_v44 = vld [vmem:[%s6975_s27 + $0x1f0] sm:$0xff] }
 0x48e   : > { %v7375_v57 = vmul.f32 %v3472_v4, %v2201_v50  ;;  %v3475_v38 = vpop.f32.mrb[120].mxu1  ;;  %v2207_v4 = vmax.f32 %v5228_v33, 0.0  ;;  %v3829_v33 = vld [vmem:[%s6975_s27 + $0x208] sm:$0xff] }
 0x48f   : > { %v3476_v60 = vadd.f32 %v3475_v38, %v6844_v51  ;;  %v3477_v40 = vpop.f32.mrb[121].mxu1  ;;  %4254 = vmatmul.mubr.f32.gmra.mrb[226].mxu1 %v3944_v36  ;;  %v5230_v36 = vadd.f32 %v8138_v16, %v6833_v48  ;;  %v3957_v47 = vmul.f32 %v3829_v33, %v7319_v45 }
 0x490   : > { %v3478_v6 = vadd.f32 %v3477_v40, %v6849_v9  ;;  %4258 = vmatprep.mubr.f32.mxu1 %v3947_v34  ;;  %v3950_v34 = vmul.f32 %v3822_v5, %v7274_v13  ;;  %v8139_v40 = vld [vmem:[#allocation72_spill] sm:$0xff]  ;;  %v8140_v13 = vld [vmem:[#allocation73_spill] sm:$0xff] }
 0x491   : > { %v7386_v42 = vmul.f32 %v3476_v60, %v2202_v46  ;;  %v2208_v60 = vmax.f32 %v5229_v7, 0.0  ;;  %v5231_v43 = vadd.f32 %v8139_v40, %v6830_v55  ;;  %v3828_v7 = vld [vmem:[%s6975_s27 + $0x200] sm:$0xff] }
 0x492   : > { %v7389_v23 = vmul.f32 %v3478_v6, %v2203_v11  ;;  %v3481_v61 = vpop.f32.mrb[122].mxu1  ;;  %v2209_v6 = vmax.f32 %v5230_v36, 0.0  ;;  %v3831_v36 = vld [vmem:[%s6975_s27 + $0x218] sm:$0xff] }
 0x493   : > { %v3482_v53 = vadd.f32 %v3481_v61, %v6844_v51  ;;  %v3483_v39 = vpop.f32.mrb[123].mxu1  ;;  %4259 = vmatmul.mubr.f32.gmra.mrb[228].mxu1 %v3946_v37  ;;  %v5232_v37 = vadd.f32 %v8140_v13, %v6833_v48  ;;  %v3959_v40 = vmul.f32 %v3831_v36, %v7333_v3 }
 0x494   : > { %v3484_v63 = vadd.f32 %v3483_v39, %v6849_v9  ;;  %4263 = vmatprep.mubr.f32.mxu1 %v3949_v24  ;;  %v3952_v24 = vmul.f32 %v3824_v15, %v7288_v27  ;;  %v8141_v39 = vld [vmem:[#allocation74_spill] sm:$0xff]  ;;  %v8142_v27 = vld [vmem:[#allocation75_spill] sm:$0xff] }
 0x495   : > { %v7400_v2 = vmul.f32 %v3482_v53, %v2204_v35  ;;  %v2210_v53 = vmax.f32 %v5231_v43, 0.0  ;;  %v5233_v10 = vadd.f32 %v8141_v39, %v6830_v55  ;;  %v3830_v43 = vld [vmem:[%s6975_s27 + $0x210] sm:$0xff] }
 0x496   : > { %v7403_v62 = vmul.f32 %v3484_v63, %v2205_v14  ;;  %v3487_v19 = vpop.f32.mrb[124].mxu1  ;;  %v2211_v63 = vmax.f32 %v5232_v37, 0.0  ;;  %v3833_v37 = vld [vmem:[%s6975_s27 + $0x228] sm:$0xff] }
 0x497   : > { %v3488_v50 = vadd.f32 %v3487_v19, %v6844_v51  ;;  %v3489_v28 = vpop.f32.mrb[125].mxu1  ;;  %4264 = vmatmul.mubr.f32.gmra.mrb[230].mxu1 %v3948_v58  ;;  %v5234_v58 = vadd.f32 %v8142_v27, %v6833_v48  ;;  %v3961_v39 = vmul.f32 %v3833_v37, %v7347_v0 }
 0x498   : > { %v3490_v38 = vadd.f32 %v3489_v28, %v6849_v9  ;;  %4268 = vmatprep.mubr.f32.mxu1 %v3951_v17  ;;  %v3954_v17 = vmul.f32 %v3826_v44, %v7302_v56  ;;  %v8143_v28 = vld [vmem:[#allocation76_spill] sm:$0xff]  ;;  %v8144_v56 = vld [vmem:[#allocation77_spill] sm:$0xff] }
 0x499   : > { %v7414_v31 = vmul.f32 %v3488_v50, %v2206_v49  ;;  %v2212_v50 = vmax.f32 %v5233_v10, 0.0  ;;  %v5235_v26 = vadd.f32 %v8143_v28, %v6830_v55  ;;  %v3832_v10 = vld [vmem:[%s6975_s27 + $0x220] sm:$0xff] }
 0x49a   : > { %v7417_v12 = vmul.f32 %v3490_v38, %v2207_v4  ;;  %v3493_v46 = vpop.f32.mrb[126].mxu1  ;;  %v2213_v38 = vmax.f32 %v5234_v58, 0.0  ;;  %v3835_v58 = vld [vmem:[%s6975_s27 + $0x238] sm:$0xff] }
 0x49b   : > { %v3494_v11 = vadd.f32 %v3493_v46, %v6844_v51  ;;  %v3495_v52 = vpop.f32.mrb[127].mxu1  ;;  %4269 = vmatmul.mubr.f32.gmra.mrb[232].mxu1 %v3950_v34  ;;  %v5236_v34 = vadd.f32 %v8144_v56, %v6833_v48  ;;  %v3963_v28 = vmul.f32 %v3835_v58, %v7361_v30 }
 0x49c   : > { %v3496_v61 = vadd.f32 %v3495_v52, %v6849_v9  ;;  %4273 = vmatprep.mubr.f32.mxu1 %v3953_v8  ;;  %v3956_v8 = vmul.f32 %v3828_v7, %v7316_v21  ;;  %v8145_v52 = vld [vmem:[#allocation78_spill] sm:$0xff]  ;;  %v8146_v21 = vld [vmem:[#allocation79_spill] sm:$0xff] }
 0x49d   : > { %v7428_v54 = vmul.f32 %v3494_v11, %v2208_v60  ;;  %v2214_v11 = vmax.f32 %v5235_v26, 0.0  ;;  %v5237_v29 = vadd.f32 %v8145_v52, %v6830_v55  ;;  %v3834_v26 = vld [vmem:[%s6975_s27 + $0x230] sm:$0xff] }
 0x49e   : > { %v7431_v20 = vmul.f32 %v3496_v61, %v2209_v6  ;;  %v3499_v35 = vpop.f32.mrb[128].mxu1  ;;  %v2215_v61 = vmax.f32 %v5236_v34, 0.0  ;;  %v3837_v34 = vld [vmem:[%s6975_s27 + $0x248] sm:$0xff] }
 0x49f   : > { %v3500_v14 = vadd.f32 %v3499_v35, %v6844_v51  ;;  %v3501_v1 = vpop.f32.mrb[129].mxu1  ;;  %4274 = vmatmul.mubr.f32.gmra.mrb[234].mxu1 %v3952_v24  ;;  %v5238_v24 = vadd.f32 %v8146_v21, %v6833_v48  ;;  %v3965_v52 = vmul.f32 %v3837_v34, %v7375_v57 }
 0x4a0   : > { %v3502_v19 = vadd.f32 %v3501_v1, %v6849_v9  ;;  %4278 = vmatprep.mubr.f32.mxu1 %v3955_v41  ;;  %v3958_v41 = vmul.f32 %v3830_v43, %v7330_v25  ;;  %v8147_v1 = vld [vmem:[#allocation80_spill] sm:$0xff]  ;;  %v8148_v25 = vld [vmem:[#allocation81_spill] sm:$0xff] }
 0x4a1   : > { %v7442_v18 = vmul.f32 %v3500_v14, %v2210_v53  ;;  %v2216_v14 = vmax.f32 %v5237_v29, 0.0  ;;  %v5239_v33 = vadd.f32 %v8147_v1, %v6830_v55  ;;  %v3836_v29 = vld [vmem:[%s6975_s27 + $0x240] sm:$0xff] }
 0x4a2   : > { %v7445_v5 = vmul.f32 %v3502_v19, %v2211_v63  ;;  %v3505_v49 = vpop.f32.mrb[130].mxu1  ;;  %v2217_v19 = vmax.f32 %v5238_v24, 0.0  ;;  %v3839_v24 = vld [vmem:[%s6975_s27 + $0x258] sm:$0xff] }
 0x4a3   : > { %v3506_v4 = vadd.f32 %v3505_v49, %v6844_v51  ;;  %v3507_v16 = vpop.f32.mrb[131].mxu1  ;;  %4279 = vmatmul.mubr.f32.gmra.mrb[236].mxu1 %v3954_v17  ;;  %v5240_v17 = vadd.f32 %v8148_v25, %v6833_v48  ;;  %v3967_v1 = vmul.f32 %v3839_v24, %v7389_v23 }
 0x4a4   : > { %v3508_v46 = vadd.f32 %v3507_v16, %v6849_v9  ;;  %4283 = vmatprep.mubr.f32.mxu1 %v3957_v47  ;;  %v3960_v47 = vmul.f32 %v3832_v10, %v7344_v22  ;;  %v8149_v16 = vld [vmem:[#allocation82_spill] sm:$0xff]  ;;  %v8150_v22 = vld [vmem:[#allocation83_spill] sm:$0xff] }
 0x4a5   : > { %v7456_v45 = vmul.f32 %v3506_v4, %v2212_v50  ;;  %v2218_v4 = vmax.f32 %v5239_v33, 0.0  ;;  %v5241_v36 = vadd.f32 %v8149_v16, %v6830_v55  ;;  %v3838_v33 = vld [vmem:[%s6975_s27 + $0x250] sm:$0xff] }
 0x4a6   : > { %v7459_v15 = vmul.f32 %v3508_v46, %v2213_v38  ;;  %v3511_v60 = vpop.f32.mrb[132].mxu1  ;;  %v2219_v46 = vmax.f32 %v5240_v17, 0.0  ;;  %v3841_v17 = vld [vmem:[%s6975_s27 + $0x268] sm:$0xff] }
 0x4a7   : > { %v3512_v6 = vadd.f32 %v3511_v60, %v6844_v51  ;;  %v3513_v13 = vpop.f32.mrb[133].mxu1  ;;  %4284 = vmatmul.mubr.f32.gmra.mrb[238].mxu1 %v3956_v8  ;;  %v5242_v8 = vadd.f32 %v8150_v22, %v6833_v48  ;;  %v3969_v16 = vmul.f32 %v3841_v17, %v7403_v62 }
 0x4a8   : > { %v3514_v35 = vadd.f32 %v3513_v13, %v6849_v9  ;;  %4288 = vmatprep.mubr.f32.mxu1 %v3959_v40  ;;  %v3962_v40 = vmul.f32 %v3834_v26, %v7358_v59  ;;  %v8151_v13 = vld [vmem:[#allocation84_spill] sm:$0xff]  ;;  %v8152_v59 = vld [vmem:[#allocation85_spill] sm:$0xff] }
 0x4a9   : > { %v7470_v3 = vmul.f32 %v3512_v6, %v2214_v11  ;;  %v2220_v6 = vmax.f32 %v5241_v36, 0.0  ;;  %v5243_v37 = vadd.f32 %v8151_v13, %v6830_v55  ;;  %v3840_v36 = vld [vmem:[%s6975_s27 + $0x260] sm:$0xff] }
 0x4aa   : > { %v7473_v44 = vmul.f32 %v3514_v35, %v2215_v61  ;;  %v3517_v53 = vpop.f32.mrb[134].mxu1  ;;  %v2221_v35 = vmax.f32 %v5242_v8, 0.0  ;;  %v3843_v8 = vld [vmem:[%s6975_s27 + $0x278] sm:$0xff] }
 0x4ab   : > { %v3518_v63 = vadd.f32 %v3517_v53, %v6844_v51  ;;  %v3519_v27 = vpop.f32.mrb[135].mxu1  ;;  %4289 = vmatmul.mubr.f32.gmra.mrb[240].mxu1 %v3958_v41  ;;  %v5244_v41 = vadd.f32 %v8152_v59, %v6833_v48  ;;  %v3971_v13 = vmul.f32 %v3843_v8, %v7417_v12 }
 0x4ac   : > { %v3520_v49 = vadd.f32 %v3519_v27, %v6849_v9  ;;  %4293 = vmatprep.mubr.f32.mxu1 %v3961_v39  ;;  %v3964_v39 = vmul.f32 %v3836_v29, %v7372_v32  ;;  %v8153_v27 = vld [vmem:[#allocation86_spill] sm:$0xff]  ;;  %v8154_v32 = vld [vmem:[#allocation87_spill] sm:$0xff] }
 0x4ad   : > { %v7484_v0 = vmul.f32 %v3518_v63, %v2216_v14  ;;  %v2222_v63 = vmax.f32 %v5243_v37, 0.0  ;;  %v5245_v58 = vadd.f32 %v8153_v27, %v6830_v55  ;;  %v3842_v37 = vld [vmem:[%s6975_s27 + $0x270] sm:$0xff] }
 0x4ae   : > { %v7487_v7 = vmul.f32 %v3520_v49, %v2217_v19  ;;  %v3523_v50 = vpop.f32.mrb[136].mxu1  ;;  %v2223_v49 = vmax.f32 %v5244_v41, 0.0  ;;  %v3845_v41 = vld [vmem:[%s6975_s27 + $0x288] sm:$0xff] }
 0x4af   : > { %v3524_v38 = vadd.f32 %v3523_v50, %v6844_v51  ;;  %v3525_v56 = vpop.f32.mrb[137].mxu1  ;;  %4294 = vmatmul.mubr.f32.gmra.mrb[242].mxu1 %v3960_v47  ;;  %v5246_v47 = vadd.f32 %v8154_v32, %v6833_v48  ;;  %v3973_v27 = vmul.f32 %v3845_v41, %v7431_v20 }
 0x4b0   : > { %v3526_v60 = vadd.f32 %v3525_v56, %v6849_v9  ;;  %4298 = vmatprep.mubr.f32.mxu1 %v3963_v28  ;;  %v3966_v28 = vmul.f32 %v3838_v33, %v7386_v42  ;;  %v8155_v56 = vld [vmem:[#allocation88_spill] sm:$0xff]  ;;  %v8156_v42 = vld [vmem:[#allocation89_spill] sm:$0xff] }
 0x4b1   : > { %v7498_v30 = vmul.f32 %v3524_v38, %v2218_v4  ;;  %v2224_v38 = vmax.f32 %v5245_v58, 0.0  ;;  %v5247_v34 = vadd.f32 %v8155_v56, %v6830_v55  ;;  %v3844_v58 = vld [vmem:[%s6975_s27 + $0x280] sm:$0xff] }
 0x4b2   : > { %v7501_v43 = vmul.f32 %v3526_v60, %v2219_v46  ;;  %v3529_v11 = vpop.f32.mrb[138].mxu1  ;;  %v2225_v60 = vmax.f32 %v5246_v47, 0.0  ;;  %v3847_v47 = vld [vmem:[%s6975_s27 + $0x298] sm:$0xff]  ;;  %v3972_v20 = vmul.f32 %v3844_v58, %v7428_v54  ;;  %v8162_v54 = vld [vmem:[#allocation95_spill] sm:$0xff]  ;;  %v3850_v58 = vld [vmem:[%s6975_s27 + $0x2b0] sm:$0xff] }
 0x4b3   : > { %v3530_v61 = vadd.f32 %v3529_v11, %v6844_v51  ;;  %v3531_v21 = vpop.f32.mrb[139].mxu1  ;;  %4299 = vmatmul.mubr.f32.gmra.mrb[244].mxu1 %v3962_v40  ;;  %v5248_v40 = vadd.f32 %v8156_v42, %v6833_v48 }
 0x4b4   : > { %v3532_v53 = vadd.f32 %v3531_v21, %v6849_v9  ;;  %4303 = vmatprep.mubr.f32.mxu1 %v3965_v52  ;;  %v3968_v52 = vmul.f32 %v3840_v36, %v7400_v2  ;;  %v8157_v21 = vld [vmem:[#allocation90_spill] sm:$0xff]  ;;  %v8158_v2 = vld [vmem:[#allocation91_spill] sm:$0xff]  ;;  %v3846_v36 = vld [vmem:[%s6975_s27 + $0x290] sm:$0xff] }
 0x4b5   : > { %v7512_v57 = vmul.f32 %v3530_v61, %v2220_v6  ;;  %v2226_v61 = vmax.f32 %v5247_v34, 0.0  ;;  %v5249_v24 = vadd.f32 %v8157_v21, %v6830_v55  ;;  %v3975_v34 = vmul.f32 %v3847_v47, %v7445_v5 }
 0x4b6   : > { %v7515_v10 = vmul.f32 %v3532_v53, %v2221_v35  ;;  %v3535_v14 = vpop.f32.mrb[140].mxu1  ;;  %v2227_v53 = vmax.f32 %v5248_v40, 0.0  ;;  %v3849_v40 = vld [vmem:[%s6975_s27 + $0x2a8] sm:$0xff] }
 0x4b7   : > { %v3536_v19 = vadd.f32 %v3535_v14, %v6844_v51  ;;  %v3537_v25 = vpop.f32.mrb[141].mxu1  ;;  %4304 = vmatmul.mubr.f32.gmra.mrb[246].mxu1 %v3964_v39  ;;  %v5250_v39 = vadd.f32 %v8158_v2, %v6833_v48 }
 0x4b8   : > { %v3538_v50 = vadd.f32 %v3537_v25, %v6849_v9  ;;  %4308 = vmatprep.mubr.f32.mxu1 %v3967_v1  ;;  %v3970_v1 = vmul.f32 %v3842_v37, %v7414_v31  ;;  %v8159_v25 = vld [vmem:[#allocation92_spill] sm:$0xff]  ;;  %v8160_v31 = vld [vmem:[#allocation93_spill] sm:$0xff]  ;;  %v3848_v37 = vld [vmem:[%s6975_s27 + $0x2a0] sm:$0xff] }
 0x4b9   : > { %v7526_v23 = vmul.f32 %v3536_v19, %v2222_v63  ;;  %v2228_v19 = vmax.f32 %v5249_v24, 0.0  ;;  %v5251_v17 = vadd.f32 %v8159_v25, %v6830_v55  ;;  %v3977_v24 = vmul.f32 %v3849_v40, %v7459_v15 }
 0x4ba   : > { %v7529_v26 = vmul.f32 %v3538_v50, %v2223_v49  ;;  %v3541_v4 = vpop.f32.mrb[142].mxu1  ;;  %v2229_v50 = vmax.f32 %v5250_v39, 0.0  ;;  %v3851_v39 = vld [vmem:[%s6975_s27 + $0x2b8] sm:$0xff] }
 0x4bb   : > { %v3542_v46 = vadd.f32 %v3541_v4, %v6844_v51  ;;  %v3543_v22 = vpop.f32.mrb[143].mxu1  ;;  %4309 = vmatmul.mubr.f32.gmra.mrb[248].mxu1 %v3966_v28  ;;  %v5252_v28 = vadd.f32 %v8160_v31, %v6833_v48 }
 0x4bc   : > { %v3544_v11 = vadd.f32 %v3543_v22, %v6849_v9  ;;  %4313 = vmatprep.mubr.f32.mxu1 %v3969_v16  ;;  %v8161_v22 = vld [vmem:[#allocation94_spill] sm:$0xff] }
 0x4bd   : > { %v7540_v62 = vmul.f32 %v3542_v46, %v2224_v38  ;;  %v2230_v46 = vmax.f32 %v5251_v17, 0.0  ;;  %v5253_v8 = vadd.f32 %v8161_v22, %v6830_v55  ;;  %v3979_v17 = vmul.f32 %v3851_v39, %v7473_v44 }
 0x4be   : > { %v7543_v29 = vmul.f32 %v3544_v11, %v2225_v60  ;;  %v3547_v6 = vpop.f32.mrb[144].mxu1  ;;  %v2231_v11 = vmax.f32 %v5252_v28, 0.0  ;;  %v3853_v28 = vld [vmem:[%s6975_s27 + $0x2c8] sm:$0xff] }
 0x4bf   : > { %v3548_v35 = vadd.f32 %v3547_v6, %v6844_v51  ;;  %v3549_v59 = vpop.f32.mrb[145].mxu1  ;;  %4314 = vmatmul.mubr.f32.gmra.mrb[250].mxu1 %v3968_v52  ;;  %v5254_v52 = vadd.f32 %v8162_v54, %v6833_v48 }
 0x4c0   : > { %v3550_v14 = vadd.f32 %v3549_v59, %v6849_v9  ;;  %4318 = vmatprep.mubr.f32.mxu1 %v3971_v13  ;;  %v3974_v13 = vmul.f32 %v3846_v36, %v7442_v18  ;;  %v8163_v59 = vld [vmem:[#allocation96_spill] sm:$0xff] }
 0x4c1   : > { %v7554_v12 = vmul.f32 %v3548_v35, %v2226_v61  ;;  %v2232_v35 = vmax.f32 %v5253_v8, 0.0  ;;  %v5255_v41 = vadd.f32 %v8163_v59, %v6830_v55  ;;  %v2233_v18 = vmax.f32 %v5254_v52, 0.0  ;;  %v3855_v52 = vld [vmem:[%s6975_s27 + $0x2d8] sm:$0xff] }
 0x4c2   : > { %v7557_v33 = vmul.f32 %v3550_v14, %v2227_v53  ;;  %v3553_v63 = vpop.f32.mrb[146].mxu1  ;;  %v8164_v14 = vld [vmem:[#allocation97_spill] sm:$0xff]  ;;  %v3981_v8 = vmul.f32 %v3853_v28, %v7487_v7 }
 0x4c3   : > { %v3554_v49 = vadd.f32 %v3553_v63, %v6844_v51  ;;  %v3555_v32 = vpop.f32.mrb[147].mxu1  ;;  %4319 = vmatmul.mubr.f32.gmra.mrb[252].mxu1 %v3970_v1  ;;  %v5256_v1 = vadd.f32 %v8164_v14, %v6833_v48 }
 0x4c4   : > { %v3556_v4 = vadd.f32 %v3555_v32, %v6849_v9  ;;  %4323 = vmatprep.mubr.f32.mxu1 %v3973_v27  ;;  %v3976_v27 = vmul.f32 %v3848_v37, %v7456_v45  ;;  %v8165_v32 = vld [vmem:[#allocation98_spill] sm:$0xff] }
 0x4c5   : > { %v7568_v16 = vmul.f32 %v3554_v49, %v2228_v19  ;;  %v2234_v49 = vmax.f32 %v5255_v41, 0.0  ;;  %v5257_v47 = vadd.f32 %v8165_v32, %v6830_v55  ;;  %v2235_v45 = vmax.f32 %v5256_v1, 0.0  ;;  %v3857_v1 = vld [vmem:[%s6975_s27 + $0x2e8] sm:$0xff] }
 0x4c6   : > { %v7572_v38 = vmul.f32 %v3556_v4, %v2229_v50  ;;  %v3559_v56 = vpop.f32.mrb[148].mxu1  ;;  %v8166_v4 = vld [vmem:[#allocation99_spill] sm:$0xff]  ;;  %v3983_v41 = vmul.f32 %v3855_v52, %v7501_v43 }
 0x4c7   : > { %v3560_v60 = vadd.f32 %v3559_v56, %v6844_v51  ;;  %v3561_v42 = vpop.f32.mrb[149].mxu1  ;;  %4324 = vmatmul.mubr.f32.gmra.mrb[254].mxu1 %v3972_v20  ;;  %v5258_v20 = vadd.f32 %v8166_v4, %v6833_v48  ;;  %v3978_v56 = vmul.f32 %v3850_v58, %v7470_v3 }
 0x4c8   : > { %v3562_v6 = vadd.f32 %v3561_v42, %v6849_v9  ;;  %4328 = vmatprep.mubr.f32.mxu1 %v3975_v34  ;;  %v3852_v34 = vld [vmem:[%s6975_s27 + $0x2c0] sm:$0xff]  ;;  %v8167_v42 = vld [vmem:[#allocation100_spill] sm:$0xff] }
 0x4c9   : > { %v7583_v5 = vmul.f32 %v3560_v60, %v2230_v46  ;;  %v2236_v60 = vmax.f32 %v5257_v47, 0.0  ;;  %v5259_v40 = vadd.f32 %v8167_v42, %v6830_v55  ;;  %v2237_v3 = vmax.f32 %v5258_v20, 0.0  ;;  %v3859_v20 = vld [vmem:[%s6975_s27 + $0x2f8] sm:$0xff] }
 0x4ca   : > { %v7586_v61 = vmul.f32 %v3562_v6, %v2231_v11  ;;  %v3565_v21 = vpop.f32.mrb[150].mxu1  ;;  %v8168_v6 = vld [vmem:[#allocation101_spill] sm:$0xff]  ;;  %v3985_v47 = vmul.f32 %v3857_v1, %v7515_v10 }
 0x4cb   : > { %v3566_v53 = vadd.f32 %v3565_v21, %v6844_v51  ;;  %v3567_v2 = vpop.f32.mrb[151].mxu1  ;;  %4329 = vmatmul.mubr.f32.gmra.mrb[0].mxu1 %v3974_v13  ;;  %v5260_v13 = vadd.f32 %v8168_v6, %v6833_v48  ;;  %v3980_v21 = vmul.f32 %v3852_v34, %v7484_v0 }
 0x4cc   : > { %v3568_v63 = vadd.f32 %v3567_v2, %v6849_v9  ;;  %4333 = vmatprep.mubr.f32.mxu1 %v3977_v24  ;;  %v3854_v24 = vld [vmem:[%s6975_s27 + $0x2d0] sm:$0xff]  ;;  %v8169_v2 = vld [vmem:[#allocation102_spill] sm:$0xff] }
 0x4cd   : > { %v7597_v15 = vmul.f32 %v3566_v53, %v2232_v35  ;;  %v2238_v53 = vmax.f32 %v5259_v40, 0.0  ;;  %v5261_v39 = vadd.f32 %v8169_v2, %v6830_v55  ;;  %v2239_v0 = vmax.f32 %v5260_v13, 0.0  ;;  %v3861_v13 = vld [vmem:[%s6975_s27 + $0x308] sm:$0xff] }
 0x4ce   : > { %v7600_v19 = vmul.f32 %v3568_v63, %v2233_v18  ;;  %v3571_v25 = vpop.f32.mrb[152].mxu1  ;;  %v8170_v63 = vld [vmem:[#allocation103_spill] sm:$0xff]  ;;  %v3987_v40 = vmul.f32 %v3859_v20, %v7529_v26 }
 0x4cf   : > { %v3572_v50 = vadd.f32 %v3571_v25, %v6844_v51  ;;  %v3573_v31 = vpop.f32.mrb[153].mxu1  ;;  %4334 = vmatmul.mubr.f32.gmra.mrb[2].mxu1 %v3976_v27  ;;  %v5262_v27 = vadd.f32 %v8170_v63, %v6833_v48  ;;  %v3982_v25 = vmul.f32 %v3854_v24, %v7498_v30 }
 0x4d0   : > { %v3574_v36 = vadd.f32 %v3573_v31, %v6849_v9  ;;  %4338 = vmatprep.mubr.f32.mxu1 %v3979_v17  ;;  %v3856_v17 = vld [vmem:[%s6975_s27 + $0x2e0] sm:$0xff]  ;;  %v8171_v31 = vld [vmem:[#allocation104_spill] sm:$0xff] }
 0x4d1   : > { %v7611_v44 = vmul.f32 %v3572_v50, %v2234_v49  ;;  %v2240_v50 = vmax.f32 %v5261_v39, 0.0  ;;  %v5263_v28 = vadd.f32 %v8171_v31, %v6830_v55  ;;  %v2241_v30 = vmax.f32 %v5262_v27, 0.0  ;;  %v3863_v27 = vld [vmem:[%s6975_s27 + $0x318] sm:$0xff] }
 0x4d2   : > { %v7614_v46 = vmul.f32 %v3574_v36, %v2235_v45  ;;  %v3577_v22 = vpop.f32.mrb[154].mxu1  ;;  %v8172_v36 = vld [vmem:[#allocation105_spill] sm:$0xff]  ;;  %v3989_v39 = vmul.f32 %v3861_v13, %v7543_v29 }
 0x4d3   : > { %v3578_v11 = vadd.f32 %v3577_v22, %v6844_v51  ;;  %v3579_v54 = vpop.f32.mrb[155].mxu1  ;;  %4339 = vmatmul.mubr.f32.gmra.mrb[4].mxu1 %v3978_v56  ;;  %v5264_v56 = vadd.f32 %v8172_v36, %v6833_v48  ;;  %v3984_v22 = vmul.f32 %v3856_v17, %v7512_v57 }
 0x4d4   : > { %v3580_v37 = vadd.f32 %v3579_v54, %v6849_v9  ;;  %4343 = vmatprep.mubr.f32.mxu1 %v3981_v8  ;;  %v3858_v8 = vld [vmem:[%s6975_s27 + $0x2f0] sm:$0xff]  ;;  %v8173_v54 = vld [vmem:[#allocation106_spill] sm:$0xff] }
 0x4d5   : > { %v7625_v7 = vmul.f32 %v3578_v11, %v2236_v60  ;;  %v2242_v11 = vmax.f32 %v5263_v28, 0.0  ;;  %v5265_v52 = vadd.f32 %v8173_v54, %v6830_v55  ;;  %v2243_v57 = vmax.f32 %v5264_v56, 0.0  ;;  %v3865_v56 = vld [vmem:[%s6975_s27 + $0x328] sm:$0xff] }
 0x4d6   : > { %v7628_v35 = vmul.f32 %v3580_v37, %v2237_v3  ;;  %v3583_v59 = vpop.f32.mrb[156].mxu1  ;;  %v8174_v37 = vld [vmem:[#allocation107_spill] sm:$0xff]  ;;  %v3991_v28 = vmul.f32 %v3863_v27, %v7557_v33 }
 0x4d7   : > { %v3584_v18 = vadd.f32 %v3583_v59, %v6844_v51  ;;  %v3585_v14 = vpop.f32.mrb[157].mxu1  ;;  %4344 = vmatmul.mubr.f32.gmra.mrb[6].mxu1 %v3980_v21  ;;  %v5266_v21 = vadd.f32 %v8174_v37, %v6833_v48  ;;  %v3986_v59 = vmul.f32 %v3858_v8, %v7526_v23 }
 0x4d8   : > { %v3586_v58 = vadd.f32 %v3585_v14, %v6849_v9  ;;  %4348 = vmatprep.mubr.f32.mxu1 %v3983_v41  ;;  %v3860_v41 = vld [vmem:[%s6975_s27 + $0x300] sm:$0xff]  ;;  %v8175_v14 = vld [vmem:[#allocation108_spill] sm:$0xff] }
 0x4d9   : > { %v7639_v43 = vmul.f32 %v3584_v18, %v2238_v53  ;;  %v2244_v18 = vmax.f32 %v5265_v52, 0.0  ;;  %v5267_v1 = vadd.f32 %v8175_v14, %v6830_v55  ;;  %v2245_v23 = vmax.f32 %v5266_v21, 0.0  ;;  %v3867_v21 = vld [vmem:[%s6975_s27 + $0x338] sm:$0xff] }
 0x4da   : > { %v7642_v49 = vmul.f32 %v3586_v58, %v2239_v0  ;;  %v3589_v32 = vpop.f32.mrb[158].mxu1  ;;  %v8176_v58 = vld [vmem:[#allocation109_spill] sm:$0xff]  ;;  %v3993_v52 = vmul.f32 %v3865_v56, %v7572_v38 }
 0x4db   : > { %v3590_v45 = vadd.f32 %v3589_v32, %v6844_v51  ;;  %v3591_v4 = vpop.f32.mrb[159].mxu1  ;;  %4349 = vmatmul.mubr.f32.gmra.mrb[8].mxu1 %v3982_v25  ;;  %v5268_v25 = vadd.f32 %v8176_v58, %v6833_v48  ;;  %v3988_v32 = vmul.f32 %v3860_v41, %v7540_v62 }
 0x4dc   : > { %v3592_v34 = vadd.f32 %v3591_v4, %v6849_v9  ;;  %4353 = vmatprep.mubr.f32.mxu1 %v3985_v47  ;;  %v3862_v47 = vld [vmem:[%s6975_s27 + $0x310] sm:$0xff]  ;;  %v8177_v4 = vld [vmem:[#allocation110_spill] sm:$0xff] }
 0x4dd   : > { %v7653_v10 = vmul.f32 %v3590_v45, %v2240_v50  ;;  %v2246_v45 = vmax.f32 %v5267_v1, 0.0  ;;  %v5269_v20 = vadd.f32 %v8177_v4, %v6830_v55  ;;  %v2247_v62 = vmax.f32 %v5268_v25, 0.0  ;;  %v3869_v25 = vld [vmem:[%s6975_s27 + $0x348] sm:$0xff] }
 0x4de   : > { %v7656_v60 = vmul.f32 %v3592_v34, %v2241_v30  ;;  %v3595_v42 = vpop.f32.mrb[160].mxu1  ;;  %v8178_v34 = vld [vmem:[#allocation111_spill] sm:$0xff]  ;;  %v3995_v1 = vmul.f32 %v3867_v21, %v7586_v61 }
 0x4df   : > { %v3596_v3 = vadd.f32 %v3595_v42, %v6844_v51  ;;  %v3597_v6 = vpop.f32.mrb[161].mxu1  ;;  %4354 = vmatmul.mubr.f32.gmra.mrb[10].mxu1 %v3984_v22  ;;  %v5270_v22 = vadd.f32 %v8178_v34, %v6833_v48  ;;  %v3990_v42 = vmul.f32 %v3862_v47, %v7554_v12 }
 0x4e0   : > { %v3598_v24 = vadd.f32 %v3597_v6, %v6849_v9  ;;  %4358 = vmatprep.mubr.f32.mxu1 %v3987_v40  ;;  %v3864_v40 = vld [vmem:[%s6975_s27 + $0x320] sm:$0xff]  ;;  %v8179_v6 = vld [vmem:[#allocation112_spill] sm:$0xff] }
 0x4e1   : > { %v7667_v26 = vmul.f32 %v3596_v3, %v2242_v11  ;;  %v2248_v3 = vmax.f32 %v5269_v20, 0.0  ;;  %v5271_v13 = vadd.f32 %v8179_v6, %v6830_v55  ;;  %v2249_v12 = vmax.f32 %v5270_v22, 0.0  ;;  %v3871_v22 = vld [vmem:[%s6975_s27 + $0x358] sm:$0xff] }
 0x4e2   : > { %v7670_v53 = vmul.f32 %v3598_v24, %v2243_v57  ;;  %v3601_v2 = vpop.f32.mrb[162].mxu1  ;;  %v8180_v24 = vld [vmem:[#allocation113_spill] sm:$0xff]  ;;  %v3997_v20 = vmul.f32 %v3869_v25, %v7600_v19  ;;  %v3999_v6 = vmul.f32 %v3871_v22, %v7614_v46  ;;  %v3876_v25 = vld [vmem:[%s6975_s27 + $0x380] sm:$0xff] }
 0x4e3   : > { %v3602_v0 = vadd.f32 %v3601_v2, %v6844_v51  ;;  %v3603_v63 = vpop.f32.mrb[163].mxu1  ;;  %4359 = vmatmul.mubr.f32.gmra.mrb[12].mxu1 %v3986_v59  ;;  %v5272_v59 = vadd.f32 %v8180_v24, %v6833_v48  ;;  %v3992_v2 = vmul.f32 %v3864_v40, %v7568_v16 }
 0x4e4   : > { %v3604_v17 = vadd.f32 %v3603_v63, %v6849_v9  ;;  %4363 = vmatprep.mubr.f32.mxu1 %v3989_v39  ;;  %v3866_v39 = vld [vmem:[%s6975_s27 + $0x330] sm:$0xff]  ;;  %v8181_v63 = vld [vmem:[#allocation114_spill] sm:$0xff] }
 0x4e5   : > { %v7681_v29 = vmul.f32 %v3602_v0, %v2244_v18  ;;  %v2250_v0 = vmax.f32 %v5271_v13, 0.0  ;;  %v5273_v27 = vadd.f32 %v8181_v63, %v6830_v55  ;;  %v2251_v16 = vmax.f32 %v5272_v59, 0.0  ;;  %v3872_v59 = vld [vmem:[%s6975_s27 + $0x360] sm:$0xff] }
 0x4e6   : > { %v7684_v50 = vmul.f32 %v3604_v17, %v2245_v23  ;;  %v3607_v31 = vpop.f32.mrb[164].mxu1  ;;  %v8182_v17 = vld [vmem:[#allocation115_spill] sm:$0xff] }
 0x4e7   : > { %v3608_v30 = vadd.f32 %v3607_v31, %v6844_v51  ;;  %v3609_v36 = vpop.f32.mrb[165].mxu1  ;;  %4364 = vmatmul.mubr.f32.gmra.mrb[14].mxu1 %v3988_v32  ;;  %v5274_v32 = vadd.f32 %v8182_v17, %v6833_v48  ;;  %v3994_v31 = vmul.f32 %v3866_v39, %v7583_v5  ;;  %v3875_v39 = vld [vmem:[%s6975_s27 + $0x378] sm:$0xff] }
 0x4e8   : > { %v3610_v8 = vadd.f32 %v3609_v36, %v6849_v9  ;;  %4368 = vmatprep.mubr.f32.mxu1 %v3991_v28  ;;  %v3868_v28 = vld [vmem:[%s6975_s27 + $0x340] sm:$0xff]  ;;  %v8183_v36 = vld [vmem:[#allocation116_spill] sm:$0xff]  ;;  %v4003_v63 = vmul.f32 %v3875_v39, %v7642_v49 }
 0x4e9   : > { %v7695_v33 = vmul.f32 %v3608_v30, %v2246_v45  ;;  %v2252_v30 = vmax.f32 %v5273_v27, 0.0  ;;  %v5275_v56 = vadd.f32 %v8183_v36, %v6830_v55  ;;  %v2253_v5 = vmax.f32 %v5274_v32, 0.0  ;;  %v3879_v32 = vld [vmem:[%s6975_s27 + $0x398] sm:$0xff]  ;;  %v3880_v36 = vld [vmem:[%s6975_s27 + $0x3a0] sm:$0xff]  ;;  %v3890_v39 = vld [vmem:[%s6975_s27 + $0x3f0] sm:$0xff] }
 0x4ea   : > { %v7698_v11 = vmul.f32 %v3610_v8, %v2247_v62  ;;  %v3613_v54 = vpop.f32.mrb[166].mxu1  ;;  %v8184_v8 = vld [vmem:[#allocation117_spill] sm:$0xff]  ;;  %v4008_v22 = vmul.f32 %v3880_v36, %v7681_v29 }
 0x4eb   : > { %v3614_v57 = vadd.f32 %v3613_v54, %v6844_v51  ;;  %v3615_v37 = vpop.f32.mrb[167].mxu1  ;;  %4369 = vmatmul.mubr.f32.gmra.mrb[16].mxu1 %v3990_v42  ;;  %v5276_v42 = vadd.f32 %v8184_v8, %v6833_v48  ;;  %v3996_v54 = vmul.f32 %v3868_v28, %v7597_v15  ;;  %v2254_v13 = vmax.f32 %v5275_v56, 0.0  ;;  %v3873_v48 = vld [vmem:[%s6975_s27 + $0x368] sm:$0xff] }
 0x4ec   : > { %v3616_v41 = vadd.f32 %v3615_v37, %v6849_v9  ;;  %4373 = vmatprep.mubr.f32.mxu1 %v3993_v52  ;;  %v3870_v52 = vld [vmem:[%s6975_s27 + $0x350] sm:$0xff]  ;;  %v4007_v28 = vmul.f32 %v3879_v32, %v7670_v53 }
 0x4ed   : > { %v7709_v38 = vmul.f32 %v3614_v57, %v2248_v3  ;;  %v2255_v21 = vmax.f32 %v5276_v42, 0.0  ;;  %v3998_v24 = vmul.f32 %v3870_v52, %v7611_v44  ;;  %v3884_v52 = vld [vmem:[%s6975_s27 + $0x3c0] sm:$0xff] }
 0x4ee   : > { %v7712_v18 = vmul.f32 %v3616_v41, %v2249_v12  ;;  %v3619_v14 = vpop.f32.mrb[168].mxu1  ;;  %v7749_v12 = vld [vmem:[%s7943_s10] ss:$0 sm:$0xff]  ;;  %v4001_v41 = vmul.f32 %v3873_v48, %v7628_v35 }
 0x4ef   : > { %v3620_v23 = vadd.f32 %v3619_v14, %v6844_v51  ;;  %v3621_v58 = vpop.f32.mrb[169].mxu1  ;;  %4374 = vmatmul.mubr.f32.gmra.mrb[18].mxu1 %v3992_v2  ;;  %v4000_v14 = vmul.f32 %v3872_v59, %v7625_v7  ;;  %v3888_v59 = vld [vmem:[%s6975_s27 + $0x3e0] sm:$0xff] }
 0x4f0   : > { %v3622_v47 = vadd.f32 %v3621_v58, %v6849_v9  ;;  %4378 = vmatprep.mubr.f32.mxu1 %v3995_v1  ;;  %v3874_v1 = vld [vmem:[%s6975_s27 + $0x370] sm:$0xff] }
 0x4f1   : > { %v7723_v61 = vmul.f32 %v3620_v23, %v2250_v0  ;;  %v3877_v23 = vld [vmem:[%s6975_s27 + $0x388] sm:$0xff]  ;;  %v4002_v58 = vmul.f32 %v3874_v1, %v7639_v43 }
 0x4f2   : > { %v7726_v45 = vmul.f32 %v3622_v47, %v2251_v16  ;;  %v3625_v4 = vpop.f32.mrb[170].mxu1  ;;  %v4005_v16 = vmul.f32 %v3877_v23, %v7656_v60  ;;  %v4004_v47 = vmul.f32 %v3876_v25, %v7653_v10 }
 0x4f3   : > { %v3626_v62 = vadd.f32 %v3625_v4, %v6844_v51  ;;  %v3627_v34 = vpop.f32.mrb[171].mxu1  ;;  %4379 = vmatmul.mubr.f32.gmra.mrb[20].mxu1 %v3994_v31  ;;  %v3878_v31 = vld [vmem:[%s6975_s27 + $0x390] sm:$0xff] }
 0x4f4   : > { %v3628_v40 = vadd.f32 %v3627_v34, %v6849_v9  ;;  %4383 = vmatprep.mubr.f32.mxu1 %v3997_v20  ;;  %v3881_v20 = vld [vmem:[%s6975_s27 + $0x3a8] sm:$0xff]  ;;  %v3883_v34 = vld [vmem:[%s6975_s27 + $0x3b8] sm:$0xff] }
 0x4f5   : > { %v7737_v19 = vmul.f32 %v3626_v62, %v2252_v30  ;;  %v4006_v30 = vmul.f32 %v3878_v31, %v7667_v26  ;;  %v4009_v56 = vmul.f32 %v3881_v20, %v7684_v50  ;;  %v4011_v8 = vmul.f32 %v3883_v34, %v7698_v11 }
 0x4f6   : > { %v7740_v55 = vmul.f32 %v3628_v40, %v2253_v5  ;;  %v3631_v3 = vpop.f32.mrb[172].mxu1  ;;  %v3882_v5 = vld [vmem:[%s6975_s27 + $0x3b0] sm:$0xff]  ;;  %v3885_v40 = vld [vmem:[%s6975_s27 + $0x3c8] sm:$0xff] }
 0x4f7   : > { %v3632_v57 = vadd.f32 %v3631_v3, %v6844_v51  ;;  %v3633_v37 = vpop.f32.mrb[173].mxu1  ;;  %4384 = vmatmul.mubr.f32.gmra.mrb[22].mxu1 %v3996_v54  ;;  %v4010_v54 = vmul.f32 %v3882_v5, %v7695_v33  ;;  %v4013_v3 = vmul.f32 %v3885_v40, %v7712_v18 }
 0x4f8   : > { %v3634_v15 = vadd.f32 %v3633_v37, %v6849_v9  ;;  %4388 = vmatprep.mubr.f32.mxu1 %v3999_v6  ;;  %v3886_v37 = vld [vmem:[%s6975_s27 + $0x3d0] sm:$0xff] }
 0x4f9   : > { %v7752_v46 = vmul.f32 %v3632_v57, %v2254_v13  ;;  %v3887_v13 = vld [vmem:[%s6975_s27 + $0x3d8] sm:$0xff]  ;;  %v4012_v57 = vmul.f32 %v3884_v52, %v7709_v38 }
 0x4fa   : > { %v7755_v51 = vmul.f32 %v3634_v15, %v2255_v21  ;;  %v4125_v9 = vpop.f32.mrb[174].mxu1  ;;  %v4015_v48 = vmul.f32 %v3887_v13, %v7726_v45  ;;  %v3889_v15 = vld [vmem:[%s6975_s27 + $0x3e8] sm:$0xff]  ;;  %v3891_v45 = vld [vmem:[%s6975_s27 + $0x3f8] sm:$0xff] }
 0x4fb   : > { %v4126_v2 = vadd.f32 %v7749_v12, %v4125_v9  ;;  %v4127_v44 = vpop.f32.mrb[175].mxu1  ;;  %4389 = vmatmul.mubr.f32.gmra.mrb[24].mxu1 %v3998_v24  ;;  %v4014_v24 = vmul.f32 %v3886_v37, %v7723_v61  ;;  %v4017_v38 = vmul.f32 %v3889_v15, %v7740_v55  ;;  %v4018_v55 = vmul.f32 %v3890_v39, %v7752_v46 }
 0x4fc   : > { %4393 = vmatprep.mubr.f32.mxu1 %v4001_v41  ;;  %v4016_v44 = vmul.f32 %v3888_v59, %v7737_v19  ;;  %v4019_v61 = vmul.f32 %v3891_v45, %v7755_v51 }
 0x4fd   : > { %4444 = vst [vmem:[%s7762_s15] sm:$0xff] %v4126_v2 }
 0x4fe   : > { %v4130_v0 = vpop.f32.mrb[176].mxu1 }
 0x4ff   : > { %v4131_v27 = vadd.f32 %v7749_v12, %v4130_v0  ;;  %v4132_v35 = vpop.f32.mrb[177].mxu1  ;;  %4394 = vmatmul.mubr.f32.gmra.mrb[26].mxu1 %v4000_v14 }
 0x500   : > { %4398 = vmatprep.mubr.f32.mxu1 %v4003_v63 }
 0x501   : > { %4445 = vst [vmem:[%s7762_s15 + $0x8] sm:$0xff] %v4131_v27 }
 0x502   : > { %v4135_v7 = vpop.f32.mrb[178].mxu1 }
 0x503   : > { %v4136_v17 = vadd.f32 %v7749_v12, %v4135_v7  ;;  %v4137_v49 = vpop.f32.mrb[179].mxu1  ;;  %4399 = vmatmul.mubr.f32.gmra.mrb[28].mxu1 %v4002_v58 }
 0x504   : > { %4403 = vmatprep.mubr.f32.mxu1 %v4005_v16 }
 0x505   : > { %4446 = vst [vmem:[%s7762_s15 + $0x10] sm:$0xff] %v4136_v17 }
 0x506   : > { %v4140_v43 = vpop.f32.mrb[180].mxu1 }
 0x507   : > { %v4141_v4 = vadd.f32 %v7749_v12, %v4140_v43  ;;  %v4142_v60 = vpop.f32.mrb[181].mxu1  ;;  %4404 = vmatmul.mubr.f32.gmra.mrb[30].mxu1 %v4004_v47 }
 0x508   : > { %4408 = vmatprep.mubr.f32.mxu1 %v4007_v28 }
 0x509   : > { %4447 = vst [vmem:[%s7762_s15 + $0x18] sm:$0xff] %v4141_v4 }
 0x50a   : > { %v4145_v10 = vpop.f32.mrb[182].mxu1 }
 0x50b   : > { %v4146_v62 = vadd.f32 %v7749_v12, %v4145_v10  ;;  %v4147_v53 = vpop.f32.mrb[183].mxu1  ;;  %4409 = vmatmul.mubr.f32.gmra.mrb[32].mxu1 %v4006_v30 }
 0x50c   : > { %4413 = vmatprep.mubr.f32.mxu1 %v4009_v56 }
 0x50d   : > { %4448 = vst [vmem:[%s7762_s15 + $0x20] sm:$0xff] %v4146_v62 }
 0x50e   : > { %v4150_v26 = vpop.f32.mrb[184].mxu1 }
 0x50f   : > { %v4151_v42 = vadd.f32 %v7749_v12, %v4150_v26  ;;  %v4152_v50 = vpop.f32.mrb[185].mxu1  ;;  %4414 = vmatmul.mubr.f32.gmra.mrb[34].mxu1 %v4008_v22 }
 0x510   : > { %4418 = vmatprep.mubr.f32.mxu1 %v4011_v8 }
 0x511   : > { %4449 = vst [vmem:[%s7762_s15 + $0x28] sm:$0xff] %v4151_v42 }
 0x512   : > { %v4155_v29 = vpop.f32.mrb[186].mxu1 }
 0x513   : > { %v4156_v6 = vadd.f32 %v7749_v12, %v4155_v29  ;;  %v4157_v11 = vpop.f32.mrb[187].mxu1  ;;  %4419 = vmatmul.mubr.f32.gmra.mrb[36].mxu1 %v4010_v54 }
 0x514   : > { %4423 = vmatprep.mubr.f32.mxu1 %v4013_v3 }
 0x515   : > { %4450 = vst [vmem:[%s7762_s15 + $0x30] sm:$0xff] %v4156_v6 }
 0x516   : > { %v4160_v33 = vpop.f32.mrb[188].mxu1 }
 0x517   : > { %v4161_v21 = vadd.f32 %v7749_v12, %v4160_v33  ;;  %v4162_v18 = vpop.f32.mrb[189].mxu1  ;;  %4424 = vmatmul.mubr.f32.gmra.mrb[38].mxu1 %v4012_v57 }
 0x518   : > { %4428 = vmatprep.mubr.f32.mxu1 %v4015_v48 }
 0x519   : > { %4451 = vst [vmem:[%s7762_s15 + $0x38] sm:$0xff] %v4161_v21 }
 0x51a   : > { %v4165_v9 = vpop.f32.mrb[190].mxu1 }
 0x51b   : > { %v4166_v41 = vadd.f32 %v7749_v12, %v4165_v9  ;;  %v4167_v2 = vpop.f32.mrb[191].mxu1  ;;  %4429 = vmatmul.mubr.f32.gmra.mrb[40].mxu1 %v4014_v24 }
 0x51c   : > { %4433 = vmatprep.mubr.f32.mxu1 %v4017_v38 }
 0x51d   : > { %4452 = vst [vmem:[%s7762_s15 + $0x40] sm:$0xff] %v4166_v41 }
 0x51e   : > { %v4170_v14 = vpop.f32.mrb[192].mxu1 }
 0x51f   : > { %v4171_v1 = vadd.f32 %v7749_v12, %v4170_v14  ;;  %v4172_v0 = vpop.f32.mrb[193].mxu1  ;;  %4434 = vmatmul.mubr.f32.gmra.mrb[42].mxu1 %v4016_v44 }
 0x520   : > { %4438 = vmatprep.mubr.f32.mxu1 %v4019_v61 }
 0x521   : > { %4453 = vst [vmem:[%s7762_s15 + $0x48] sm:$0xff] %v4171_v1 }
 0x522   : > { %v4175_v63 = vpop.f32.mrb[194].mxu1 }
 0x523   : > { %v4176_v27 = vadd.f32 %v7749_v12, %v4175_v63  ;;  %v4177_v19 = vpop.f32.mrb[195].mxu1  ;;  %4439 = vmatmul.mubr.f32.gmra.mrb[44].mxu1 %v4018_v55 }
 0x525   : > { %4454 = vst [vmem:[%s7762_s15 + $0x50] sm:$0xff] %v4176_v27 }
 0x526   : > { %v4180_v35 = vpop.f32.mrb[196].mxu1 }
 0x527   : > { %v4181_v51 = vadd.f32 %v7749_v12, %v4180_v35  ;;  %v4182_v23 = vpop.f32.mrb[197].mxu1 }
 0x529   : > { %4455 = vst [vmem:[%s7762_s15 + $0x58] sm:$0xff] %v4181_v51 }
 0x52a   : > { %v4185_v58 = vpop.f32.mrb[198].mxu1 }
 0x52b   : > { %v4186_v25 = vadd.f32 %v7749_v12, %v4185_v58  ;;  %v4187_v7 = vpop.f32.mrb[199].mxu1 }
 0x52d   : > { %4456 = vst [vmem:[%s7762_s15 + $0x60] sm:$0xff] %v4186_v25 }
 0x52e   : > { %v4190_v46 = vpop.f32.mrb[200].mxu1 }
 0x52f   : > { %v4191_v16 = vadd.f32 %v7749_v12, %v4190_v46  ;;  %v4192_v17 = vpop.f32.mrb[201].mxu1 }
 0x531   : > { %4457 = vst [vmem:[%s7762_s15 + $0x68] sm:$0xff] %v4191_v16 }
 0x532   : > { %v4195_v49 = vpop.f32.mrb[202].mxu1 }
 0x533   : > { %v4196_v32 = vadd.f32 %v7749_v12, %v4195_v49  ;;  %v4197_v47 = vpop.f32.mrb[203].mxu1 }
 0x535   : > { %4458 = vst [vmem:[%s7762_s15 + $0x70] sm:$0xff] %v4196_v32 }
 0x536   : > { %v4200_v31 = vpop.f32.mrb[204].mxu1 }
 0x537   : > { %v4201_v43 = vadd.f32 %v7749_v12, %v4200_v31  ;;  %v4202_v28 = vpop.f32.mrb[205].mxu1 }
 0x539   : > { %4459 = vst [vmem:[%s7762_s15 + $0x78] sm:$0xff] %v4201_v43 }
 0x53a   : > { %v4205_v4 = vpop.f32.mrb[206].mxu1 }
 0x53b   : > { %v4206_v60 = vadd.f32 %v7749_v12, %v4205_v4  ;;  %v4207_v20 = vpop.f32.mrb[207].mxu1 }
 0x53d   : > { %4460 = vst [vmem:[%s7762_s15 + $0x80] sm:$0xff] %v4206_v60 }
 0x53e   : > { %v4210_v30 = vpop.f32.mrb[208].mxu1 }
 0x53f   : > { %v4211_v36 = vadd.f32 %v7749_v12, %v4210_v30  ;;  %v4212_v10 = vpop.f32.mrb[209].mxu1 }
 0x541   : > { %4461 = vst [vmem:[%s7762_s15 + $0x88] sm:$0xff] %v4211_v36 }
 0x542   : > { %v4215_v56 = vpop.f32.mrb[210].mxu1 }
 0x543   : > { %v4216_v62 = vadd.f32 %v7749_v12, %v4215_v56  ;;  %v4217_v53 = vpop.f32.mrb[211].mxu1 }
 0x545   : > { %4462 = vst [vmem:[%s7762_s15 + $0x90] sm:$0xff] %v4216_v62 }
 0x546   : > { %v4220_v34 = vpop.f32.mrb[212].mxu1 }
 0x547   : > { %v4221_v22 = vadd.f32 %v7749_v12, %v4220_v34  ;;  %v4222_v5 = vpop.f32.mrb[213].mxu1 }
 0x549   : > { %4463 = vst [vmem:[%s7762_s15 + $0x98] sm:$0xff] %v4221_v22 }
 0x54a   : > { %v4225_v26 = vpop.f32.mrb[214].mxu1 }
 0x54b   : > { %v4226_v8 = vadd.f32 %v7749_v12, %v4225_v26  ;;  %v4227_v42 = vpop.f32.mrb[215].mxu1 }
 0x54d   : > { %4464 = vst [vmem:[%s7762_s15 + $0xa0] sm:$0xff] %v4226_v8 }
 0x54e   : > { %v4230_v50 = vpop.f32.mrb[216].mxu1 }
 0x54f   : > { %v4231_v40 = vadd.f32 %v7749_v12, %v4230_v50  ;;  %v4232_v54 = vpop.f32.mrb[217].mxu1 }
 0x551   : > { %4465 = vst [vmem:[%s7762_s15 + $0xa8] sm:$0xff] %v4231_v40 }
 0x552   : > { %v4235_v52 = vpop.f32.mrb[218].mxu1 }
 0x553   : > { %v4236_v29 = vadd.f32 %v7749_v12, %v4235_v52  ;;  %v4237_v3 = vpop.f32.mrb[219].mxu1 }
 0x555   : > { %4466 = vst [vmem:[%s7762_s15 + $0xb0] sm:$0xff] %v4236_v29 }
 0x556   : > { %v4240_v6 = vpop.f32.mrb[220].mxu1 }
 0x557   : > { %v4241_v11 = vadd.f32 %v7749_v12, %v4240_v6  ;;  %v4242_v13 = vpop.f32.mrb[221].mxu1 }
 0x559   : > { %4467 = vst [vmem:[%s7762_s15 + $0xb8] sm:$0xff] %v4241_v11 }
 0x55a   : > { %v4245_v57 = vpop.f32.mrb[222].mxu1 }
 0x55b   : > { %v4246_v37 = vadd.f32 %v7749_v12, %v4245_v57  ;;  %v4247_v33 = vpop.f32.mrb[223].mxu1 }
 0x55d   : > { %4468 = vst [vmem:[%s7762_s15 + $0xc0] sm:$0xff] %v4246_v37 }
 0x55e   : > { %v4250_v48 = vpop.f32.mrb[224].mxu1 }
 0x55f   : > { %v4251_v21 = vadd.f32 %v7749_v12, %v4250_v48  ;;  %v4252_v18 = vpop.f32.mrb[225].mxu1 }
 0x561   : > { %4469 = vst [vmem:[%s7762_s15 + $0xc8] sm:$0xff] %v4251_v21 }
 0x562   : > { %v4255_v15 = vpop.f32.mrb[226].mxu1 }
 0x563   : > { %v4256_v24 = vadd.f32 %v7749_v12, %v4255_v15  ;;  %v4257_v59 = vpop.f32.mrb[227].mxu1 }
 0x565   : > { %4470 = vst [vmem:[%s7762_s15 + $0xd0] sm:$0xff] %v4256_v24 }
 0x566   : > { %v4260_v9 = vpop.f32.mrb[228].mxu1 }
 0x567   : > { %v4261_v38 = vadd.f32 %v7749_v12, %v4260_v9  ;;  %v4262_v41 = vpop.f32.mrb[229].mxu1 }
 0x569   : > { %4471 = vst [vmem:[%s7762_s15 + $0xd8] sm:$0xff] %v4261_v38 }
 0x56a   : > { %v4265_v2 = vpop.f32.mrb[230].mxu1 }
 0x56b   : > { %v4266_v45 = vadd.f32 %v7749_v12, %v4265_v2  ;;  %v4267_v44 = vpop.f32.mrb[231].mxu1 }
 0x56d   : > { %4472 = vst [vmem:[%s7762_s15 + $0xe0] sm:$0xff] %v4266_v45 }
 0x56e   : > { %v4270_v39 = vpop.f32.mrb[232].mxu1 }
 0x56f   : > { %v4271_v14 = vadd.f32 %v7749_v12, %v4270_v39  ;;  %v4272_v61 = vpop.f32.mrb[233].mxu1 }
 0x571   : > { %4473 = vst [vmem:[%s7762_s15 + $0xe8] sm:$0xff] %v4271_v14 }
 0x572   : > { %v4275_v1 = vpop.f32.mrb[234].mxu1 }
 0x573   : > { %v4276_v0 = vadd.f32 %v7749_v12, %v4275_v1  ;;  %v4277_v55 = vpop.f32.mrb[235].mxu1 }
 0x575   : > { %4474 = vst [vmem:[%s7762_s15 + $0xf0] sm:$0xff] %v4276_v0 }
 0x576   : > { %v4280_v63 = vpop.f32.mrb[236].mxu1 }
 0x577   : > { %v4281_v27 = vadd.f32 %v7749_v12, %v4280_v63  ;;  %v4282_v19 = vpop.f32.mrb[237].mxu1 }
 0x579   : > { %4475 = vst [vmem:[%s7762_s15 + $0xf8] sm:$0xff] %v4281_v27 }
 0x57a   : > { %v4285_v35 = vpop.f32.mrb[238].mxu1 }
 0x57b   : > { %v4286_v51 = vadd.f32 %v7749_v12, %v4285_v35  ;;  %v4287_v23 = vpop.f32.mrb[239].mxu1 }
 0x57d   : > { %4476 = vst [vmem:[%s7762_s15 + $0x100] sm:$0xff] %v4286_v51 }
 0x57e   : > { %v4290_v58 = vpop.f32.mrb[240].mxu1 }
 0x57f   : > { %v4291_v25 = vadd.f32 %v7749_v12, %v4290_v58  ;;  %v4292_v7 = vpop.f32.mrb[241].mxu1 }
 0x581   : > { %4477 = vst [vmem:[%s7762_s15 + $0x108] sm:$0xff] %v4291_v25 }
 0x582   : > { %v4295_v46 = vpop.f32.mrb[242].mxu1 }
 0x583   : > { %v4296_v16 = vadd.f32 %v7749_v12, %v4295_v46  ;;  %v4297_v17 = vpop.f32.mrb[243].mxu1 }
 0x585   : > { %4478 = vst [vmem:[%s7762_s15 + $0x110] sm:$0xff] %v4296_v16 }
 0x586   : > { %v4300_v49 = vpop.f32.mrb[244].mxu1 }
 0x587   : > { %v4301_v32 = vadd.f32 %v7749_v12, %v4300_v49  ;;  %v4302_v47 = vpop.f32.mrb[245].mxu1 }
 0x589   : > { %4479 = vst [vmem:[%s7762_s15 + $0x118] sm:$0xff] %v4301_v32 }
 0x58a   : > { %v4305_v31 = vpop.f32.mrb[246].mxu1 }
 0x58b   : > { %v4306_v43 = vadd.f32 %v7749_v12, %v4305_v31  ;;  %v4307_v28 = vpop.f32.mrb[247].mxu1 }
 0x58d   : > { %4480 = vst [vmem:[%s7762_s15 + $0x120] sm:$0xff] %v4306_v43 }
 0x58e   : > { %v4310_v4 = vpop.f32.mrb[248].mxu1 }
 0x58f   : > { %v4311_v60 = vadd.f32 %v7749_v12, %v4310_v4  ;;  %v4312_v20 = vpop.f32.mrb[249].mxu1 }
 0x591   : > { %4481 = vst [vmem:[%s7762_s15 + $0x128] sm:$0xff] %v4311_v60 }
 0x592   : > { %v4315_v30 = vpop.f32.mrb[250].mxu1 }
 0x593   : > { %v4316_v36 = vadd.f32 %v7749_v12, %v4315_v30  ;;  %v4317_v10 = vpop.f32.mrb[251].mxu1 }
 0x595   : > { %4482 = vst [vmem:[%s7762_s15 + $0x130] sm:$0xff] %v4316_v36 }
 0x596   : > { %v4320_v56 = vpop.f32.mrb[252].mxu1 }
 0x597   : > { %v4321_v62 = vadd.f32 %v7749_v12, %v4320_v56  ;;  %v4322_v53 = vpop.f32.mrb[253].mxu1 }
 0x599   : > { %4483 = vst [vmem:[%s7762_s15 + $0x138] sm:$0xff] %v4321_v62 }
 0x59a   : > { %v4325_v34 = vpop.f32.mrb[254].mxu1 }
 0x59b   : > { %v4326_v22 = vadd.f32 %v7749_v12, %v4325_v34  ;;  %v4327_v5 = vpop.f32.mrb[255].mxu1 }
 0x59d   : > { %4484 = vst [vmem:[%s7762_s15 + $0x140] sm:$0xff] %v4326_v22 }
 0x59e   : > { %v4330_v26 = vpop.f32.mrb[0].mxu1 }
 0x59f   : > { %v4331_v8 = vadd.f32 %v7749_v12, %v4330_v26  ;;  %v4332_v42 = vpop.f32.mrb[1].mxu1 }
 0x5a1   : > { %4485 = vst [vmem:[%s7762_s15 + $0x148] sm:$0xff] %v4331_v8 }
 0x5a2   : > { %v4335_v50 = vpop.f32.mrb[2].mxu1 }
 0x5a3   : > { %v4336_v40 = vadd.f32 %v7749_v12, %v4335_v50  ;;  %v4337_v54 = vpop.f32.mrb[3].mxu1 }
 0x5a5   : > { %4486 = vst [vmem:[%s7762_s15 + $0x150] sm:$0xff] %v4336_v40 }
 0x5a6   : > { %v4340_v52 = vpop.f32.mrb[4].mxu1 }
 0x5a7   : > { %v4341_v29 = vadd.f32 %v7749_v12, %v4340_v52  ;;  %v4342_v3 = vpop.f32.mrb[5].mxu1 }
 0x5a9   : > { %4487 = vst [vmem:[%s7762_s15 + $0x158] sm:$0xff] %v4341_v29 }
 0x5aa   : > { %v4345_v6 = vpop.f32.mrb[6].mxu1 }
 0x5ab   : > { %v4346_v11 = vadd.f32 %v7749_v12, %v4345_v6  ;;  %v4347_v13 = vpop.f32.mrb[7].mxu1 }
 0x5ad   : > { %4488 = vst [vmem:[%s7762_s15 + $0x160] sm:$0xff] %v4346_v11 }
 0x5ae   : > { %v4350_v57 = vpop.f32.mrb[8].mxu1 }
 0x5af   : > { %v4351_v37 = vadd.f32 %v7749_v12, %v4350_v57  ;;  %v4352_v33 = vpop.f32.mrb[9].mxu1 }
 0x5b1   : > { %4489 = vst [vmem:[%s7762_s15 + $0x168] sm:$0xff] %v4351_v37 }
 0x5b2   : > { %v4355_v48 = vpop.f32.mrb[10].mxu1 }
 0x5b3   : > { %v4356_v21 = vadd.f32 %v7749_v12, %v4355_v48  ;;  %v4357_v18 = vpop.f32.mrb[11].mxu1 }
 0x5b5   : > { %4490 = vst [vmem:[%s7762_s15 + $0x170] sm:$0xff] %v4356_v21 }
 0x5b6   : > { %v4360_v15 = vpop.f32.mrb[12].mxu1 }
 0x5b7   : > { %v4361_v24 = vadd.f32 %v7749_v12, %v4360_v15  ;;  %v4362_v59 = vpop.f32.mrb[13].mxu1 }
 0x5b9   : > { %4491 = vst [vmem:[%s7762_s15 + $0x178] sm:$0xff] %v4361_v24 }
 0x5ba   : > { %v4365_v9 = vpop.f32.mrb[14].mxu1 }
 0x5bb   : > { %v4366_v38 = vadd.f32 %v7749_v12, %v4365_v9  ;;  %v4367_v41 = vpop.f32.mrb[15].mxu1 }
 0x5bd   : > { %4492 = vst [vmem:[%s7762_s15 + $0x180] sm:$0xff] %v4366_v38 }
 0x5be   : > { %v4370_v2 = vpop.f32.mrb[16].mxu1 }
 0x5bf   : > { %v4371_v45 = vadd.f32 %v7749_v12, %v4370_v2  ;;  %v4372_v44 = vpop.f32.mrb[17].mxu1 }
 0x5c1   : > { %4493 = vst [vmem:[%s7762_s15 + $0x188] sm:$0xff] %v4371_v45 }
 0x5c2   : > { %v4375_v39 = vpop.f32.mrb[18].mxu1 }
 0x5c3   : > { %v4376_v14 = vadd.f32 %v7749_v12, %v4375_v39  ;;  %v4377_v61 = vpop.f32.mrb[19].mxu1 }
 0x5c5   : > { %4494 = vst [vmem:[%s7762_s15 + $0x190] sm:$0xff] %v4376_v14 }
 0x5c6   : > { %v4380_v1 = vpop.f32.mrb[20].mxu1 }
 0x5c7   : > { %v4381_v0 = vadd.f32 %v7749_v12, %v4380_v1  ;;  %v4382_v55 = vpop.f32.mrb[21].mxu1 }
 0x5c9   : > { %4495 = vst [vmem:[%s7762_s15 + $0x198] sm:$0xff] %v4381_v0 }
 0x5ca   : > { %v4385_v63 = vpop.f32.mrb[22].mxu1 }
 0x5cb   : > { %v4386_v27 = vadd.f32 %v7749_v12, %v4385_v63  ;;  %v4387_v19 = vpop.f32.mrb[23].mxu1 }
 0x5cd   : > { %4496 = vst [vmem:[%s7762_s15 + $0x1a0] sm:$0xff] %v4386_v27 }
 0x5ce   : > { %v4390_v35 = vpop.f32.mrb[24].mxu1 }
 0x5cf   : > { %v4391_v51 = vadd.f32 %v7749_v12, %v4390_v35  ;;  %v4392_v23 = vpop.f32.mrb[25].mxu1 }
 0x5d1   : > { %4497 = vst [vmem:[%s7762_s15 + $0x1a8] sm:$0xff] %v4391_v51 }
 0x5d2   : > { %v4395_v58 = vpop.f32.mrb[26].mxu1 }
 0x5d3   : > { %v4396_v25 = vadd.f32 %v7749_v12, %v4395_v58  ;;  %v4397_v7 = vpop.f32.mrb[27].mxu1 }
 0x5d5   : > { %4498 = vst [vmem:[%s7762_s15 + $0x1b0] sm:$0xff] %v4396_v25 }
 0x5d6   : > { %v4400_v46 = vpop.f32.mrb[28].mxu1 }
 0x5d7   : > { %v4401_v16 = vadd.f32 %v7749_v12, %v4400_v46  ;;  %v4402_v17 = vpop.f32.mrb[29].mxu1 }
 0x5d9   : > { %4499 = vst [vmem:[%s7762_s15 + $0x1b8] sm:$0xff] %v4401_v16 }
 0x5da   : > { %v4405_v49 = vpop.f32.mrb[30].mxu1 }
 0x5db   : > { %v4406_v32 = vadd.f32 %v7749_v12, %v4405_v49  ;;  %v4407_v47 = vpop.f32.mrb[31].mxu1 }
 0x5dd   : > { %4500 = vst [vmem:[%s7762_s15 + $0x1c0] sm:$0xff] %v4406_v32 }
 0x5de   : > { %v4410_v31 = vpop.f32.mrb[32].mxu1 }
 0x5df   : > { %v4411_v43 = vadd.f32 %v7749_v12, %v4410_v31  ;;  %v4412_v28 = vpop.f32.mrb[33].mxu1 }
 0x5e1   : > { %4501 = vst [vmem:[%s7762_s15 + $0x1c8] sm:$0xff] %v4411_v43 }
 0x5e2   : > { %v4415_v4 = vpop.f32.mrb[34].mxu1 }
 0x5e3   : > { %v4416_v60 = vadd.f32 %v7749_v12, %v4415_v4  ;;  %v4417_v20 = vpop.f32.mrb[35].mxu1 }
 0x5e5   : > { %4502 = vst [vmem:[%s7762_s15 + $0x1d0] sm:$0xff] %v4416_v60 }
 0x5e6   : > { %v4420_v30 = vpop.f32.mrb[36].mxu1 }
 0x5e7   : > { %v4421_v36 = vadd.f32 %v7749_v12, %v4420_v30  ;;  %v4422_v10 = vpop.f32.mrb[37].mxu1 }
 0x5e9   : > { %4503 = vst [vmem:[%s7762_s15 + $0x1d8] sm:$0xff] %v4421_v36 }
 0x5ea   : > { %v4425_v56 = vpop.f32.mrb[38].mxu1 }
 0x5eb   : > { %v4426_v62 = vadd.f32 %v7749_v12, %v4425_v56  ;;  %v4427_v53 = vpop.f32.mrb[39].mxu1 }
 0x5ed   : > { %4504 = vst [vmem:[%s7762_s15 + $0x1e0] sm:$0xff] %v4426_v62 }
 0x5ee   : > { %v4430_v34 = vpop.f32.mrb[40].mxu1 }
 0x5ef   : > { %v4431_v22 = vadd.f32 %v7749_v12, %v4430_v34  ;;  %v4432_v5 = vpop.f32.mrb[41].mxu1 }
 0x5f1   : > { %4505 = vst [vmem:[%s7762_s15 + $0x1e8] sm:$0xff] %v4431_v22 }
 0x5f2   : > { %v4435_v26 = vpop.f32.mrb[42].mxu1 }
 0x5f3   : > { %v4436_v8 = vadd.f32 %v7749_v12, %v4435_v26  ;;  %v4437_v42 = vpop.f32.mrb[43].mxu1 }
 0x5f5   : > { %4506 = vst [vmem:[%s7762_s15 + $0x1f0] sm:$0xff] %v4436_v8 }
 0x5f6   : > { %v4440_v50 = vpop.f32.mrb[44].mxu1 }
 0x5f7   : > { %v4441_v40 = vadd.f32 %v7749_v12, %v4440_v50  ;;  %v4442_v54 = vpop.f32.mrb[45].mxu1 }
 0x5f9   : > { %4507 = vst [vmem:[%s7762_s15 + $0x1f8] sm:$0xff] %v4441_v40 }
 0x5fa PF: > { %s21_s17 = sadd.s32 1, %s5617_s17  }
 0x5fb   : > { %p18_p4 = scmp.ge.s32.totalorder %s21_s17, 6  }
 0x5fd   :  { %20 = sbr.rel (!%p18_p4) target bundleno = 1 (0x1), region = 100 }

</bundles_post_ra>
